<compile_context>
chip_gen: v7x
topology: tpu7x:2x2x1
jax: 0.10.0
libtpu: 0.0.40
codegen_flags: <defaults>
</compile_context>

<pallas_src>
import jax
import jax.numpy as jnp
from jax.experimental import pallas as pl
from jax.experimental.pallas import tpu as pltpu

# Use true f32 matmuls everywhere (reference einsums + host-side weight folds)
# so kernel/reference agreement is at f32 accuracy, not bf16-pass accuracy.
jax.config.update("jax_default_matmul_precision", "highest")

# ---- model config (small, consistent with the module) ----------------------
B, S = 2, 8                 # batch, seq_len
R = B * S                   # flattened rows
NUC_FEAT = 16               # config.nucleotide_features
MOTIF_FEAT = 32             # config.motif_features
NUM_HEADS = 8               # nn.MultiheadAttention(num_heads=8)
HEAD_DIM = MOTIF_FEAT // NUM_HEADS
FFN_FEAT = 4 * MOTIF_FEAT
NUM_LAYERS = 2              # config.num_layers_per_scale
EPS = 1e-5                  # nn.LayerNorm default eps
NEG_INF = -1e9              # mask value (exp underflows to exactly 0)

# ---- parameter-slab row layout (every block starts on a multiple-of-8 row) --
LANES = 256
PW_R = 0                                   # (16, 32)  projection weight (in, out)
VEC_R = 16                                 # 8 rows of (1, c) vectors per layer
PB_R = VEC_R + NUM_LAYERS * 8              # (1, 32)   projection bias   (row 32)
MASK_R = PB_R + 8                          # (16, 16)  block-diag additive mask (row 40)
WQK_R = MASK_R + 16                        # (32, 64)  per layer: [Wq | Wk] (in, out), q pre-scaled
WVO_R = WQK_R + NUM_LAYERS * 32            # (32, 256) per layer: concat_h Wv_h^T @ Wo_h
W1_R = WVO_R + NUM_LAYERS * 32             # (32, 128) per layer: FFN1 (in, out)
W2_R = W1_R + NUM_LAYERS * 32              # (32, 128) per layer: FFN2 kept in torch (out, in) layout
ROWS = W2_R + NUM_LAYERS * 32              # 312 rows total  (~312 KiB slab)
# rows inside each layer's 8-row vector block:
V_LN1G, V_LN1B, V_LN2G, V_LN2B, V_BATTN, V_B2, V_BQK, V_B1 = range(8)


# ---- in-kernel helpers ------------------------------------------------------
def _layernorm(x, gamma, beta):
    # x: (R, E); gamma/beta: (1, E).  PyTorch LayerNorm: biased variance.
    mu = jnp.mean(x, axis=-1, keepdims=True)
    var = jnp.mean((x - mu) ** 2, axis=-1, keepdims=True)
    return (x - mu) * jax.lax.rsqrt(var + EPS) * gamma + beta


def _dot_t(a, b):
    # a: (M, K), b: (N, K) -> (M, N)   (contract last dims; i.e. a @ b.T)
    return jax.lax.dot_general(a, b, (((1,), (1,)), ((), ())),
                               preferred_element_type=jnp.float32)


# ---- fused Pallas kernel ----------------------------------------------------
def encoder_kernel(x_ref, slab_ref, o_ref):
    # ---- carve parameter views from the resident slab (all static slices) ----
    pw = slab_ref[PW_R:PW_R + NUC_FEAT, 0:MOTIF_FEAT]            # (16, 32)
    pb = slab_ref[PB_R:PB_R + 1, 0:MOTIF_FEAT]                   # (1, 32)
    mask = slab_ref[MASK_R:MASK_R + R, 0:R]                      # (16, 16) block-diag

    # input projection: (R, NUC) @ (NUC, E) + b
    x = jnp.dot(x_ref[...], pw, preferred_element_type=jnp.float32) + pb

    for l in range(NUM_LAYERS):                                  # static unroll (2)
        vb = VEC_R + 8 * l
        ln1g = slab_ref[vb + V_LN1G:vb + V_LN1G + 1, 0:MOTIF_FEAT]
        ln1b = slab_ref[vb + V_LN1B:vb + V_LN1B + 1, 0:MOTIF_FEAT]
        ln2g = slab_ref[vb + V_LN2G:vb + V_LN2G + 1, 0:MOTIF_FEAT]
        ln2b = slab_ref[vb + V_LN2B:vb + V_LN2B + 1, 0:MOTIF_FEAT]
        b_attn = slab_ref[vb + V_BATTN:vb + V_BATTN + 1, 0:MOTIF_FEAT]
        b2 = slab_ref[vb + V_B2:vb + V_B2 + 1, 0:MOTIF_FEAT]
        b_qk = slab_ref[vb + V_BQK:vb + V_BQK + 1, 0:2 * MOTIF_FEAT]
        b1 = slab_ref[vb + V_B1:vb + V_B1 + 1, 0:FFN_FEAT]
        w_qk = slab_ref[WQK_R + 32 * l:WQK_R + 32 * (l + 1), 0:2 * MOTIF_FEAT]   # (32, 64)
        w_vo = slab_ref[WVO_R + 32 * l:WVO_R + 32 * (l + 1), :]                  # (32, 256)
        w1 = slab_ref[W1_R + 32 * l:W1_R + 32 * (l + 1), 0:FFN_FEAT]             # (32, 128)
        w2 = slab_ref[W2_R + 32 * l:W2_R + 32 * (l + 1), 0:FFN_FEAT]             # (32, 128) torch layout

        # ---- pre-norm 1 + multi-head self-attention (dropout = identity) -----
        xn = _layernorm(x, ln1g, ln1b)
        # fused per-head q/k projections: one (16,32)@(32,64) matmul (q pre-scaled)
        qk = jnp.dot(xn, w_qk, preferred_element_type=jnp.float32) + b_qk        # (16, 64)
        # fused, folded V->out projection for all heads: one (16,32)@(32,256) matmul
        vo = jnp.dot(xn, w_vo, preferred_element_type=jnp.float32)               # (16, 256)

        attn = jnp.zeros((R, MOTIF_FEAT), jnp.float32)
        for h in range(NUM_HEADS):                               # static unroll (8)
            q = qk[:, h * HEAD_DIM:(h + 1) * HEAD_DIM]                           # (16, 4)
            k = qk[:, MOTIF_FEAT + h * HEAD_DIM:MOTIF_FEAT + (h + 1) * HEAD_DIM]  # (16, 4)
            s = _dot_t(q, k) + mask                                               # (16, 16)
            s = s - jnp.max(s, axis=-1, keepdims=True)
            p = jnp.exp(s)
            p = p / jnp.sum(p, axis=-1, keepdims=True)           # exact (needed for bias fold)
            attn = attn + jnp.dot(p, vo[:, h * MOTIF_FEAT:(h + 1) * MOTIF_FEAT],
                                  preferred_element_type=jnp.float32)             # (16, 32)
        x = x + attn + b_attn

        # ---- pre-norm 2 + FFN -------------------------------------------------
        xn2 = _layernorm(x, ln2g, ln2b)
        hid = jnp.maximum(
            jnp.dot(xn2, w1, preferred_element_type=jnp.float32) + b1, 0.0)       # (16, 128)
        x = x + _dot_t(hid, w2) + b2

    # (B*S, E) store; lane-packing 512 floats would cost more relayout than the
    # masked stores it removes.
    o_ref[...] = x


# ---- host-side parameter packing (one-time, lane-dense single slab) ---------
def build_param_slab(proj_params, layer_param_list):
    """Fold + pack all parameters into one (ROWS, 256) f32 slab.

    Folds done here for free: 1/sqrt(head_dim) into Wq/bq, per-head
    W_vo = Wv_h^T @ Wo_h (concatenated along lanes), and bv @ Wo + out_bias
    into a single attention bias.
    """
    E, H, Dh = MOTIF_FEAT, NUM_HEADS, HEAD_DIM
    scale = 1.0 / (Dh ** 0.5)
    pw, pb = proj_params

    def pad2(m, rows):
        m = jnp.asarray(m, jnp.float32)
        return jnp.pad(m, ((0, rows - m.shape[0]), (0, LANES - m.shape[1])))

    blocks = [pad2(pw.T, NUC_FEAT)]                                   # rows 0..15

    vec_blocks, wqk_b, wvo_b, w1_b, w2_b = [], [], [], [], []
    for (inpw, inpb, outw, outb, g1, bt1, g2, bt2, w1, b1, w2, b2) in layer_param_list:
        Wq, Wk, Wv = inpw[0:E] * scale, inpw[E:2 * E], inpw[2 * E:3 * E]
        bq, bk, bv = inpb[:, 0:E] * scale, inpb[:, E:2 * E], inpb[:, 2 * E:3 * E]
        WoT = outw.T                                                  # (E, E)
        wqk = jnp.concatenate([Wq.T, Wk.T], axis=1)                   # (32, 64)
        bqk = jnp.concatenate([bq, bk], axis=1)                       # (1, 64)
        WvT = Wv.T
        wvo = jnp.concatenate(
            [WvT[:, h * Dh:(h + 1) * Dh] @ WoT[h * Dh:(h + 1) * Dh, :]
             for h in range(H)], axis=1)                              # (32, 256)
        b_attn = bv @ WoT + outb                                      # (1, 32)
        vec = jnp.concatenate(
            [pad2(v, 1) for v in (g1, bt1, g2, bt2, b_attn, b2, bqk, b1)], axis=0)  # (8, 256)
        vec_blocks.append(vec)
        wqk_b.append(pad2(wqk, 32))
        wvo_b.append(pad2(wvo, 32))
        w1_b.append(pad2(w1.T, 32))                                   # (32, 128)
        w2_b.append(pad2(w2, 32))                                     # (32, 128), torch (out,in)
    blocks += vec_blocks                                              # rows 16..31
    blocks.append(pad2(jnp.asarray(pb, jnp.float32), 8))              # rows 32..39
    rows_i = jnp.arange(R)[:, None] // S
    cols_i = jnp.arange(R)[None, :] // S
    mask = jnp.where(rows_i == cols_i, 0.0, NEG_INF).astype(jnp.float32)
    blocks.append(pad2(mask, R))                                      # rows 40..55
    blocks += wqk_b + wvo_b + w1_b + w2_b
    slab = jnp.concatenate(blocks, axis=0)
    assert slab.shape == (ROWS, LANES), slab.shape
    return slab


# ---- wrapper: one fused pallas_call, no grid, everything resident in VMEM ---
def motif_encoder(x, proj_params, layer_param_list):
    b_, s_, _ = x.shape
    assert (b_, s_) == (B, S), "kernel constants are specialized to (B, S)"
    slab = build_param_slab(proj_params, layer_param_list)
    x2d = x.reshape(b_ * s_, NUC_FEAT)

    flops = (2 * R * NUC_FEAT * MOTIF_FEAT
             + NUM_LAYERS * (2 * R * MOTIF_FEAT * (2 * MOTIF_FEAT)            # qk
                             + 2 * R * MOTIF_FEAT * (NUM_HEADS * MOTIF_FEAT)  # vo
                             + NUM_HEADS * (2 * R * HEAD_DIM * R              # scores
                                            + 2 * R * R * MOTIF_FEAT)         # p @ vo_h
                             + 2 * 2 * R * MOTIF_FEAT * FFN_FEAT))            # FFN
    transcendentals = NUM_LAYERS * NUM_HEADS * R * R                          # exp
    bytes_accessed = 4 * (slab.size + x2d.size + R * MOTIF_FEAT)

    out = pl.pallas_call(
        encoder_kernel,
        out_shape=jax.ShapeDtypeStruct((b_ * s_, MOTIF_FEAT), jnp.float32),
        in_specs=[pl.BlockSpec(memory_space=pltpu.MemorySpace.VMEM),
                  pl.BlockSpec(memory_space=pltpu.MemorySpace.VMEM)],
        out_specs=pl.BlockSpec(memory_space=pltpu.MemorySpace.VMEM),
        cost_estimate=pl.CostEstimate(flops=flops,
                                      transcendentals=transcendentals,
                                      bytes_accessed=bytes_accessed),
    )(x2d, slab)
    return out.reshape(b_, s_, MOTIF_FEAT)


# ---- pure-JAX reference (for validation) ------------------------------------
def _ref_layernorm(x, g, b):
    mu = jnp.mean(x, axis=-1, keepdims=True)
    var = jnp.mean((x - mu) ** 2, axis=-1, keepdims=True)
    return (x - mu) * jax.lax.rsqrt(var + EPS) * g + b


def reference(x, proj_params, layer_param_list):
    w, b = proj_params
    x = jnp.einsum('bsf,of->bso', x, w) + b
    for (inpw, inpb, outw, outb, g1, bt1, g2, bt2, w1, b1, w2, b2) in layer_param_list:
        xn = _ref_layernorm(x, g1, bt1)
        qkv = jnp.einsum('bse,fe->bsf', xn, inpw) + inpb
        q, k, v = jnp.split(qkv, 3, axis=-1)
        qh = q.reshape(B, S, NUM_HEADS, HEAD_DIM) / (HEAD_DIM ** 0.5)
        kh = k.reshape(B, S, NUM_HEADS, HEAD_DIM)
        vh = v.reshape(B, S, NUM_HEADS, HEAD_DIM)
        sc = jnp.einsum('bqhd,bkhd->bhqk', qh, kh)
        p = jax.nn.softmax(sc, axis=-1)
        ctx = jnp.einsum('bhqk,bkhd->bqhd', p, vh).reshape(B, S, MOTIF_FEAT)
        attn = jnp.einsum('bse,fe->bsf', ctx, outw) + outb
        x = x + attn
        xn2 = _ref_layernorm(x, g2, bt2)
        h = jnp.maximum(jnp.einsum('bse,fe->bsf', xn2, w1) + b1, 0.0)
        ffn = jnp.einsum('bse,fe->bsf', h, w2) + b2
        x = x + ffn
    return x


# ---- deterministic parameter init (PyTorch layouts) -------------------------
def init_params(key):
    ks = jax.random.split(key, 4 + NUM_LAYERS * 12)
    ki = iter(ks)

    def nrm(shape, scale=0.1):
        return (scale * jax.random.normal(next(ki), shape)).astype(jnp.float32)

    proj_w = nrm((MOTIF_FEAT, NUC_FEAT))
    proj_b = nrm((1, MOTIF_FEAT), 0.01)
    layers = []
    for _ in range(NUM_LAYERS):
        inpw = nrm((3 * MOTIF_FEAT, MOTIF_FEAT))
        inpb = nrm((1, 3 * MOTIF_FEAT), 0.01)
        outw = nrm((MOTIF_FEAT, MOTIF_FEAT))
        outb = nrm((1, MOTIF_FEAT), 0.01)
        g1 = jnp.ones((1, MOTIF_FEAT), jnp.float32) + nrm((1, MOTIF_FEAT), 0.01)
        bt1 = nrm((1, MOTIF_FEAT), 0.01)
        g2 = jnp.ones((1, MOTIF_FEAT), jnp.float32) + nrm((1, MOTIF_FEAT), 0.01)
        bt2 = nrm((1, MOTIF_FEAT), 0.01)
        w1 = nrm((4 * MOTIF_FEAT, MOTIF_FEAT))
        b1 = nrm((1, 4 * MOTIF_FEAT), 0.01)
        w2 = nrm((MOTIF_FEAT, 4 * MOTIF_FEAT))
        b2 = nrm((1, MOTIF_FEAT), 0.01)
        layers.append((inpw, inpb, outw, outb, g1, bt1, g2, bt2, w1, b1, w2, b2))
    return (proj_w, proj_b), layers


# TODO(synk): the conv (use_attention=False) branch of MotifEncoder and
# training-mode dropout are not implemented; only the attention/eval branch is
# exercised.  For much larger batch*seq, add a 1-D row-block grid
# (dimension_semantics=("parallel",)) with weight index_maps pinned to block 0
# so the slab stays resident; at B*S=16 a grid split would cost more than it saves.

if __name__ == "__main__":
    key = jax.random.PRNGKey(0)
    kx, kp = jax.random.split(key)
    x = jax.random.normal(kx, (B, S, NUC_FEAT), dtype=jnp.float32)
    proj_params, layer_params = init_params(kp)

    out = jax.block_until_ready(motif_encoder(x, proj_params, layer_params))
    ref = jax.block_until_ready(reference(x, proj_params, layer_params))

    assert out.shape == (B, S, MOTIF_FEAT)
    max_err = float(jnp.max(jnp.abs(out - ref)))
    # Exact softmax division restores tight agreement (expected ~1e-5);
    # 5e-4 leaves margin for the host-side W_vo / bias re-association.
    assert jnp.allclose(out, ref, atol=5e-4, rtol=5e-4), f"max abs err {max_err}"
    print("KERNEL_OK")
</pallas_src>

<mosaic_0001>
module attributes {stable_mosaic.version = 11 : i64} {
  func.func @encoder_kernel(%arg0: memref<16x16xf32, #tpu.memory_space<vmem>>, %arg1: memref<312x256xf32, #tpu.memory_space<vmem>>, %arg2: memref<16x32xf32, #tpu.memory_space<vmem>>) attributes {dimension_semantics = [], scalar_prefetch = 0 : i64, scratch_operands = 0 : i64, tpu.core_type = #tpu.core_type<tc>} {
    %c0 = arith.constant 0 : index
    %c0_0 = arith.constant 0 : index
    %0 = vector.load %arg1[%c0, %c0_0] : memref<312x256xf32, #tpu.memory_space<vmem>>, vector<16x32xf32>
    %c32 = arith.constant 32 : index
    %c0_1 = arith.constant 0 : index
    %1 = vector.load %arg1[%c32, %c0_1] : memref<312x256xf32, #tpu.memory_space<vmem>>, vector<1x32xf32>
    %c40 = arith.constant 40 : index
    %c0_2 = arith.constant 0 : index
    %2 = vector.load %arg1[%c40, %c0_2] : memref<312x256xf32, #tpu.memory_space<vmem>>, vector<16x16xf32>
    %c0_3 = arith.constant 0 : index
    %c0_4 = arith.constant 0 : index
    %3 = vector.load %arg0[%c0_3, %c0_4] : memref<16x16xf32, #tpu.memory_space<vmem>>, vector<16x16xf32>
    %cst = arith.constant dense<0.000000e+00> : vector<16x32xf32>
    %4 = tpu.matmul %3, %0, %cst {dimension_numbers = #tpu.dot_dimension_numbers<[1], [0], [0], [1], [0, 0, 1, 1], [], []>, precision = #tpu.contract_precision<fp32>} : vector<16x16xf32>, vector<16x32xf32>, vector<16x32xf32> -> vector<16x32xf32>
    %5 = vector.broadcast %1 : vector<1x32xf32> to vector<16x32xf32>
    %6 = arith.addf %4, %5 : vector<16x32xf32>
    %c16 = arith.constant 16 : index
    %c0_5 = arith.constant 0 : index
    %7 = vector.load %arg1[%c16, %c0_5] : memref<312x256xf32, #tpu.memory_space<vmem>>, vector<1x32xf32>
    %c17 = arith.constant 17 : index
    %c0_6 = arith.constant 0 : index
    %8 = vector.load %arg1[%c17, %c0_6] : memref<312x256xf32, #tpu.memory_space<vmem>>, vector<1x32xf32>
    %c18 = arith.constant 18 : index
    %c0_7 = arith.constant 0 : index
    %9 = vector.load %arg1[%c18, %c0_7] : memref<312x256xf32, #tpu.memory_space<vmem>>, vector<1x32xf32>
    %c19 = arith.constant 19 : index
    %c0_8 = arith.constant 0 : index
    %10 = vector.load %arg1[%c19, %c0_8] : memref<312x256xf32, #tpu.memory_space<vmem>>, vector<1x32xf32>
    %c20 = arith.constant 20 : index
    %c0_9 = arith.constant 0 : index
    %11 = vector.load %arg1[%c20, %c0_9] : memref<312x256xf32, #tpu.memory_space<vmem>>, vector<1x32xf32>
    %c21 = arith.constant 21 : index
    %c0_10 = arith.constant 0 : index
    %12 = vector.load %arg1[%c21, %c0_10] : memref<312x256xf32, #tpu.memory_space<vmem>>, vector<1x32xf32>
    %c22 = arith.constant 22 : index
    %c0_11 = arith.constant 0 : index
    %13 = vector.load %arg1[%c22, %c0_11] : memref<312x256xf32, #tpu.memory_space<vmem>>, vector<1x64xf32>
    %c23 = arith.constant 23 : index
    %c0_12 = arith.constant 0 : index
    %14 = vector.load %arg1[%c23, %c0_12] : memref<312x256xf32, #tpu.memory_space<vmem>>, vector<1x128xf32>
    %c56 = arith.constant 56 : index
    %c0_13 = arith.constant 0 : index
    %15 = vector.load %arg1[%c56, %c0_13] : memref<312x256xf32, #tpu.memory_space<vmem>>, vector<32x64xf32>
    %c120 = arith.constant 120 : index
    %c0_14 = arith.constant 0 : index
    %16 = vector.load %arg1[%c120, %c0_14] : memref<312x256xf32, #tpu.memory_space<vmem>>, vector<32x256xf32>
    %c184 = arith.constant 184 : index
    %c0_15 = arith.constant 0 : index
    %17 = vector.load %arg1[%c184, %c0_15] : memref<312x256xf32, #tpu.memory_space<vmem>>, vector<32x128xf32>
    %c248 = arith.constant 248 : index
    %c0_16 = arith.constant 0 : index
    %18 = vector.load %arg1[%c248, %c0_16] : memref<312x256xf32, #tpu.memory_space<vmem>>, vector<32x128xf32>
    %cst_17 = arith.constant dense<0.000000e+00> : vector<16xf32>
    %19 = vector.multi_reduction <add>, %6, %cst_17 [1] : vector<16x32xf32> to vector<16xf32>
    %20 = vector.shape_cast %19 : vector<16xf32> to vector<16x1xf32>
    %cst_18 = arith.constant 3.200000e+01 : f32
    %21 = vector.broadcast %cst_18 : f32 to vector<16x1xf32>
    %22 = arith.divf %20, %21 : vector<16x1xf32>
    %23 = vector.broadcast %22 : vector<16x1xf32> to vector<16x32xf32>
    %24 = arith.subf %6, %23 : vector<16x32xf32>
    %25 = arith.mulf %24, %24 : vector<16x32xf32>
    %cst_19 = arith.constant dense<0.000000e+00> : vector<16xf32>
    %26 = vector.multi_reduction <add>, %25, %cst_19 [1] : vector<16x32xf32> to vector<16xf32>
    %27 = vector.shape_cast %26 : vector<16xf32> to vector<16x1xf32>
    %cst_20 = arith.constant 3.200000e+01 : f32
    %28 = vector.broadcast %cst_20 : f32 to vector<16x1xf32>
    %29 = arith.divf %27, %28 : vector<16x1xf32>
    %30 = vector.broadcast %22 : vector<16x1xf32> to vector<16x32xf32>
    %31 = arith.subf %6, %30 : vector<16x32xf32>
    %cst_21 = arith.constant 9.99999974E-6 : f32
    %32 = vector.broadcast %cst_21 : f32 to vector<16x1xf32>
    %33 = arith.addf %29, %32 : vector<16x1xf32>
    %34 = math.rsqrt %33 : vector<16x1xf32>
    %35 = vector.broadcast %34 : vector<16x1xf32> to vector<16x32xf32>
    %36 = arith.mulf %31, %35 : vector<16x32xf32>
    %37 = vector.broadcast %7 : vector<1x32xf32> to vector<16x32xf32>
    %38 = arith.mulf %36, %37 : vector<16x32xf32>
    %39 = vector.broadcast %8 : vector<1x32xf32> to vector<16x32xf32>
    %40 = arith.addf %38, %39 : vector<16x32xf32>
    %cst_22 = arith.constant dense<0.000000e+00> : vector<16x64xf32>
    %41 = tpu.matmul %40, %15, %cst_22 {dimension_numbers = #tpu.dot_dimension_numbers<[1], [0], [0], [1], [0, 0, 1, 1], [], []>, precision = #tpu.contract_precision<fp32>} : vector<16x32xf32>, vector<32x64xf32>, vector<16x64xf32> -> vector<16x64xf32>
    %42 = vector.broadcast %13 : vector<1x64xf32> to vector<16x64xf32>
    %43 = arith.addf %41, %42 : vector<16x64xf32>
    %cst_23 = arith.constant dense<0.000000e+00> : vector<16x256xf32>
    %44 = tpu.matmul %40, %16, %cst_23 {dimension_numbers = #tpu.dot_dimension_numbers<[1], [0], [0], [1], [0, 0, 1, 1], [], []>, precision = #tpu.contract_precision<fp32>} : vector<16x32xf32>, vector<32x256xf32>, vector<16x256xf32> -> vector<16x256xf32>
    %cst_24 = arith.constant 0.000000e+00 : f32
    %45 = vector.broadcast %cst_24 : f32 to vector<16x32xf32>
    %46 = vector.extract_strided_slice %43 {offsets = [0, 0], sizes = [16, 4], strides = [1, 1]} : vector<16x64xf32> to vector<16x4xf32>
    %47 = vector.extract_strided_slice %43 {offsets = [0, 32], sizes = [16, 4], strides = [1, 1]} : vector<16x64xf32> to vector<16x4xf32>
    %cst_25 = arith.constant dense<0.000000e+00> : vector<16x16xf32>
    %48 = tpu.matmul %46, %47, %cst_25 {dimension_numbers = #tpu.dot_dimension_numbers<[1], [1], [0], [0], [0, 0, 1, 0], [], []>, precision = #tpu.contract_precision<fp32>} : vector<16x4xf32>, vector<16x4xf32>, vector<16x16xf32> -> vector<16x16xf32>
    %49 = arith.addf %48, %2 : vector<16x16xf32>
    %cst_26 = arith.constant dense<0xFF800000> : vector<16xf32>
    %50 = vector.multi_reduction <maximumf>, %49, %cst_26 [1] : vector<16x16xf32> to vector<16xf32>
    %51 = vector.shape_cast %50 : vector<16xf32> to vector<16x1xf32>
    %52 = vector.broadcast %51 : vector<16x1xf32> to vector<16x16xf32>
    %53 = arith.subf %49, %52 : vector<16x16xf32>
    %54 = math.exp %53 : vector<16x16xf32>
    %cst_27 = arith.constant dense<0.000000e+00> : vector<16xf32>
    %55 = vector.multi_reduction <add>, %54, %cst_27 [1] : vector<16x16xf32> to vector<16xf32>
    %56 = vector.shape_cast %55 : vector<16xf32> to vector<16x1xf32>
    %57 = vector.broadcast %56 : vector<16x1xf32> to vector<16x16xf32>
    %58 = arith.divf %54, %57 : vector<16x16xf32>
    %59 = vector.extract_strided_slice %44 {offsets = [0, 0], sizes = [16, 32], strides = [1, 1]} : vector<16x256xf32> to vector<16x32xf32>
    %cst_28 = arith.constant dense<0.000000e+00> : vector<16x32xf32>
    %60 = tpu.matmul %58, %59, %cst_28 {dimension_numbers = #tpu.dot_dimension_numbers<[1], [0], [0], [1], [0, 0, 1, 1], [], []>, precision = #tpu.contract_precision<fp32>} : vector<16x16xf32>, vector<16x32xf32>, vector<16x32xf32> -> vector<16x32xf32>
    %61 = arith.addf %45, %60 : vector<16x32xf32>
    %62 = vector.extract_strided_slice %43 {offsets = [0, 4], sizes = [16, 4], strides = [1, 1]} : vector<16x64xf32> to vector<16x4xf32>
    %63 = vector.extract_strided_slice %43 {offsets = [0, 36], sizes = [16, 4], strides = [1, 1]} : vector<16x64xf32> to vector<16x4xf32>
    %cst_29 = arith.constant dense<0.000000e+00> : vector<16x16xf32>
    %64 = tpu.matmul %62, %63, %cst_29 {dimension_numbers = #tpu.dot_dimension_numbers<[1], [1], [0], [0], [0, 0, 1, 0], [], []>, precision = #tpu.contract_precision<fp32>} : vector<16x4xf32>, vector<16x4xf32>, vector<16x16xf32> -> vector<16x16xf32>
    %65 = arith.addf %64, %2 : vector<16x16xf32>
    %cst_30 = arith.constant dense<0xFF800000> : vector<16xf32>
    %66 = vector.multi_reduction <maximumf>, %65, %cst_30 [1] : vector<16x16xf32> to vector<16xf32>
    %67 = vector.shape_cast %66 : vector<16xf32> to vector<16x1xf32>
    %68 = vector.broadcast %67 : vector<16x1xf32> to vector<16x16xf32>
    %69 = arith.subf %65, %68 : vector<16x16xf32>
    %70 = math.exp %69 : vector<16x16xf32>
    %cst_31 = arith.constant dense<0.000000e+00> : vector<16xf32>
    %71 = vector.multi_reduction <add>, %70, %cst_31 [1] : vector<16x16xf32> to vector<16xf32>
    %72 = vector.shape_cast %71 : vector<16xf32> to vector<16x1xf32>
    %73 = vector.broadcast %72 : vector<16x1xf32> to vector<16x16xf32>
    %74 = arith.divf %70, %73 : vector<16x16xf32>
    %75 = vector.extract_strided_slice %44 {offsets = [0, 32], sizes = [16, 32], strides = [1, 1]} : vector<16x256xf32> to vector<16x32xf32>
    %cst_32 = arith.constant dense<0.000000e+00> : vector<16x32xf32>
    %76 = tpu.matmul %74, %75, %cst_32 {dimension_numbers = #tpu.dot_dimension_numbers<[1], [0], [0], [1], [0, 0, 1, 1], [], []>, precision = #tpu.contract_precision<fp32>} : vector<16x16xf32>, vector<16x32xf32>, vector<16x32xf32> -> vector<16x32xf32>
    %77 = arith.addf %61, %76 : vector<16x32xf32>
    %78 = vector.extract_strided_slice %43 {offsets = [0, 8], sizes = [16, 4], strides = [1, 1]} : vector<16x64xf32> to vector<16x4xf32>
    %79 = vector.extract_strided_slice %43 {offsets = [0, 40], sizes = [16, 4], strides = [1, 1]} : vector<16x64xf32> to vector<16x4xf32>
    %cst_33 = arith.constant dense<0.000000e+00> : vector<16x16xf32>
    %80 = tpu.matmul %78, %79, %cst_33 {dimension_numbers = #tpu.dot_dimension_numbers<[1], [1], [0], [0], [0, 0, 1, 0], [], []>, precision = #tpu.contract_precision<fp32>} : vector<16x4xf32>, vector<16x4xf32>, vector<16x16xf32> -> vector<16x16xf32>
    %81 = arith.addf %80, %2 : vector<16x16xf32>
    %cst_34 = arith.constant dense<0xFF800000> : vector<16xf32>
    %82 = vector.multi_reduction <maximumf>, %81, %cst_34 [1] : vector<16x16xf32> to vector<16xf32>
    %83 = vector.shape_cast %82 : vector<16xf32> to vector<16x1xf32>
    %84 = vector.broadcast %83 : vector<16x1xf32> to vector<16x16xf32>
    %85 = arith.subf %81, %84 : vector<16x16xf32>
    %86 = math.exp %85 : vector<16x16xf32>
    %cst_35 = arith.constant dense<0.000000e+00> : vector<16xf32>
    %87 = vector.multi_reduction <add>, %86, %cst_35 [1] : vector<16x16xf32> to vector<16xf32>
    %88 = vector.shape_cast %87 : vector<16xf32> to vector<16x1xf32>
    %89 = vector.broadcast %88 : vector<16x1xf32> to vector<16x16xf32>
    %90 = arith.divf %86, %89 : vector<16x16xf32>
    %91 = vector.extract_strided_slice %44 {offsets = [0, 64], sizes = [16, 32], strides = [1, 1]} : vector<16x256xf32> to vector<16x32xf32>
    %cst_36 = arith.constant dense<0.000000e+00> : vector<16x32xf32>
    %92 = tpu.matmul %90, %91, %cst_36 {dimension_numbers = #tpu.dot_dimension_numbers<[1], [0], [0], [1], [0, 0, 1, 1], [], []>, precision = #tpu.contract_precision<fp32>} : vector<16x16xf32>, vector<16x32xf32>, vector<16x32xf32> -> vector<16x32xf32>
    %93 = arith.addf %77, %92 : vector<16x32xf32>
    %94 = vector.extract_strided_slice %43 {offsets = [0, 12], sizes = [16, 4], strides = [1, 1]} : vector<16x64xf32> to vector<16x4xf32>
    %95 = vector.extract_strided_slice %43 {offsets = [0, 44], sizes = [16, 4], strides = [1, 1]} : vector<16x64xf32> to vector<16x4xf32>
    %cst_37 = arith.constant dense<0.000000e+00> : vector<16x16xf32>
    %96 = tpu.matmul %94, %95, %cst_37 {dimension_numbers = #tpu.dot_dimension_numbers<[1], [1], [0], [0], [0, 0, 1, 0], [], []>, precision = #tpu.contract_precision<fp32>} : vector<16x4xf32>, vector<16x4xf32>, vector<16x16xf32> -> vector<16x16xf32>
    %97 = arith.addf %96, %2 : vector<16x16xf32>
    %cst_38 = arith.constant dense<0xFF800000> : vector<16xf32>
    %98 = vector.multi_reduction <maximumf>, %97, %cst_38 [1] : vector<16x16xf32> to vector<16xf32>
    %99 = vector.shape_cast %98 : vector<16xf32> to vector<16x1xf32>
    %100 = vector.broadcast %99 : vector<16x1xf32> to vector<16x16xf32>
    %101 = arith.subf %97, %100 : vector<16x16xf32>
    %102 = math.exp %101 : vector<16x16xf32>
    %cst_39 = arith.constant dense<0.000000e+00> : vector<16xf32>
    %103 = vector.multi_reduction <add>, %102, %cst_39 [1] : vector<16x16xf32> to vector<16xf32>
    %104 = vector.shape_cast %103 : vector<16xf32> to vector<16x1xf32>
    %105 = vector.broadcast %104 : vector<16x1xf32> to vector<16x16xf32>
    %106 = arith.divf %102, %105 : vector<16x16xf32>
    %107 = vector.extract_strided_slice %44 {offsets = [0, 96], sizes = [16, 32], strides = [1, 1]} : vector<16x256xf32> to vector<16x32xf32>
    %cst_40 = arith.constant dense<0.000000e+00> : vector<16x32xf32>
    %108 = tpu.matmul %106, %107, %cst_40 {dimension_numbers = #tpu.dot_dimension_numbers<[1], [0], [0], [1], [0, 0, 1, 1], [], []>, precision = #tpu.contract_precision<fp32>} : vector<16x16xf32>, vector<16x32xf32>, vector<16x32xf32> -> vector<16x32xf32>
    %109 = arith.addf %93, %108 : vector<16x32xf32>
    %110 = vector.extract_strided_slice %43 {offsets = [0, 16], sizes = [16, 4], strides = [1, 1]} : vector<16x64xf32> to vector<16x4xf32>
    %111 = vector.extract_strided_slice %43 {offsets = [0, 48], sizes = [16, 4], strides = [1, 1]} : vector<16x64xf32> to vector<16x4xf32>
    %cst_41 = arith.constant dense<0.000000e+00> : vector<16x16xf32>
    %112 = tpu.matmul %110, %111, %cst_41 {dimension_numbers = #tpu.dot_dimension_numbers<[1], [1], [0], [0], [0, 0, 1, 0], [], []>, precision = #tpu.contract_precision<fp32>} : vector<16x4xf32>, vector<16x4xf32>, vector<16x16xf32> -> vector<16x16xf32>
    %113 = arith.addf %112, %2 : vector<16x16xf32>
    %cst_42 = arith.constant dense<0xFF800000> : vector<16xf32>
    %114 = vector.multi_reduction <maximumf>, %113, %cst_42 [1] : vector<16x16xf32> to vector<16xf32>
    %115 = vector.shape_cast %114 : vector<16xf32> to vector<16x1xf32>
    %116 = vector.broadcast %115 : vector<16x1xf32> to vector<16x16xf32>
    %117 = arith.subf %113, %116 : vector<16x16xf32>
    %118 = math.exp %117 : vector<16x16xf32>
    %cst_43 = arith.constant dense<0.000000e+00> : vector<16xf32>
    %119 = vector.multi_reduction <add>, %118, %cst_43 [1] : vector<16x16xf32> to vector<16xf32>
    %120 = vector.shape_cast %119 : vector<16xf32> to vector<16x1xf32>
    %121 = vector.broadcast %120 : vector<16x1xf32> to vector<16x16xf32>
    %122 = arith.divf %118, %121 : vector<16x16xf32>
    %123 = vector.extract_strided_slice %44 {offsets = [0, 128], sizes = [16, 32], strides = [1, 1]} : vector<16x256xf32> to vector<16x32xf32>
    %cst_44 = arith.constant dense<0.000000e+00> : vector<16x32xf32>
    %124 = tpu.matmul %122, %123, %cst_44 {dimension_numbers = #tpu.dot_dimension_numbers<[1], [0], [0], [1], [0, 0, 1, 1], [], []>, precision = #tpu.contract_precision<fp32>} : vector<16x16xf32>, vector<16x32xf32>, vector<16x32xf32> -> vector<16x32xf32>
    %125 = arith.addf %109, %124 : vector<16x32xf32>
    %126 = vector.extract_strided_slice %43 {offsets = [0, 20], sizes = [16, 4], strides = [1, 1]} : vector<16x64xf32> to vector<16x4xf32>
    %127 = vector.extract_strided_slice %43 {offsets = [0, 52], sizes = [16, 4], strides = [1, 1]} : vector<16x64xf32> to vector<16x4xf32>
    %cst_45 = arith.constant dense<0.000000e+00> : vector<16x16xf32>
    %128 = tpu.matmul %126, %127, %cst_45 {dimension_numbers = #tpu.dot_dimension_numbers<[1], [1], [0], [0], [0, 0, 1, 0], [], []>, precision = #tpu.contract_precision<fp32>} : vector<16x4xf32>, vector<16x4xf32>, vector<16x16xf32> -> vector<16x16xf32>
    %129 = arith.addf %128, %2 : vector<16x16xf32>
    %cst_46 = arith.constant dense<0xFF800000> : vector<16xf32>
    %130 = vector.multi_reduction <maximumf>, %129, %cst_46 [1] : vector<16x16xf32> to vector<16xf32>
    %131 = vector.shape_cast %130 : vector<16xf32> to vector<16x1xf32>
    %132 = vector.broadcast %131 : vector<16x1xf32> to vector<16x16xf32>
    %133 = arith.subf %129, %132 : vector<16x16xf32>
    %134 = math.exp %133 : vector<16x16xf32>
    %cst_47 = arith.constant dense<0.000000e+00> : vector<16xf32>
    %135 = vector.multi_reduction <add>, %134, %cst_47 [1] : vector<16x16xf32> to vector<16xf32>
    %136 = vector.shape_cast %135 : vector<16xf32> to vector<16x1xf32>
    %137 = vector.broadcast %136 : vector<16x1xf32> to vector<16x16xf32>
    %138 = arith.divf %134, %137 : vector<16x16xf32>
    %139 = vector.extract_strided_slice %44 {offsets = [0, 160], sizes = [16, 32], strides = [1, 1]} : vector<16x256xf32> to vector<16x32xf32>
    %cst_48 = arith.constant dense<0.000000e+00> : vector<16x32xf32>
    %140 = tpu.matmul %138, %139, %cst_48 {dimension_numbers = #tpu.dot_dimension_numbers<[1], [0], [0], [1], [0, 0, 1, 1], [], []>, precision = #tpu.contract_precision<fp32>} : vector<16x16xf32>, vector<16x32xf32>, vector<16x32xf32> -> vector<16x32xf32>
    %141 = arith.addf %125, %140 : vector<16x32xf32>
    %142 = vector.extract_strided_slice %43 {offsets = [0, 24], sizes = [16, 4], strides = [1, 1]} : vector<16x64xf32> to vector<16x4xf32>
    %143 = vector.extract_strided_slice %43 {offsets = [0, 56], sizes = [16, 4], strides = [1, 1]} : vector<16x64xf32> to vector<16x4xf32>
    %cst_49 = arith.constant dense<0.000000e+00> : vector<16x16xf32>
    %144 = tpu.matmul %142, %143, %cst_49 {dimension_numbers = #tpu.dot_dimension_numbers<[1], [1], [0], [0], [0, 0, 1, 0], [], []>, precision = #tpu.contract_precision<fp32>} : vector<16x4xf32>, vector<16x4xf32>, vector<16x16xf32> -> vector<16x16xf32>
    %145 = arith.addf %144, %2 : vector<16x16xf32>
    %cst_50 = arith.constant dense<0xFF800000> : vector<16xf32>
    %146 = vector.multi_reduction <maximumf>, %145, %cst_50 [1] : vector<16x16xf32> to vector<16xf32>
    %147 = vector.shape_cast %146 : vector<16xf32> to vector<16x1xf32>
    %148 = vector.broadcast %147 : vector<16x1xf32> to vector<16x16xf32>
    %149 = arith.subf %145, %148 : vector<16x16xf32>
    %150 = math.exp %149 : vector<16x16xf32>
    %cst_51 = arith.constant dense<0.000000e+00> : vector<16xf32>
    %151 = vector.multi_reduction <add>, %150, %cst_51 [1] : vector<16x16xf32> to vector<16xf32>
    %152 = vector.shape_cast %151 : vector<16xf32> to vector<16x1xf32>
    %153 = vector.broadcast %152 : vector<16x1xf32> to vector<16x16xf32>
    %154 = arith.divf %150, %153 : vector<16x16xf32>
    %155 = vector.extract_strided_slice %44 {offsets = [0, 192], sizes = [16, 32], strides = [1, 1]} : vector<16x256xf32> to vector<16x32xf32>
    %cst_52 = arith.constant dense<0.000000e+00> : vector<16x32xf32>
    %156 = tpu.matmul %154, %155, %cst_52 {dimension_numbers = #tpu.dot_dimension_numbers<[1], [0], [0], [1], [0, 0, 1, 1], [], []>, precision = #tpu.contract_precision<fp32>} : vector<16x16xf32>, vector<16x32xf32>, vector<16x32xf32> -> vector<16x32xf32>
    %157 = arith.addf %141, %156 : vector<16x32xf32>
    %158 = vector.extract_strided_slice %43 {offsets = [0, 28], sizes = [16, 4], strides = [1, 1]} : vector<16x64xf32> to vector<16x4xf32>
    %159 = vector.extract_strided_slice %43 {offsets = [0, 60], sizes = [16, 4], strides = [1, 1]} : vector<16x64xf32> to vector<16x4xf32>
    %cst_53 = arith.constant dense<0.000000e+00> : vector<16x16xf32>
    %160 = tpu.matmul %158, %159, %cst_53 {dimension_numbers = #tpu.dot_dimension_numbers<[1], [1], [0], [0], [0, 0, 1, 0], [], []>, precision = #tpu.contract_precision<fp32>} : vector<16x4xf32>, vector<16x4xf32>, vector<16x16xf32> -> vector<16x16xf32>
    %161 = arith.addf %160, %2 : vector<16x16xf32>
    %cst_54 = arith.constant dense<0xFF800000> : vector<16xf32>
    %162 = vector.multi_reduction <maximumf>, %161, %cst_54 [1] : vector<16x16xf32> to vector<16xf32>
    %163 = vector.shape_cast %162 : vector<16xf32> to vector<16x1xf32>
    %164 = vector.broadcast %163 : vector<16x1xf32> to vector<16x16xf32>
    %165 = arith.subf %161, %164 : vector<16x16xf32>
    %166 = math.exp %165 : vector<16x16xf32>
    %cst_55 = arith.constant dense<0.000000e+00> : vector<16xf32>
    %167 = vector.multi_reduction <add>, %166, %cst_55 [1] : vector<16x16xf32> to vector<16xf32>
    %168 = vector.shape_cast %167 : vector<16xf32> to vector<16x1xf32>
    %169 = vector.broadcast %168 : vector<16x1xf32> to vector<16x16xf32>
    %170 = arith.divf %166, %169 : vector<16x16xf32>
    %171 = vector.extract_strided_slice %44 {offsets = [0, 224], sizes = [16, 32], strides = [1, 1]} : vector<16x256xf32> to vector<16x32xf32>
    %cst_56 = arith.constant dense<0.000000e+00> : vector<16x32xf32>
    %172 = tpu.matmul %170, %171, %cst_56 {dimension_numbers = #tpu.dot_dimension_numbers<[1], [0], [0], [1], [0, 0, 1, 1], [], []>, precision = #tpu.contract_precision<fp32>} : vector<16x16xf32>, vector<16x32xf32>, vector<16x32xf32> -> vector<16x32xf32>
    %173 = arith.addf %157, %172 : vector<16x32xf32>
    %174 = arith.addf %6, %173 : vector<16x32xf32>
    %175 = vector.broadcast %11 : vector<1x32xf32> to vector<16x32xf32>
    %176 = arith.addf %174, %175 : vector<16x32xf32>
    %cst_57 = arith.constant dense<0.000000e+00> : vector<16xf32>
    %177 = vector.multi_reduction <add>, %176, %cst_57 [1] : vector<16x32xf32> to vector<16xf32>
    %178 = vector.shape_cast %177 : vector<16xf32> to vector<16x1xf32>
    %cst_58 = arith.constant 3.200000e+01 : f32
    %179 = vector.broadcast %cst_58 : f32 to vector<16x1xf32>
    %180 = arith.divf %178, %179 : vector<16x1xf32>
    %181 = vector.broadcast %180 : vector<16x1xf32> to vector<16x32xf32>
    %182 = arith.subf %176, %181 : vector<16x32xf32>
    %183 = arith.mulf %182, %182 : vector<16x32xf32>
    %cst_59 = arith.constant dense<0.000000e+00> : vector<16xf32>
    %184 = vector.multi_reduction <add>, %183, %cst_59 [1] : vector<16x32xf32> to vector<16xf32>
    %185 = vector.shape_cast %184 : vector<16xf32> to vector<16x1xf32>
    %cst_60 = arith.constant 3.200000e+01 : f32
    %186 = vector.broadcast %cst_60 : f32 to vector<16x1xf32>
    %187 = arith.divf %185, %186 : vector<16x1xf32>
    %188 = vector.broadcast %180 : vector<16x1xf32> to vector<16x32xf32>
    %189 = arith.subf %176, %188 : vector<16x32xf32>
    %cst_61 = arith.constant 9.99999974E-6 : f32
    %190 = vector.broadcast %cst_61 : f32 to vector<16x1xf32>
    %191 = arith.addf %187, %190 : vector<16x1xf32>
    %192 = math.rsqrt %191 : vector<16x1xf32>
    %193 = vector.broadcast %192 : vector<16x1xf32> to vector<16x32xf32>
    %194 = arith.mulf %189, %193 : vector<16x32xf32>
    %195 = vector.broadcast %9 : vector<1x32xf32> to vector<16x32xf32>
    %196 = arith.mulf %194, %195 : vector<16x32xf32>
    %197 = vector.broadcast %10 : vector<1x32xf32> to vector<16x32xf32>
    %198 = arith.addf %196, %197 : vector<16x32xf32>
    %cst_62 = arith.constant dense<0.000000e+00> : vector<16x128xf32>
    %199 = tpu.matmul %198, %17, %cst_62 {dimension_numbers = #tpu.dot_dimension_numbers<[1], [0], [0], [1], [0, 0, 1, 1], [], []>, precision = #tpu.contract_precision<fp32>} : vector<16x32xf32>, vector<32x128xf32>, vector<16x128xf32> -> vector<16x128xf32>
    %200 = vector.broadcast %14 : vector<1x128xf32> to vector<16x128xf32>
    %201 = arith.addf %199, %200 : vector<16x128xf32>
    %cst_63 = arith.constant 0.000000e+00 : f32
    %202 = vector.broadcast %cst_63 : f32 to vector<16x128xf32>
    %203 = arith.maximumf %201, %202 : vector<16x128xf32>
    %cst_64 = arith.constant dense<0.000000e+00> : vector<16x32xf32>
    %204 = tpu.matmul %203, %18, %cst_64 {dimension_numbers = #tpu.dot_dimension_numbers<[1], [1], [0], [0], [0, 0, 1, 0], [], []>, precision = #tpu.contract_precision<fp32>} : vector<16x128xf32>, vector<32x128xf32>, vector<16x32xf32> -> vector<16x32xf32>
    %205 = arith.addf %176, %204 : vector<16x32xf32>
    %206 = vector.broadcast %12 : vector<1x32xf32> to vector<16x32xf32>
    %207 = arith.addf %205, %206 : vector<16x32xf32>
    %c24 = arith.constant 24 : index
    %c0_65 = arith.constant 0 : index
    %208 = vector.load %arg1[%c24, %c0_65] : memref<312x256xf32, #tpu.memory_space<vmem>>, vector<1x32xf32>
    %c25 = arith.constant 25 : index
    %c0_66 = arith.constant 0 : index
    %209 = vector.load %arg1[%c25, %c0_66] : memref<312x256xf32, #tpu.memory_space<vmem>>, vector<1x32xf32>
    %c26 = arith.constant 26 : index
    %c0_67 = arith.constant 0 : index
    %210 = vector.load %arg1[%c26, %c0_67] : memref<312x256xf32, #tpu.memory_space<vmem>>, vector<1x32xf32>
    %c27 = arith.constant 27 : index
    %c0_68 = arith.constant 0 : index
    %211 = vector.load %arg1[%c27, %c0_68] : memref<312x256xf32, #tpu.memory_space<vmem>>, vector<1x32xf32>
    %c28 = arith.constant 28 : index
    %c0_69 = arith.constant 0 : index
    %212 = vector.load %arg1[%c28, %c0_69] : memref<312x256xf32, #tpu.memory_space<vmem>>, vector<1x32xf32>
    %c29 = arith.constant 29 : index
    %c0_70 = arith.constant 0 : index
    %213 = vector.load %arg1[%c29, %c0_70] : memref<312x256xf32, #tpu.memory_space<vmem>>, vector<1x32xf32>
    %c30 = arith.constant 30 : index
    %c0_71 = arith.constant 0 : index
    %214 = vector.load %arg1[%c30, %c0_71] : memref<312x256xf32, #tpu.memory_space<vmem>>, vector<1x64xf32>
    %c31 = arith.constant 31 : index
    %c0_72 = arith.constant 0 : index
    %215 = vector.load %arg1[%c31, %c0_72] : memref<312x256xf32, #tpu.memory_space<vmem>>, vector<1x128xf32>
    %c88 = arith.constant 88 : index
    %c0_73 = arith.constant 0 : index
    %216 = vector.load %arg1[%c88, %c0_73] : memref<312x256xf32, #tpu.memory_space<vmem>>, vector<32x64xf32>
    %c152 = arith.constant 152 : index
    %c0_74 = arith.constant 0 : index
    %217 = vector.load %arg1[%c152, %c0_74] : memref<312x256xf32, #tpu.memory_space<vmem>>, vector<32x256xf32>
    %c216 = arith.constant 216 : index
    %c0_75 = arith.constant 0 : index
    %218 = vector.load %arg1[%c216, %c0_75] : memref<312x256xf32, #tpu.memory_space<vmem>>, vector<32x128xf32>
    %c280 = arith.constant 280 : index
    %c0_76 = arith.constant 0 : index
    %219 = vector.load %arg1[%c280, %c0_76] : memref<312x256xf32, #tpu.memory_space<vmem>>, vector<32x128xf32>
    %cst_77 = arith.constant dense<0.000000e+00> : vector<16xf32>
    %220 = vector.multi_reduction <add>, %207, %cst_77 [1] : vector<16x32xf32> to vector<16xf32>
    %221 = vector.shape_cast %220 : vector<16xf32> to vector<16x1xf32>
    %cst_78 = arith.constant 3.200000e+01 : f32
    %222 = vector.broadcast %cst_78 : f32 to vector<16x1xf32>
    %223 = arith.divf %221, %222 : vector<16x1xf32>
    %224 = vector.broadcast %223 : vector<16x1xf32> to vector<16x32xf32>
    %225 = arith.subf %207, %224 : vector<16x32xf32>
    %226 = arith.mulf %225, %225 : vector<16x32xf32>
    %cst_79 = arith.constant dense<0.000000e+00> : vector<16xf32>
    %227 = vector.multi_reduction <add>, %226, %cst_79 [1] : vector<16x32xf32> to vector<16xf32>
    %228 = vector.shape_cast %227 : vector<16xf32> to vector<16x1xf32>
    %cst_80 = arith.constant 3.200000e+01 : f32
    %229 = vector.broadcast %cst_80 : f32 to vector<16x1xf32>
    %230 = arith.divf %228, %229 : vector<16x1xf32>
    %231 = vector.broadcast %223 : vector<16x1xf32> to vector<16x32xf32>
    %232 = arith.subf %207, %231 : vector<16x32xf32>
    %cst_81 = arith.constant 9.99999974E-6 : f32
    %233 = vector.broadcast %cst_81 : f32 to vector<16x1xf32>
    %234 = arith.addf %230, %233 : vector<16x1xf32>
    %235 = math.rsqrt %234 : vector<16x1xf32>
    %236 = vector.broadcast %235 : vector<16x1xf32> to vector<16x32xf32>
    %237 = arith.mulf %232, %236 : vector<16x32xf32>
    %238 = vector.broadcast %208 : vector<1x32xf32> to vector<16x32xf32>
    %239 = arith.mulf %237, %238 : vector<16x32xf32>
    %240 = vector.broadcast %209 : vector<1x32xf32> to vector<16x32xf32>
    %241 = arith.addf %239, %240 : vector<16x32xf32>
    %cst_82 = arith.constant dense<0.000000e+00> : vector<16x64xf32>
    %242 = tpu.matmul %241, %216, %cst_82 {dimension_numbers = #tpu.dot_dimension_numbers<[1], [0], [0], [1], [0, 0, 1, 1], [], []>, precision = #tpu.contract_precision<fp32>} : vector<16x32xf32>, vector<32x64xf32>, vector<16x64xf32> -> vector<16x64xf32>
    %243 = vector.broadcast %214 : vector<1x64xf32> to vector<16x64xf32>
    %244 = arith.addf %242, %243 : vector<16x64xf32>
    %cst_83 = arith.constant dense<0.000000e+00> : vector<16x256xf32>
    %245 = tpu.matmul %241, %217, %cst_83 {dimension_numbers = #tpu.dot_dimension_numbers<[1], [0], [0], [1], [0, 0, 1, 1], [], []>, precision = #tpu.contract_precision<fp32>} : vector<16x32xf32>, vector<32x256xf32>, vector<16x256xf32> -> vector<16x256xf32>
    %cst_84 = arith.constant 0.000000e+00 : f32
    %246 = vector.broadcast %cst_84 : f32 to vector<16x32xf32>
    %247 = vector.extract_strided_slice %244 {offsets = [0, 0], sizes = [16, 4], strides = [1, 1]} : vector<16x64xf32> to vector<16x4xf32>
    %248 = vector.extract_strided_slice %244 {offsets = [0, 32], sizes = [16, 4], strides = [1, 1]} : vector<16x64xf32> to vector<16x4xf32>
    %cst_85 = arith.constant dense<0.000000e+00> : vector<16x16xf32>
    %249 = tpu.matmul %247, %248, %cst_85 {dimension_numbers = #tpu.dot_dimension_numbers<[1], [1], [0], [0], [0, 0, 1, 0], [], []>, precision = #tpu.contract_precision<fp32>} : vector<16x4xf32>, vector<16x4xf32>, vector<16x16xf32> -> vector<16x16xf32>
    %250 = arith.addf %249, %2 : vector<16x16xf32>
    %cst_86 = arith.constant dense<0xFF800000> : vector<16xf32>
    %251 = vector.multi_reduction <maximumf>, %250, %cst_86 [1] : vector<16x16xf32> to vector<16xf32>
    %252 = vector.shape_cast %251 : vector<16xf32> to vector<16x1xf32>
    %253 = vector.broadcast %252 : vector<16x1xf32> to vector<16x16xf32>
    %254 = arith.subf %250, %253 : vector<16x16xf32>
    %255 = math.exp %254 : vector<16x16xf32>
    %cst_87 = arith.constant dense<0.000000e+00> : vector<16xf32>
    %256 = vector.multi_reduction <add>, %255, %cst_87 [1] : vector<16x16xf32> to vector<16xf32>
    %257 = vector.shape_cast %256 : vector<16xf32> to vector<16x1xf32>
    %258 = vector.broadcast %257 : vector<16x1xf32> to vector<16x16xf32>
    %259 = arith.divf %255, %258 : vector<16x16xf32>
    %260 = vector.extract_strided_slice %245 {offsets = [0, 0], sizes = [16, 32], strides = [1, 1]} : vector<16x256xf32> to vector<16x32xf32>
    %cst_88 = arith.constant dense<0.000000e+00> : vector<16x32xf32>
    %261 = tpu.matmul %259, %260, %cst_88 {dimension_numbers = #tpu.dot_dimension_numbers<[1], [0], [0], [1], [0, 0, 1, 1], [], []>, precision = #tpu.contract_precision<fp32>} : vector<16x16xf32>, vector<16x32xf32>, vector<16x32xf32> -> vector<16x32xf32>
    %262 = arith.addf %246, %261 : vector<16x32xf32>
    %263 = vector.extract_strided_slice %244 {offsets = [0, 4], sizes = [16, 4], strides = [1, 1]} : vector<16x64xf32> to vector<16x4xf32>
    %264 = vector.extract_strided_slice %244 {offsets = [0, 36], sizes = [16, 4], strides = [1, 1]} : vector<16x64xf32> to vector<16x4xf32>
    %cst_89 = arith.constant dense<0.000000e+00> : vector<16x16xf32>
    %265 = tpu.matmul %263, %264, %cst_89 {dimension_numbers = #tpu.dot_dimension_numbers<[1], [1], [0], [0], [0, 0, 1, 0], [], []>, precision = #tpu.contract_precision<fp32>} : vector<16x4xf32>, vector<16x4xf32>, vector<16x16xf32> -> vector<16x16xf32>
    %266 = arith.addf %265, %2 : vector<16x16xf32>
    %cst_90 = arith.constant dense<0xFF800000> : vector<16xf32>
    %267 = vector.multi_reduction <maximumf>, %266, %cst_90 [1] : vector<16x16xf32> to vector<16xf32>
    %268 = vector.shape_cast %267 : vector<16xf32> to vector<16x1xf32>
    %269 = vector.broadcast %268 : vector<16x1xf32> to vector<16x16xf32>
    %270 = arith.subf %266, %269 : vector<16x16xf32>
    %271 = math.exp %270 : vector<16x16xf32>
    %cst_91 = arith.constant dense<0.000000e+00> : vector<16xf32>
    %272 = vector.multi_reduction <add>, %271, %cst_91 [1] : vector<16x16xf32> to vector<16xf32>
    %273 = vector.shape_cast %272 : vector<16xf32> to vector<16x1xf32>
    %274 = vector.broadcast %273 : vector<16x1xf32> to vector<16x16xf32>
    %275 = arith.divf %271, %274 : vector<16x16xf32>
    %276 = vector.extract_strided_slice %245 {offsets = [0, 32], sizes = [16, 32], strides = [1, 1]} : vector<16x256xf32> to vector<16x32xf32>
    %cst_92 = arith.constant dense<0.000000e+00> : vector<16x32xf32>
    %277 = tpu.matmul %275, %276, %cst_92 {dimension_numbers = #tpu.dot_dimension_numbers<[1], [0], [0], [1], [0, 0, 1, 1], [], []>, precision = #tpu.contract_precision<fp32>} : vector<16x16xf32>, vector<16x32xf32>, vector<16x32xf32> -> vector<16x32xf32>
    %278 = arith.addf %262, %277 : vector<16x32xf32>
    %279 = vector.extract_strided_slice %244 {offsets = [0, 8], sizes = [16, 4], strides = [1, 1]} : vector<16x64xf32> to vector<16x4xf32>
    %280 = vector.extract_strided_slice %244 {offsets = [0, 40], sizes = [16, 4], strides = [1, 1]} : vector<16x64xf32> to vector<16x4xf32>
    %cst_93 = arith.constant dense<0.000000e+00> : vector<16x16xf32>
    %281 = tpu.matmul %279, %280, %cst_93 {dimension_numbers = #tpu.dot_dimension_numbers<[1], [1], [0], [0], [0, 0, 1, 0], [], []>, precision = #tpu.contract_precision<fp32>} : vector<16x4xf32>, vector<16x4xf32>, vector<16x16xf32> -> vector<16x16xf32>
    %282 = arith.addf %281, %2 : vector<16x16xf32>
    %cst_94 = arith.constant dense<0xFF800000> : vector<16xf32>
    %283 = vector.multi_reduction <maximumf>, %282, %cst_94 [1] : vector<16x16xf32> to vector<16xf32>
    %284 = vector.shape_cast %283 : vector<16xf32> to vector<16x1xf32>
    %285 = vector.broadcast %284 : vector<16x1xf32> to vector<16x16xf32>
    %286 = arith.subf %282, %285 : vector<16x16xf32>
    %287 = math.exp %286 : vector<16x16xf32>
    %cst_95 = arith.constant dense<0.000000e+00> : vector<16xf32>
    %288 = vector.multi_reduction <add>, %287, %cst_95 [1] : vector<16x16xf32> to vector<16xf32>
    %289 = vector.shape_cast %288 : vector<16xf32> to vector<16x1xf32>
    %290 = vector.broadcast %289 : vector<16x1xf32> to vector<16x16xf32>
    %291 = arith.divf %287, %290 : vector<16x16xf32>
    %292 = vector.extract_strided_slice %245 {offsets = [0, 64], sizes = [16, 32], strides = [1, 1]} : vector<16x256xf32> to vector<16x32xf32>
    %cst_96 = arith.constant dense<0.000000e+00> : vector<16x32xf32>
    %293 = tpu.matmul %291, %292, %cst_96 {dimension_numbers = #tpu.dot_dimension_numbers<[1], [0], [0], [1], [0, 0, 1, 1], [], []>, precision = #tpu.contract_precision<fp32>} : vector<16x16xf32>, vector<16x32xf32>, vector<16x32xf32> -> vector<16x32xf32>
    %294 = arith.addf %278, %293 : vector<16x32xf32>
    %295 = vector.extract_strided_slice %244 {offsets = [0, 12], sizes = [16, 4], strides = [1, 1]} : vector<16x64xf32> to vector<16x4xf32>
    %296 = vector.extract_strided_slice %244 {offsets = [0, 44], sizes = [16, 4], strides = [1, 1]} : vector<16x64xf32> to vector<16x4xf32>
    %cst_97 = arith.constant dense<0.000000e+00> : vector<16x16xf32>
    %297 = tpu.matmul %295, %296, %cst_97 {dimension_numbers = #tpu.dot_dimension_numbers<[1], [1], [0], [0], [0, 0, 1, 0], [], []>, precision = #tpu.contract_precision<fp32>} : vector<16x4xf32>, vector<16x4xf32>, vector<16x16xf32> -> vector<16x16xf32>
    %298 = arith.addf %297, %2 : vector<16x16xf32>
    %cst_98 = arith.constant dense<0xFF800000> : vector<16xf32>
    %299 = vector.multi_reduction <maximumf>, %298, %cst_98 [1] : vector<16x16xf32> to vector<16xf32>
    %300 = vector.shape_cast %299 : vector<16xf32> to vector<16x1xf32>
    %301 = vector.broadcast %300 : vector<16x1xf32> to vector<16x16xf32>
    %302 = arith.subf %298, %301 : vector<16x16xf32>
    %303 = math.exp %302 : vector<16x16xf32>
    %cst_99 = arith.constant dense<0.000000e+00> : vector<16xf32>
    %304 = vector.multi_reduction <add>, %303, %cst_99 [1] : vector<16x16xf32> to vector<16xf32>
    %305 = vector.shape_cast %304 : vector<16xf32> to vector<16x1xf32>
    %306 = vector.broadcast %305 : vector<16x1xf32> to vector<16x16xf32>
    %307 = arith.divf %303, %306 : vector<16x16xf32>
    %308 = vector.extract_strided_slice %245 {offsets = [0, 96], sizes = [16, 32], strides = [1, 1]} : vector<16x256xf32> to vector<16x32xf32>
    %cst_100 = arith.constant dense<0.000000e+00> : vector<16x32xf32>
    %309 = tpu.matmul %307, %308, %cst_100 {dimension_numbers = #tpu.dot_dimension_numbers<[1], [0], [0], [1], [0, 0, 1, 1], [], []>, precision = #tpu.contract_precision<fp32>} : vector<16x16xf32>, vector<16x32xf32>, vector<16x32xf32> -> vector<16x32xf32>
    %310 = arith.addf %294, %309 : vector<16x32xf32>
    %311 = vector.extract_strided_slice %244 {offsets = [0, 16], sizes = [16, 4], strides = [1, 1]} : vector<16x64xf32> to vector<16x4xf32>
    %312 = vector.extract_strided_slice %244 {offsets = [0, 48], sizes = [16, 4], strides = [1, 1]} : vector<16x64xf32> to vector<16x4xf32>
    %cst_101 = arith.constant dense<0.000000e+00> : vector<16x16xf32>
    %313 = tpu.matmul %311, %312, %cst_101 {dimension_numbers = #tpu.dot_dimension_numbers<[1], [1], [0], [0], [0, 0, 1, 0], [], []>, precision = #tpu.contract_precision<fp32>} : vector<16x4xf32>, vector<16x4xf32>, vector<16x16xf32> -> vector<16x16xf32>
    %314 = arith.addf %313, %2 : vector<16x16xf32>
    %cst_102 = arith.constant dense<0xFF800000> : vector<16xf32>
    %315 = vector.multi_reduction <maximumf>, %314, %cst_102 [1] : vector<16x16xf32> to vector<16xf32>
    %316 = vector.shape_cast %315 : vector<16xf32> to vector<16x1xf32>
    %317 = vector.broadcast %316 : vector<16x1xf32> to vector<16x16xf32>
    %318 = arith.subf %314, %317 : vector<16x16xf32>
    %319 = math.exp %318 : vector<16x16xf32>
    %cst_103 = arith.constant dense<0.000000e+00> : vector<16xf32>
    %320 = vector.multi_reduction <add>, %319, %cst_103 [1] : vector<16x16xf32> to vector<16xf32>
    %321 = vector.shape_cast %320 : vector<16xf32> to vector<16x1xf32>
    %322 = vector.broadcast %321 : vector<16x1xf32> to vector<16x16xf32>
    %323 = arith.divf %319, %322 : vector<16x16xf32>
    %324 = vector.extract_strided_slice %245 {offsets = [0, 128], sizes = [16, 32], strides = [1, 1]} : vector<16x256xf32> to vector<16x32xf32>
    %cst_104 = arith.constant dense<0.000000e+00> : vector<16x32xf32>
    %325 = tpu.matmul %323, %324, %cst_104 {dimension_numbers = #tpu.dot_dimension_numbers<[1], [0], [0], [1], [0, 0, 1, 1], [], []>, precision = #tpu.contract_precision<fp32>} : vector<16x16xf32>, vector<16x32xf32>, vector<16x32xf32> -> vector<16x32xf32>
    %326 = arith.addf %310, %325 : vector<16x32xf32>
    %327 = vector.extract_strided_slice %244 {offsets = [0, 20], sizes = [16, 4], strides = [1, 1]} : vector<16x64xf32> to vector<16x4xf32>
    %328 = vector.extract_strided_slice %244 {offsets = [0, 52], sizes = [16, 4], strides = [1, 1]} : vector<16x64xf32> to vector<16x4xf32>
    %cst_105 = arith.constant dense<0.000000e+00> : vector<16x16xf32>
    %329 = tpu.matmul %327, %328, %cst_105 {dimension_numbers = #tpu.dot_dimension_numbers<[1], [1], [0], [0], [0, 0, 1, 0], [], []>, precision = #tpu.contract_precision<fp32>} : vector<16x4xf32>, vector<16x4xf32>, vector<16x16xf32> -> vector<16x16xf32>
    %330 = arith.addf %329, %2 : vector<16x16xf32>
    %cst_106 = arith.constant dense<0xFF800000> : vector<16xf32>
    %331 = vector.multi_reduction <maximumf>, %330, %cst_106 [1] : vector<16x16xf32> to vector<16xf32>
    %332 = vector.shape_cast %331 : vector<16xf32> to vector<16x1xf32>
    %333 = vector.broadcast %332 : vector<16x1xf32> to vector<16x16xf32>
    %334 = arith.subf %330, %333 : vector<16x16xf32>
    %335 = math.exp %334 : vector<16x16xf32>
    %cst_107 = arith.constant dense<0.000000e+00> : vector<16xf32>
    %336 = vector.multi_reduction <add>, %335, %cst_107 [1] : vector<16x16xf32> to vector<16xf32>
    %337 = vector.shape_cast %336 : vector<16xf32> to vector<16x1xf32>
    %338 = vector.broadcast %337 : vector<16x1xf32> to vector<16x16xf32>
    %339 = arith.divf %335, %338 : vector<16x16xf32>
    %340 = vector.extract_strided_slice %245 {offsets = [0, 160], sizes = [16, 32], strides = [1, 1]} : vector<16x256xf32> to vector<16x32xf32>
    %cst_108 = arith.constant dense<0.000000e+00> : vector<16x32xf32>
    %341 = tpu.matmul %339, %340, %cst_108 {dimension_numbers = #tpu.dot_dimension_numbers<[1], [0], [0], [1], [0, 0, 1, 1], [], []>, precision = #tpu.contract_precision<fp32>} : vector<16x16xf32>, vector<16x32xf32>, vector<16x32xf32> -> vector<16x32xf32>
    %342 = arith.addf %326, %341 : vector<16x32xf32>
    %343 = vector.extract_strided_slice %244 {offsets = [0, 24], sizes = [16, 4], strides = [1, 1]} : vector<16x64xf32> to vector<16x4xf32>
    %344 = vector.extract_strided_slice %244 {offsets = [0, 56], sizes = [16, 4], strides = [1, 1]} : vector<16x64xf32> to vector<16x4xf32>
    %cst_109 = arith.constant dense<0.000000e+00> : vector<16x16xf32>
    %345 = tpu.matmul %343, %344, %cst_109 {dimension_numbers = #tpu.dot_dimension_numbers<[1], [1], [0], [0], [0, 0, 1, 0], [], []>, precision = #tpu.contract_precision<fp32>} : vector<16x4xf32>, vector<16x4xf32>, vector<16x16xf32> -> vector<16x16xf32>
    %346 = arith.addf %345, %2 : vector<16x16xf32>
    %cst_110 = arith.constant dense<0xFF800000> : vector<16xf32>
    %347 = vector.multi_reduction <maximumf>, %346, %cst_110 [1] : vector<16x16xf32> to vector<16xf32>
    %348 = vector.shape_cast %347 : vector<16xf32> to vector<16x1xf32>
    %349 = vector.broadcast %348 : vector<16x1xf32> to vector<16x16xf32>
    %350 = arith.subf %346, %349 : vector<16x16xf32>
    %351 = math.exp %350 : vector<16x16xf32>
    %cst_111 = arith.constant dense<0.000000e+00> : vector<16xf32>
    %352 = vector.multi_reduction <add>, %351, %cst_111 [1] : vector<16x16xf32> to vector<16xf32>
    %353 = vector.shape_cast %352 : vector<16xf32> to vector<16x1xf32>
    %354 = vector.broadcast %353 : vector<16x1xf32> to vector<16x16xf32>
    %355 = arith.divf %351, %354 : vector<16x16xf32>
    %356 = vector.extract_strided_slice %245 {offsets = [0, 192], sizes = [16, 32], strides = [1, 1]} : vector<16x256xf32> to vector<16x32xf32>
    %cst_112 = arith.constant dense<0.000000e+00> : vector<16x32xf32>
    %357 = tpu.matmul %355, %356, %cst_112 {dimension_numbers = #tpu.dot_dimension_numbers<[1], [0], [0], [1], [0, 0, 1, 1], [], []>, precision = #tpu.contract_precision<fp32>} : vector<16x16xf32>, vector<16x32xf32>, vector<16x32xf32> -> vector<16x32xf32>
    %358 = arith.addf %342, %357 : vector<16x32xf32>
    %359 = vector.extract_strided_slice %244 {offsets = [0, 28], sizes = [16, 4], strides = [1, 1]} : vector<16x64xf32> to vector<16x4xf32>
    %360 = vector.extract_strided_slice %244 {offsets = [0, 60], sizes = [16, 4], strides = [1, 1]} : vector<16x64xf32> to vector<16x4xf32>
    %cst_113 = arith.constant dense<0.000000e+00> : vector<16x16xf32>
    %361 = tpu.matmul %359, %360, %cst_113 {dimension_numbers = #tpu.dot_dimension_numbers<[1], [1], [0], [0], [0, 0, 1, 0], [], []>, precision = #tpu.contract_precision<fp32>} : vector<16x4xf32>, vector<16x4xf32>, vector<16x16xf32> -> vector<16x16xf32>
    %362 = arith.addf %361, %2 : vector<16x16xf32>
    %cst_114 = arith.constant dense<0xFF800000> : vector<16xf32>
    %363 = vector.multi_reduction <maximumf>, %362, %cst_114 [1] : vector<16x16xf32> to vector<16xf32>
    %364 = vector.shape_cast %363 : vector<16xf32> to vector<16x1xf32>
    %365 = vector.broadcast %364 : vector<16x1xf32> to vector<16x16xf32>
    %366 = arith.subf %362, %365 : vector<16x16xf32>
    %367 = math.exp %366 : vector<16x16xf32>
    %cst_115 = arith.constant dense<0.000000e+00> : vector<16xf32>
    %368 = vector.multi_reduction <add>, %367, %cst_115 [1] : vector<16x16xf32> to vector<16xf32>
    %369 = vector.shape_cast %368 : vector<16xf32> to vector<16x1xf32>
    %370 = vector.broadcast %369 : vector<16x1xf32> to vector<16x16xf32>
    %371 = arith.divf %367, %370 : vector<16x16xf32>
    %372 = vector.extract_strided_slice %245 {offsets = [0, 224], sizes = [16, 32], strides = [1, 1]} : vector<16x256xf32> to vector<16x32xf32>
    %cst_116 = arith.constant dense<0.000000e+00> : vector<16x32xf32>
    %373 = tpu.matmul %371, %372, %cst_116 {dimension_numbers = #tpu.dot_dimension_numbers<[1], [0], [0], [1], [0, 0, 1, 1], [], []>, precision = #tpu.contract_precision<fp32>} : vector<16x16xf32>, vector<16x32xf32>, vector<16x32xf32> -> vector<16x32xf32>
    %374 = arith.addf %358, %373 : vector<16x32xf32>
    %375 = arith.addf %207, %374 : vector<16x32xf32>
    %376 = vector.broadcast %212 : vector<1x32xf32> to vector<16x32xf32>
    %377 = arith.addf %375, %376 : vector<16x32xf32>
    %cst_117 = arith.constant dense<0.000000e+00> : vector<16xf32>
    %378 = vector.multi_reduction <add>, %377, %cst_117 [1] : vector<16x32xf32> to vector<16xf32>
    %379 = vector.shape_cast %378 : vector<16xf32> to vector<16x1xf32>
    %cst_118 = arith.constant 3.200000e+01 : f32
    %380 = vector.broadcast %cst_118 : f32 to vector<16x1xf32>
    %381 = arith.divf %379, %380 : vector<16x1xf32>
    %382 = vector.broadcast %381 : vector<16x1xf32> to vector<16x32xf32>
    %383 = arith.subf %377, %382 : vector<16x32xf32>
    %384 = arith.mulf %383, %383 : vector<16x32xf32>
    %cst_119 = arith.constant dense<0.000000e+00> : vector<16xf32>
    %385 = vector.multi_reduction <add>, %384, %cst_119 [1] : vector<16x32xf32> to vector<16xf32>
    %386 = vector.shape_cast %385 : vector<16xf32> to vector<16x1xf32>
    %cst_120 = arith.constant 3.200000e+01 : f32
    %387 = vector.broadcast %cst_120 : f32 to vector<16x1xf32>
    %388 = arith.divf %386, %387 : vector<16x1xf32>
    %389 = vector.broadcast %381 : vector<16x1xf32> to vector<16x32xf32>
    %390 = arith.subf %377, %389 : vector<16x32xf32>
    %cst_121 = arith.constant 9.99999974E-6 : f32
    %391 = vector.broadcast %cst_121 : f32 to vector<16x1xf32>
    %392 = arith.addf %388, %391 : vector<16x1xf32>
    %393 = math.rsqrt %392 : vector<16x1xf32>
    %394 = vector.broadcast %393 : vector<16x1xf32> to vector<16x32xf32>
    %395 = arith.mulf %390, %394 : vector<16x32xf32>
    %396 = vector.broadcast %210 : vector<1x32xf32> to vector<16x32xf32>
    %397 = arith.mulf %395, %396 : vector<16x32xf32>
    %398 = vector.broadcast %211 : vector<1x32xf32> to vector<16x32xf32>
    %399 = arith.addf %397, %398 : vector<16x32xf32>
    %cst_122 = arith.constant dense<0.000000e+00> : vector<16x128xf32>
    %400 = tpu.matmul %399, %218, %cst_122 {dimension_numbers = #tpu.dot_dimension_numbers<[1], [0], [0], [1], [0, 0, 1, 1], [], []>, precision = #tpu.contract_precision<fp32>} : vector<16x32xf32>, vector<32x128xf32>, vector<16x128xf32> -> vector<16x128xf32>
    %401 = vector.broadcast %215 : vector<1x128xf32> to vector<16x128xf32>
    %402 = arith.addf %400, %401 : vector<16x128xf32>
    %cst_123 = arith.constant 0.000000e+00 : f32
    %403 = vector.broadcast %cst_123 : f32 to vector<16x128xf32>
    %404 = arith.maximumf %402, %403 : vector<16x128xf32>
    %cst_124 = arith.constant dense<0.000000e+00> : vector<16x32xf32>
    %405 = tpu.matmul %404, %219, %cst_124 {dimension_numbers = #tpu.dot_dimension_numbers<[1], [1], [0], [0], [0, 0, 1, 0], [], []>, precision = #tpu.contract_precision<fp32>} : vector<16x128xf32>, vector<32x128xf32>, vector<16x32xf32> -> vector<16x32xf32>
    %406 = arith.addf %377, %405 : vector<16x32xf32>
    %407 = vector.broadcast %213 : vector<1x32xf32> to vector<16x32xf32>
    %408 = arith.addf %406, %407 : vector<16x32xf32>
    %c0_125 = arith.constant 0 : index
    %c0_126 = arith.constant 0 : index
    %409 = vector.load %arg2[%c0_125, %c0_126] : memref<16x32xf32, #tpu.memory_space<vmem>>, vector<16x32xf32>
    tpu.vector_store %arg2[%c0_125, %c0_126], %408 {strides = array<i32>} : memref<16x32xf32, #tpu.memory_space<vmem>>, vector<16x32xf32>,
    return
  }
}

</mosaic_0001>

<bundles_post_ra>
// kernel: tpu_custom_call.1
= control target key start
LH: loop header
LB: loop body
LE: loop exit
PB: predicated region body
PF: predicated region fallthrough
CT: control target
= control target key end

     0   :  { %7 = vsyncpa [#allocation3], 0  ;;  %s28561_s0 = inlined_call_operand.hbm [shape: f32[16,16], index: 0, kind: input, shape index: {}]   ;;  %s28562_s1 = inlined_call_operand.hbm [shape: f32[312,256], index: 1, kind: input, shape index: {}]   ;;  %s28563_s2 = inlined_call_operand.hbm [shape: f32[16,32], index: 2, kind: output, shape index: {}]  }
   0x1   :  { %8 = vsyncpa [#allocation6], 0 }
   0x2   :  { %9 = vsyncpa [#allocation4], 0  ;;  %s26732_s9 = smov [#allocation2]   ;;  %s26660_s13 = scalar_lea.hbm %s28561_s0, 256 }
   0x3   :  { %s15_s10 = sshll.u32 %s26732_s9, 4  ;;  %p26661_p0 = scmp.ne.s32.totalorder %s28561_s0, %s26660_s13  ;;  %s16_s10 = int_to_ptr.vmem [resolvable:$true] %s15_s10 }
   0x4   :  { %p26664_p1 = scmp.lt.u32.totalorder %s26660_s13, %s28561_s0 }
   0x6   :  { %p26666_p2 = pnand %p26664_p1, %p26661_p0 }
   0x8   :  { %26669 = shalt.err (!%p26666_p2)
}
   0x9   :  { %s26670_s18 = scalar_lea.vmem %s16_s10, 256  ;;  %p26675_p4 = scmp.lt.s32.totalorder %s16_s10, %s16_s10 }
   0xa   :  { %p26671_p3 = scmp.ne.s32.totalorder %s16_s10, %s26670_s18  ;;  %p26676_p5 = scmp.lt.s32.totalorder %s26670_s18, %s26670_s18 }
   0xc   :  { %p26677_p6 = por %p26676_p5, %p26675_p4 }
   0xe   :  { %p26678_p7 = pnand %p26677_p6, %p26671_p3 }
  0x10   :  { %26681 = shalt.err (!%p26678_p7)
}
  0x11   :  { %s26733_s19 = smov 128   ;;  %s26734_s20 = smov 8  }
  0x12   :  { %21 = dma.hbm_to_vmem [thread:$0]  %s28561_s0, 256, %s16_s10, [#allocation3], %s26733_s19, %s26733_s19, %s26734_s20  }
  0x13   :  { %s26735_s23 = smov [#allocation5]   ;;  %s26682_s27 = scalar_lea.hbm %s28562_s1, 9984 }
  0x14   :  { %s27_s24 = sshll.u32 %s26735_s23, 4  ;;  %p26683_p8 = scmp.ne.s32.totalorder %s28562_s1, %s26682_s27  ;;  %s28_s24 = int_to_ptr.vmem [resolvable:$true] %s27_s24 }
  0x15   :  { %p26686_p9 = scmp.lt.u32.totalorder %s26682_s27, %s28562_s1 }
  0x17   :  { %p26688_p10 = pnand %p26686_p9, %p26683_p8 }
  0x19   :  { %26691 = shalt.err (!%p26688_p10)
}
  0x1a   :  { %s26692_s4 = scalar_lea.vmem %s28_s24, 9984  ;;  %p26697_p12 = scmp.lt.s32.totalorder %s28_s24, %s28_s24 }
  0x1b   :  { %p26693_p11 = scmp.ne.s32.totalorder %s28_s24, %s26692_s4  ;;  %p26698_p13 = scmp.lt.s32.totalorder %s26692_s4, %s26692_s4 }
  0x1d   :  { %p26699_p0 = por %p26698_p13, %p26697_p12 }
  0x1f   :  { %p26700_p1 = pnand %p26699_p0, %p26693_p11 }
  0x21   :  { %26703 = shalt.err (!%p26700_p1)
}
  0x22   :  { %s26736_s0 = smov 256   ;;  %s26737_s5 = smov 16  }
  0x23   :  { %33 = dma.hbm_to_vmem [thread:$0]  %s28562_s1, 9984, %s28_s24, [#allocation6], %s26736_s0, %s26736_s0, %s26737_s5  }
  0x24   :  { %26726 = dma.done.wait [#allocation3], 256  }
  0x25   :  { %26727 = vsyncadd [#allocation3], 4294967040 }
  0x26   :  { %26728 = dma.done.wait [#allocation6], 9984  }
  0x27   :  { %26729 = vsyncadd [#allocation6], 4294957312  ;;  %vm47_vm0 = vcmask 130048   ;;  %v40_v0 = vld [vmem:[#allocation5] sm:$0xff]  ;;  %v41_v1 = vld [vmem:[#allocation5 + $0x10] sm:$0xff]  ;;  %vm584_vm1 = vcmask 261120  }
  0x28   :  { %v45_v2 = vld [vmem:[#allocation2] sm:$0xff]  ;;  %v55_v3 = vand.u32 4294901760, %v40_v0  ;;  %v58_v4 = vand.u32 4294901760, %v41_v1  ;;  %v46_v6 = vld [vmem:[#allocation2 + $0x8] sm:$0xff]  ;;  %v42_v30 = vld [vmem:[#allocation5 + $0x40] ss:$0 sm:$0xff] }
  0x29   :  { %v49_v5 = vsel %vm47_vm0, %v45_v2, 0  ;;  %v52_v8 = vsel %vm47_vm0, %v46_v6, 0  ;;  %v569_v47 = vld [vmem:[#allocation5 + $0xf8] sm:$0xff]  ;;  %v571_v48 = vld [vmem:[#allocation5 + $0x108] sm:$0xff]  ;;  %v568_v51 = vld [vmem:[#allocation5 + $0xf0] sm:$0xff]  ;;  %vm1748_vm2 = vcmask 31744  }
  0x2a   :  { %v121_v7 = vand.u32 4294901760, %v49_v5  ;;  %v24809_v9 = vpack.c.bf16 %v58_v4, %v55_v3  ;;  %v131_v10 = vand.u32 4294901760, %v52_v8  ;;  %v143_v11 = vsub.f32 %v40_v0, %v55_v3  ;;  %v570_v52 = vld [vmem:[#allocation5 + $0x100] sm:$0xff]  ;;  %v564_v55 = vld [vmem:[#allocation5 + $0x70] sm:$0xff]  ;;  %v573_v57 = vld [vmem:[#allocation5 + $0x118] sm:$0xff]  ;;  %s26739_s1 = smov 92  }
  0x2b   :  { %v150_v12 = vsub.f32 %v41_v1, %v58_v4  ;;  %v1150_v49 = vand.u32 4294901760, %v569_v47  ;;  %v1154_v50 = vand.u32 4294901760, %v571_v48  ;;  %v1152_v53 = vand.u32 4294901760, %v568_v51  ;;  %v565_v56 = vld [vmem:[#allocation5 + $0x80] sm:$0xff]  ;;  %v575_v62 = vld [vmem:[#allocation5 + $0x128] sm:$0xff]  ;;  %v572_v63 = vld [vmem:[#allocation5 + $0x110] sm:$0xff] }
  0x2c   :  { %v122_v13 = vsub.f32 %v49_v5, %v121_v7  ;;  %24810 = vmatprep.subr.bf16.mxu0 %v24809_v9  ;;  %v132_v14 = vsub.f32 %v52_v8, %v131_v10  ;;  %v144_v15 = vand.u32 4294901760, %v143_v11  ;;  %v1156_v54 = vand.u32 4294901760, %v570_v52  ;;  %v574_v0 = vld [vmem:[#allocation5 + $0x120] sm:$0xff]  ;;  %v566_v6 = vld [vmem:[#allocation5 + $0x90] sm:$0xff]  ;;  %s26740_s8 = smov 124   ;;  %s26741_s9 = smov 96  }
  0x2d   :  { %v151_v16 = vand.u32 4294901760, %v150_v12  ;;  %24812 = vmatpush3.bf16.msra.mxu0 %v24809_v9  ;;  %v24817_v28 = vpack.c.bf16 %v150_v12, %v143_v11  ;;  %v26821_v58 = vpack.c.bf16 %v1154_v50, %v1150_v49  ;;  %v26823_v59 = vsub.f32 %v569_v47, %v1150_v49  ;;  %s26742_s10 = smov 88   ;;  %s26743_s11 = smov 120  }
  0x2e   :  { %v123_v17 = vand.u32 4294901760, %v122_v13  ;;  %v133_v18 = vand.u32 4294901760, %v132_v14  ;;  %v145_v19 = vsub.f32 %v143_v11, %v144_v15  ;;  %v26825_v60 = vsub.f32 %v571_v48, %v1154_v50  ;;  %s26744_s12 = smov 84   ;;  %s26745_s13 = smov 116  }
  0x2f   :  { %v152_v20 = vsub.f32 %v150_v12, %v151_v16  ;;  %v24825_v29 = vpack.c.bf16 %v151_v16, %v144_v15  ;;  %v623_v61 = vand.u32 4294901760, %v564_v55  ;;  %v26738_v1 = vmov 0.0   ;;  %s26746_s14 = smov 64   ;;  %s26747_s15 = smov 32  }
  0x30   :  { %v124_v21 = vsub.f32 %v122_v13, %v123_v17  ;;  %v134_v22 = vsub.f32 %v132_v14, %v133_v18  ;;  %v146_v23 = vand.u32 4294901760, %v145_v19  ;;  %v26828_v2 = vpack.c.bf16 %v1156_v54, %v1152_v53  ;;  %s26748_s16 = smov 80   ;;  %s26749_s17 = smov 112  }
  0x31   :  { %v153_v24 = vand.u32 4294901760, %v152_v20  ;;  %v26830_v3 = vsub.f32 %v568_v51, %v1152_v53  ;;  %v26832_v4 = vsub.f32 %v570_v52, %v1156_v54  ;;  %v626_v5 = vand.u32 4294901760, %v565_v56  ;;  %s26750_s18 = smov 76   ;;  %s26751_s21 = smov 108  }
  0x32   :  { %v125_v25 = vand.u32 4294901760, %v124_v21  ;;  %v135_v26 = vand.u32 4294901760, %v134_v22  ;;  %v1158_v8 = vand.u32 4294901760, %v573_v57  ;;  %v1164_v11 = vand.u32 4294901760, %v574_v0  ;;  %s26752_s22 = smov 72   ;;  %s26753_s23 = smov 104  }
  0x33   :  { %v24813_v27 = vpack.c.bf16 %v153_v24, %v146_v23  ;;  %v26836_v12 = vpack.c.bf16 %v626_v5, %v623_v61  ;;  %v1247_v15 = vand.u32 4294901760, %v26823_v59  ;;  %v1259_v24 = vand.u32 4294901760, %v26825_v60  ;;  %s26754_s24 = smov 68   ;;  %s26755_s25 = smov 100  }
  0x34   :  { %23031 = vmatprep.mubr.f32.mxu0 %v125_v25  ;;  %v26850_v21 = vsub.f32 %v574_v0, %v1164_v11  ;;  %v1253_v25 = vand.u32 4294901760, %v26830_v3  ;;  %s26756_s26 = smov [#allocation7]  }
  0x35   :  { %23032 = vmatmul.mubr.f32.vlgmr.msra.gmra.mrb[0].mxu0 %v135_v26  ;;  %24814 = vmatprep.subr.bf16.mxu0 %v24813_v27  ;;  %v1248_v23 = vsub.f32 %v26823_v59, %v1247_v15  ;;  %v1265_v26 = vand.u32 4294901760, %v26832_v4  ;;  %s22006_s27 = sshll.u32 %s26756_s26, 4  ;;  %s22007_s27 = int_to_ptr.vmem [resolvable:$true] %s22006_s27 }
  0x36   :  { %24816 = vmatpush3.bf16.msra.mxu0 %v24813_v27  ;;  %23038 = vmatprep.mubr.f32.mxu0 %v121_v7  ;;  %v713_v27 = vsub.f32 %v564_v55, %v623_v61  ;;  %v1289_v55 = vand.u32 4294901760, %v26850_v21  ;;  %s26704_s28 = scalar_lea.vmem %s22007_s27, 256  ;;  %p26709_p3 = scmp.lt.s32.totalorder %s22007_s27, %s22007_s27 }
  0x37   :  { %24818 = vmatprep.subr.bf16.mxu0 %v24817_v28  ;;  %24834 = vmatprep.subr.bf16.mxu1 %v26836_v12  ;;  %p26705_p2 = scmp.ne.s32.totalorder %s22007_s27, %s26704_s28  ;;  %p26710_p4 = scmp.lt.s32.totalorder %s26704_s28, %s26704_s28 }
  0x38   :  { %24836 = vmatpush3.bf16.msra.mxu1 %v26836_v12 }
  0x39   :  { %p26711_p5 = por %p26710_p4, %p26709_p3 }
  0x3b   :  { %p26712_p6 = pnand %p26711_p5, %p26705_p2 }
  0x3d   :  { %23039 = vmatmul.mubr.f32.vlgmr.msra.gmra.mrb[0].mxu0 %v131_v10 }
  0x3e   :  { %24820 = vmatpush3.bf16.msra.mxu0 %v24817_v28  ;;  %23045 = vmatprep.mubr.f32.mxu0 %v122_v13  ;;  %v629_v13 = vand.u32 4294901760, %v566_v6  ;;  %v1249_v28 = vand.u32 4294901760, %v1248_v23  ;;  %v24897_v23 = vpack.c.bf16 %v26825_v60, %v26823_v59 }
  0x3f   :  { %24822 = vmatprep.subr.bf16.mxu0 %v24809_v9 }
  0x40   :  { %v727_v61 = vsub.f32 %v566_v6, %v629_v13 }
  0x45   :  { %23046 = vmatmul.mubr.f32.vlgmr.msra.gmra.mrb[0].mxu0 %v132_v14 }
  0x46   :  { %24824 = vmatpush3.bf16.msra.mxu0 %v24809_v9  ;;  %23052 = vmatprep.mubr.f32.mxu0 %v123_v17  ;;  %v26841_v17 = vsub.f32 %v573_v57, %v1158_v8 }
  0x47   :  { %24826 = vmatprep.subr.bf16.mxu0 %v24825_v29 }
  0x4d   :  { %23053 = vmatmul.mubr.f32.vlgmr.msra.gmra.mrb[0].mxu0 %v133_v18 }
  0x4e   :  { %24828 = vmatpush3.bf16.msra.mxu0 %v24825_v29  ;;  %23059 = vmatprep.mubr.f32.mxu0 %v121_v7  ;;  %v720_v29 = vsub.f32 %v565_v56, %v626_v5 }
  0x4f   :  { %24830 = vmatprep.subr.bf16.mxu0 %v24809_v9 }
  0x55   :  { %23060 = vmatmul.mubr.f32.vlgmr.msra.gmra.mrb[0].mxu0 %v131_v10 }
  0x56   :  { %24832 = vmatpush3.bf16.msra.mxu0 %v24809_v9  ;;  %23066 = vmatprep.mubr.f32.mxu0 %v121_v7  ;;  %v567_v7 = vld [vmem:[#allocation5 + $0xa0] sm:$0xff]  ;;  %v1162_v9 = vand.u32 4294901760, %v575_v62 }
  0x57   :  { %24882 = vmatprep.subr.bf16.mxu0 %v26821_v58  ;;  %v632_v14 = vand.u32 4294901760, %v567_v7 }
  0x58   :  { %v26839_v16 = vpack.c.bf16 %v1162_v9, %v1158_v8  ;;  %v26843_v18 = vsub.f32 %v575_v62, %v1162_v9  ;;  %v728_v8 = vand.u32 4294901760, %v727_v61 }
  0x59   :  { %v26852_v22 = vpack.c.bf16 %v632_v14, %v629_v13  ;;  %v734_v0 = vsub.f32 %v567_v7, %v632_v14 }
  0x5a   :  { %v24901_v7 = vpack.c.bf16 %v26843_v18, %v26841_v17 }
  0x5b   :  { %24838 = vmatprep.subr.bf16.mxu1 %v26852_v22 }
  0x5c   :  { %24840 = vmatpush3.bf16.msra.mxu1 %v26852_v22 }
  0x5d   :  { %23067 = vmatmul.mubr.f32.vlgmr.msra.gmra.mrb[0].mxu0 %v131_v10  ;;  %v1160_v10 = vand.u32 4294901760, %v572_v63 }
  0x5e   :  { %1222 = vmatprep.mubr.f32.mxu0 %v26738_v1  ;;  %24884 = vmatpush1.bf16.msra.mxu0 %v26828_v2 }
  0x5f   :  { %v26845_v19 = vpack.c.bf16 %v1164_v11, %v1160_v10  ;;  %v26848_v20 = vsub.f32 %v572_v63, %v1160_v10  ;;  %24886 = vmatprep.subr.bf16.mxu0 %v26839_v16  ;;  %v1290_v63 = vsub.f32 %v26850_v21, %v1289_v55  ;;  %v735_v10 = vand.u32 4294901760, %v734_v0 }
  0x60   :  { %v729_v11 = vsub.f32 %v727_v61, %v728_v8 }
  0x61   :  { %v1291_v9 = vand.u32 4294901760, %v1290_v63 }
  0x62   :  { %24888 = vmatpush1.bf16.msra.mxu0 %v26845_v19  ;;  %v730_v6 = vand.u32 4294901760, %v729_v11 }
 0x130   :  { %v23068_v31 = vpop.f32.mrb[0].mxu0 }
 0x131   :  { %v546_v32 = vpop.f32.mrb[1].mxu0  ;;  %v26803_v34 = vadd.f32 %v23068_v31, %v42_v30  ;;  %v1283_v31 = vand.u32 4294901760, %v26843_v18 }
 0x132   :  { %v26801_v33 = vadd.f32 %v546_v32, %v42_v30  ;;  %v1271_v30 = vand.u32 4294901760, %v26841_v17  ;;  %v1260_v32 = vsub.f32 %v26825_v60, %v1259_v24  ;;  %v26890_v60 = vpack.c.bf16 %v1259_v24, %v1247_v15  ;;  %v556_v15 = vld [vmem:[#allocation5 + $0x20] ss:$0 sm:$0xff] }
 0x133   :  { %v588_v36 = vsel %vm584_vm1, %v26803_v34, 0.0 }
 0x134   :  { %v585_v35 = vsel %vm584_vm1, %v26801_v33, 0.0 }
 0x135   :  { %586 = vadd.xlane.f32.xlu0 %v585_v35  ;;  %v1254_v35 = vsub.f32 %v26830_v3, %v1253_v25 }
 0x139   :  { %589 = vadd.xlane.f32.xlu0 %v588_v36  ;;  %v1266_v36 = vsub.f32 %v26832_v4, %v1265_v26 }
 0x1c2   :  { %v587_v37 = vpop.xlane.xlu0 %586 }
 0x1c3   :  { %v592_v38 = vmul.f32 0.03125, %v587_v37  ;;  %v714_v37 = vand.u32 4294901760, %v713_v27 }
 0x1c5   :  { %v26810_v39 = vsub.f32 %v26801_v33, %v592_v38  ;;  %v721_v38 = vand.u32 4294901760, %v720_v29  ;;  %v715_v47 = vsub.f32 %v713_v27, %v714_v37 }
 0x1c6   :  { %v590_v40 = vpop.xlane.xlu0 %589 }
 0x1c7   :  { %v593_v41 = vmul.f32 0.03125, %v590_v40  ;;  %v596_v42 = vmul.f32 %v26810_v39, %v26810_v39  ;;  %v1272_v40 = vsub.f32 %v26841_v17, %v1271_v30  ;;  %v722_v48 = vsub.f32 %v720_v29, %v721_v38 }
 0x1c8   :  { %v716_v54 = vand.u32 4294901760, %v715_v47 }
 0x1c9   :  { %v26815_v43 = vsub.f32 %v26803_v34, %v593_v41  ;;  %v598_v44 = vsel %vm584_vm1, %v596_v42, 0.0  ;;  %v1284_v41 = vsub.f32 %v26843_v18, %v1283_v31  ;;  %v1277_v42 = vand.u32 4294901760, %v26848_v20 }
 0x1ca   :  { %599 = vadd.xlane.f32.xlu1 %v598_v44  ;;  %v1261_v44 = vand.u32 4294901760, %v1260_v32  ;;  %v1273_v49 = vand.u32 4294901760, %v1272_v40  ;;  %v723_v56 = vand.u32 4294901760, %v722_v48  ;;  %v736_v32 = vsub.f32 %v734_v0, %v735_v10 }
 0x1cb   :  { %v597_v45 = vmul.f32 %v26815_v43, %v26815_v43  ;;  %v1285_v50 = vand.u32 4294901760, %v1284_v41  ;;  %v1278_v51 = vsub.f32 %v26848_v20, %v1277_v42  ;;  %v24903_v40 = vpack.c.bf16 %v26850_v21, %v26848_v20 }
 0x1cc   :  { %v24889_v52 = vpack.c.bf16 %v1261_v44, %v1249_v28  ;;  %v24841_v5 = vpack.c.bf16 %v723_v56, %v716_v54  ;;  %v737_v13 = vand.u32 4294901760, %v736_v32  ;;  %v26886_v41 = vpack.c.bf16 %v734_v0, %v727_v61 }
 0x1cd   :  { %v601_v46 = vsel %vm584_vm1, %v597_v45, 0.0  ;;  %v1255_v45 = vand.u32 4294901760, %v1254_v35  ;;  %v24893_v57 = vpack.c.bf16 %v1285_v50, %v1273_v49  ;;  %v1279_v62 = vand.u32 4294901760, %v1278_v51 }
 0x1ce   :  { %602 = vadd.xlane.f32.xlu1 %v601_v46  ;;  %v1267_v46 = vand.u32 4294901760, %v1266_v36  ;;  %24890 = vmatprep.subr.bf16.mxu0 %v24889_v52  ;;  %v24899_v35 = vpack.c.bf16 %v26832_v4, %v26830_v3  ;;  %v24849_v36 = vpack.c.bf16 %v720_v29, %v713_v27  ;;  %v24845_v14 = vpack.c.bf16 %v737_v13, %v730_v6 }
 0x1cf   :  { %24842 = vmatprep.subr.bf16.mxu1 %v24841_v5  ;;  %v24895_v28 = vpack.c.bf16 %v1291_v9, %v1279_v62  ;;  %v26892_v44 = vpack.c.bf16 %v1265_v26, %v1253_v25  ;;  %v26896_v3 = vpack.c.bf16 %v1283_v31, %v1271_v30  ;;  %v26898_v4 = vpack.c.bf16 %v1289_v55, %v1277_v42  ;;  %v557_v25 = vld [vmem:[#allocation5 + $0x21] ss:$0 sm:$0xff] }
 0x1d0   :  { %v26874_v53 = vpack.c.bf16 %v1267_v46, %v1255_v45  ;;  %v26894_v45 = vpack.c.bf16 %v721_v38, %v714_v37  ;;  %v26900_v27 = vpack.c.bf16 %v735_v10, %v728_v8 }
 0x257   :  { %v600_v17 = vpop.xlane.xlu1 %599 }
 0x258   :  { %v604_v18 = vmul.f32 0.03125, %v600_v17 }
 0x25a   :  { %v606_v29 = vadd.f32 1e-05, %v604_v18 }
 0x25b   :  { %v603_v20 = vpop.xlane.xlu1 %602 }
 0x25c   :  { %26510 = vrsqrt.f32 %v606_v29  ;;  %v605_v21 = vmul.f32 0.03125, %v603_v20 }
 0x25e   :  { %v607_v46 = vadd.f32 1e-05, %v605_v21 }
 0x260   :  { %26512 = vrsqrt.f32 %v607_v46 }
 0x266   :  { %v26511_v59 = vpop.eup %26510 }
 0x267   :  { %v610_v24 = vmul.f32 %v26511_v59, %v26810_v39 }
 0x269   :  { %v612_v26 = vmul.f32 %v610_v24, %v556_v15 }
 0x26a   :  { %v26513_v30 = vpop.eup %26512 }
 0x26b   :  { %v611_v31 = vmul.f32 %v26513_v30, %v26815_v43  ;;  %v614_v37 = vadd.f32 %v612_v26, %v557_v25 }
 0x26d   :  { %v613_v38 = vmul.f32 %v611_v31, %v556_v15  ;;  %v617_v42 = vsel %vm584_vm1, %v614_v37, 0 }
 0x26e   :  { %v26905_v47 = vand.u32 4294901760, %v617_v42 }
 0x26f   :  { %v615_v48 = vadd.f32 %v613_v38, %v557_v25 }
 0x270   :  { %v692_v49 = vsub.f32 %v617_v42, %v26905_v47 }
 0x271   :  { %v620_v50 = vsel %vm584_vm1, %v615_v48, 0 }
 0x272   :  { %v693_v51 = vand.u32 4294901760, %v692_v49  ;;  %v26909_v52 = vand.u32 4294901760, %v620_v50 }
 0x274   :  { %v694_v39 = vsub.f32 %v692_v49, %v693_v51  ;;  %v702_v54 = vsub.f32 %v620_v50, %v26909_v52 }
 0x276   :  { %v695_v55 = vand.u32 4294901760, %v694_v39  ;;  %v703_v56 = vand.u32 4294901760, %v702_v54 }
 0x278   :  { %23077 = vmatprep.mubr.f32.mxu1 %v695_v55  ;;  %1228 = vmatmul.mubr.f32.vlgmr.msra.gmra.mrb[2].mxu0 %v695_v55  ;;  %v704_v43 = vsub.f32 %v702_v54, %v703_v56 }
 0x279   :  { %24892 = vmatpush1.bf16.msra.mxu0 %v26874_v53  ;;  %1233 = vmatprep.mubr.f32.mxu0 %v26738_v1 }
 0x27a   :  { %v705_v61 = vand.u32 4294901760, %v704_v43  ;;  %24894 = vmatprep.subr.bf16.mxu0 %v24893_v57 }
 0x27c   :  { %23078 = vmatmul.mubr.f32.vlgmr.msra.gmra.mrb[0].mxu1 %v705_v61  ;;  %1239 = vmatmul.mubr.f32.gmra.mrb[4].mxu0 %v705_v61 }
 0x27d   :  { %24844 = vmatpush3.bf16.msra.mxu1 %v24841_v5  ;;  %23088 = vmatprep.mubr.f32.mxu1 %v26905_v47 }
 0x27e   :  { %24896 = vmatpush1.bf16.msra.mxu0 %v24895_v28  ;;  %1349 = vmatprep.mubr.f32.mxu0 %v26738_v1 }
 0x27f   :  { %24846 = vmatprep.subr.bf16.mxu1 %v24845_v14  ;;  %24898 = vmatprep.subr.bf16.mxu0 %v24897_v23 }
 0x281   :  { %1351 = vmatmul.mubr.f32.vlgmr.msra.gmra.mrb[2].mxu0 %v26905_v47  ;;  %24848 = vmatpush3.bf16.msra.mxu1 %v24845_v14 }
 0x282   :  { %24900 = vmatpush1.bf16.msra.mxu0 %v24899_v35  ;;  %1356 = vmatprep.mubr.f32.mxu0 %v26738_v1 }
 0x283   :  { %24850 = vmatprep.subr.bf16.mxu1 %v24849_v36  ;;  %24902 = vmatprep.subr.bf16.mxu0 %v24901_v7 }
 0x284   :  { %23089 = vmatmul.mubr.f32.vlgmr.msra.gmra.mrb[0].mxu1 %v26909_v52 }
 0x285   :  { %1358 = vmatmul.mubr.f32.gmra.mrb[4].mxu0 %v26909_v52  ;;  %24852 = vmatpush3.bf16.msra.mxu1 %v24849_v36 }
 0x286   :  { %23099 = vmatprep.mubr.f32.mxu1 %v692_v49  ;;  %24904 = vmatpush1.bf16.msra.mxu0 %v24903_v40 }
 0x287   :  { %1444 = vmatprep.mubr.f32.mxu0 %v26738_v1  ;;  %24854 = vmatprep.subr.bf16.mxu1 %v26886_v41 }
 0x288   :  { %24906 = vmatprep.subr.bf16.mxu0 %v26821_v58 }
 0x289   :  { %1447 = vmatmul.mubr.f32.vlgmr.msra.gmra.mrb[2].mxu0 %v692_v49  ;;  %24856 = vmatpush3.bf16.msra.mxu1 %v26886_v41 }
 0x28a   :  { %24908 = vmatpush1.bf16.msra.mxu0 %v26828_v2  ;;  %1452 = vmatprep.mubr.f32.mxu0 %v26738_v1 }
 0x28b   :  { %24858 = vmatprep.subr.bf16.mxu1 %v26836_v12  ;;  %24910 = vmatprep.subr.bf16.mxu0 %v26839_v16 }
 0x28c   :  { %23100 = vmatmul.mubr.f32.vlgmr.msra.gmra.mrb[0].mxu1 %v702_v54 }
 0x28d   :  { %1455 = vmatmul.mubr.f32.gmra.mrb[4].mxu0 %v702_v54  ;;  %24860 = vmatpush3.bf16.msra.mxu1 %v26836_v12 }
 0x28e   :  { %23110 = vmatprep.mubr.f32.mxu1 %v693_v51  ;;  %24912 = vmatpush1.bf16.msra.mxu0 %v26845_v19 }
 0x28f   :  { %1533 = vmatprep.mubr.f32.mxu0 %v26738_v1  ;;  %24862 = vmatprep.subr.bf16.mxu1 %v26852_v22 }
 0x290   :  { %24914 = vmatprep.subr.bf16.mxu0 %v26890_v60 }
 0x291   :  { %1537 = vmatmul.mubr.f32.vlgmr.msra.gmra.mrb[2].mxu0 %v693_v51  ;;  %24864 = vmatpush3.bf16.msra.mxu1 %v26852_v22 }
 0x292   :  { %24916 = vmatpush1.bf16.msra.mxu0 %v26892_v44  ;;  %1542 = vmatprep.mubr.f32.mxu0 %v26738_v1 }
 0x293   :  { %24866 = vmatprep.subr.bf16.mxu1 %v26894_v45  ;;  %24918 = vmatprep.subr.bf16.mxu0 %v26896_v3 }
 0x294   :  { %23111 = vmatmul.mubr.f32.vlgmr.msra.gmra.mrb[0].mxu1 %v703_v56 }
 0x295   :  { %1546 = vmatmul.mubr.f32.gmra.mrb[4].mxu0 %v703_v56  ;;  %24868 = vmatpush3.bf16.msra.mxu1 %v26894_v45 }
 0x296   :  { %23121 = vmatprep.mubr.f32.mxu1 %v26905_v47  ;;  %24920 = vmatpush1.bf16.msra.mxu0 %v26898_v4 }
 0x297   :  { %1640 = vmatprep.mubr.f32.mxu0 %v26738_v1  ;;  %24870 = vmatprep.subr.bf16.mxu1 %v26900_v27 }
 0x298   :  { %24922 = vmatprep.subr.bf16.mxu0 %v26821_v58 }
 0x299   :  { %1642 = vmatmul.mubr.f32.vlgmr.msra.gmra.mrb[2].mxu0 %v26905_v47  ;;  %24872 = vmatpush3.bf16.msra.mxu1 %v26900_v27 }
 0x29a   :  { %24924 = vmatpush1.bf16.msra.mxu0 %v26828_v2  ;;  %1647 = vmatprep.mubr.f32.mxu0 %v26738_v1 }
 0x29b   :  { %24874 = vmatprep.subr.bf16.mxu1 %v26836_v12  ;;  %24926 = vmatprep.subr.bf16.mxu0 %v26839_v16  ;;  %v562_v16 = vld [vmem:[#allocation5 + $0x26] ss:$0 sm:$0xff] }
 0x29c   :  { %23122 = vmatmul.mubr.f32.vlgmr.msra.gmra.mrb[0].mxu1 %v26909_v52 }
 0x29d   :  { %1649 = vmatmul.mubr.f32.gmra.mrb[4].mxu0 %v26909_v52  ;;  %24876 = vmatpush3.bf16.msra.mxu1 %v26836_v12 }
 0x29e   :  { %23132 = vmatprep.mubr.f32.mxu1 %v26905_v47  ;;  %24928 = vmatpush1.bf16.msra.mxu0 %v26845_v19 }
 0x29f   :  { %1727 = vmatprep.mubr.f32.mxu0 %v26738_v1  ;;  %24878 = vmatprep.subr.bf16.mxu1 %v26852_v22 }
 0x2a1   :  { %1729 = vmatmul.mubr.f32.vlgmr.msra.gmra.mrb[2].mxu0 %v26905_v47  ;;  %24880 = vmatpush3.bf16.msra.mxu1 %v26852_v22 }
 0x2a2   :  { %1734 = vmatprep.mubr.f32.mxu0 %v26738_v1 }
 0x2a4   :  { %23133 = vmatmul.mubr.f32.vlgmr.msra.gmra.mrb[0].mxu1 %v26909_v52 }
 0x2a5   :  { %1736 = vmatmul.mubr.f32.gmra.mrb[4].mxu0 %v26909_v52 }
 0x374   :  { %v26962_v58 = vpop.f32.mrb[2].mxu0 }
 0x375   :  { %v3344_v2 = vand.u32 4294901760, %v26962_v58  ;;  %v26965_v12 = vpop.f32.mrb[3].mxu0 }
 0x376   :  { %v6504_v19 = vand.u32 4294901760, %v26965_v12 }
 0x377   :  { %v3432_v53 = vsub.f32 %v26962_v58, %v3344_v2  ;;  %v23134_v57 = vpop.f32.mrb[0].mxu1 }
 0x378   :  { %v6592_v22 = vsub.f32 %v26965_v12, %v6504_v19  ;;  %v26970_v62 = vadd.f32 %v23134_v57, %v562_v16  ;;  %v26972_v63 = vpop.f32.mrb[4].mxu0  ;;  %v1140_v0 = vpop.f32.mrb[1].mxu1 }
 0x379   :  { %v3347_v5 = vand.u32 4294901760, %v26972_v63  ;;  %v26975_v8 = vadd.f32 %v1140_v0, %v562_v16  ;;  %v26977_v9 = vpop.f32.mrb[5].mxu0  ;;  %v3433_v10 = vand.u32 4294901760, %v3432_v53 }
 0x37a   :  { %v6507_v11 = vand.u32 4294901760, %v26977_v9  ;;  %2287 = vrot.lane.b32.xlu1 %v26970_v62, %s26739_s1  ;;  %v6593_v23 = vand.u32 4294901760, %v6592_v22 }
 0x37b   :  { %v26982_v28 = vpack.c.bf16 %v3347_v5, %v3344_v2  ;;  %v3439_v32 = vsub.f32 %v26972_v63, %v3347_v5  ;;  %2285 = vrot.lane.b32.xlu0 %v26975_v8, %s26739_s1  ;;  %v1749_v35 = vsel %vm1748_vm2, %v26975_v8, 0  ;;  %v3434_v7 = vsub.f32 %v3432_v53, %v3433_v10 }
 0x37c   :  { %v26989_v6 = vpack.c.bf16 %v6507_v11, %v6504_v19  ;;  %v6599_v13 = vsub.f32 %v26977_v9, %v6507_v11  ;;  %v26992_v36 = vand.u32 4294901760, %v1749_v35  ;;  %v6594_v60 = vsub.f32 %v6592_v22, %v6593_v23 }
 0x37d   :  { %v3440_v14 = vand.u32 4294901760, %v3439_v32  ;;  %v26994_v40 = vpack.c.bf16 %v3439_v32, %v3432_v53  ;;  %v3435_v29 = vand.u32 4294901760, %v3434_v7  ;;  %v27021_v7 = vld [vmem:[#allocation5 + $0x60] sm:$0xff] }
 0x37e   :  { %2281 = vrot.lane.b32.xlu1 %v26975_v8, %s26740_s8  ;;  %v26999_v41 = vsub.f32 %v1749_v35, %v26992_v36  ;;  %v6600_v44 = vand.u32 4294901760, %v6599_v13  ;;  %v27001_v45 = vpack.c.bf16 %v6599_v13, %v6592_v22  ;;  %v6595_v46 = vand.u32 4294901760, %v6594_v60 }
 0x37f   :  { %v3441_v3 = vsub.f32 %v3439_v32, %v3440_v14  ;;  %v27003_v4 = vpack.c.bf16 %v3440_v14, %v3433_v10  ;;  %v27023_v14 = vld [vmem:[#allocation5 + $0x50] sm:$0xff] }
 0x380   :  { %v1826_v27 = vand.u32 4294901760, %v26999_v41  ;;  %v6601_v17 = vsub.f32 %v6599_v13, %v6600_v44  ;;  %v27006_v18 = vpack.c.bf16 %v6600_v44, %v6593_v23 }
 0x381   :  { %v3442_v20 = vand.u32 4294901760, %v3441_v3 }
 0x382   :  { %2283 = vrot.lane.b32.xlu1 %v26970_v62, %s26740_s8  ;;  %v1827_v21 = vsub.f32 %v26999_v41, %v1826_v27  ;;  %v6602_v59 = vand.u32 4294901760, %v6601_v17 }
 0x383   :  { %v27013_v15 = vpack.c.bf16 %v3442_v20, %v3435_v29 }
 0x384   :  { %v1828_v24 = vand.u32 4294901760, %v1827_v21  ;;  %v27015_v25 = vpack.c.bf16 %v6602_v59, %v6595_v46  ;;  %v1751_v21 = vsel %vm1748_vm2, %v26970_v62, 0 }
 0x386   :  { %23139 = vmatprep.mubr.f32.mxu1 %v1828_v24 }
 0x3ec   :  { %v2288_v26 = vpop.permute.xlu1 %2287 }
 0x3ed   :  { %v2295_v30 = vsel %vm1748_vm2, %v2288_v26, 0  ;;  %v2286_v31 = vpop.permute.xlu0 %2285  ;;  %v27039_v26 = vand.u32 4294901760, %v1751_v21 }
 0x3ee   :  { %v2301_v37 = vand.u32 4294901760, %v2295_v30  ;;  %v2293_v38 = vsel %vm1748_vm2, %v2286_v31, 0 }
 0x3ef   :  { %v2298_v42 = vand.u32 4294901760, %v2293_v38 }
 0x3f0   :  { %v2393_v47 = vsub.f32 %v2295_v30, %v2301_v37  ;;  %v2282_v48 = vpop.permute.xlu1 %2281 }
 0x3f1   :  { %v24953_v49 = vpack.c.bf16 %v2301_v37, %v2298_v42  ;;  %v2386_v50 = vsub.f32 %v2293_v38, %v2298_v42  ;;  %v2289_v51 = vsel %vm1748_vm2, %v2282_v48, 0  ;;  %v1835_v48 = vsub.f32 %v1751_v21, %v27039_v26 }
 0x3f2   :  { %v2394_v52 = vand.u32 4294901760, %v2393_v47  ;;  %v2364_v39 = vand.u32 4294901760, %v2289_v51 }
 0x3f3   :  { %v2387_v54 = vand.u32 4294901760, %v2386_v50  ;;  %24954 = vmatprep.subr.bf16.mxu0 %v24953_v49  ;;  %v24961_v35 = vpack.c.bf16 %v2393_v47, %v2386_v50 }
 0x3f4   :  { %v2365_v55 = vsub.f32 %v2289_v51, %v2364_v39  ;;  %v2284_v56 = vpop.permute.xlu1 %2283  ;;  %24956 = vmatpush3.bf16.xpose.msra.mxu0 %v24953_v49  ;;  %v2395_v43 = vsub.f32 %v2393_v47, %v2394_v52 }
 0x3f5   :  { %v2291_v61 = vsel %vm1748_vm2, %v2284_v56, 0  ;;  %v2388_v2 = vsub.f32 %v2386_v50, %v2387_v54  ;;  %v24969_v13 = vpack.c.bf16 %v2394_v52, %v2387_v54 }
 0x3f6   :  { %v2374_v16 = vand.u32 4294901760, %v2291_v61  ;;  %v2396_v19 = vand.u32 4294901760, %v2395_v43  ;;  %v2366_v53 = vand.u32 4294901760, %v2365_v55 }
 0x3f7   :  { %v2389_v57 = vand.u32 4294901760, %v2388_v2 }
 0x3f8   :  { %v2375_v22 = vsub.f32 %v2291_v61, %v2374_v16  ;;  %v2367_v0 = vsub.f32 %v2365_v55, %v2366_v53  ;;  %v1836_v61 = vand.u32 4294901760, %v1835_v48 }
 0x3f9   :  { %v24957_v5 = vpack.c.bf16 %v2396_v19, %v2389_v57 }
 0x3fa   :  { %v2376_v10 = vand.u32 4294901760, %v2375_v22  ;;  %v2368_v11 = vand.u32 4294901760, %v2367_v0 }
 0x3fb   :  { %24958 = vmatprep.subr.bf16.mxu0 %v24957_v5 }
 0x3fc   :  { %v2377_v23 = vsub.f32 %v2375_v22, %v2376_v10  ;;  %23181 = vmatprep.mubr.f32.mxu0 %v2368_v11 }
 0x3fe   :  { %v2378_v32 = vand.u32 4294901760, %v2377_v23 }
 0x400   :  { %23182 = vmatmul.mubr.f32.vlgmr.msra.gmra.mrb[6].mxu0 %v2378_v32 }
 0x401   :  { %24960 = vmatpush3.bf16.xpose.msra.mxu0 %v24957_v5  ;;  %23188 = vmatprep.mubr.f32.mxu0 %v2364_v39 }
 0x402   :  { %24962 = vmatprep.subr.bf16.mxu0 %v24961_v35 }
 0x408   :  { %23189 = vmatmul.mubr.f32.vlgmr.msra.gmra.mrb[6].mxu0 %v2374_v16 }
 0x409   :  { %24964 = vmatpush3.bf16.xpose.msra.mxu0 %v24961_v35  ;;  %23195 = vmatprep.mubr.f32.mxu0 %v2365_v55 }
 0x40a   :  { %24966 = vmatprep.subr.bf16.mxu0 %v24953_v49 }
 0x410   :  { %23196 = vmatmul.mubr.f32.vlgmr.msra.gmra.mrb[6].mxu0 %v2375_v22 }
 0x411   :  { %24968 = vmatpush3.bf16.xpose.msra.mxu0 %v24953_v49  ;;  %23202 = vmatprep.mubr.f32.mxu0 %v2366_v53 }
 0x412   :  { %24970 = vmatprep.subr.bf16.mxu0 %v24969_v13 }
 0x418   :  { %23203 = vmatmul.mubr.f32.vlgmr.msra.gmra.mrb[6].mxu0 %v2376_v10  ;;  %v1837_v10 = vsub.f32 %v1835_v48, %v1836_v61 }
 0x419   :  { %24972 = vmatpush3.bf16.xpose.msra.mxu0 %v24969_v13  ;;  %23209 = vmatprep.mubr.f32.mxu0 %v2364_v39 }
 0x41a   :  { %24974 = vmatprep.subr.bf16.mxu0 %v24953_v49 }
 0x420   :  { %23210 = vmatmul.mubr.f32.vlgmr.msra.gmra.mrb[6].mxu0 %v2374_v16 }
 0x421   :  { %24976 = vmatpush3.bf16.xpose.msra.mxu0 %v24953_v49  ;;  %23216 = vmatprep.mubr.f32.mxu0 %v2364_v39 }
 0x428   :  { %23217 = vmatmul.mubr.f32.vlgmr.msra.gmra.mrb[6].mxu0 %v2374_v16 }
 0x4fb   :  { %v23218_v60 = vpop.f32.mrb[6].mxu0 }
 0x4fc   :  { %v25991_v44 = vadd.f32 %v23218_v60, %v27021_v7  ;;  %v2789_v3 = vpop.f32.mrb[7].mxu0 }
 0x4fd   :  { %v25992_v17 = vadd.f32 %v2789_v3, %v27023_v14 }
 0x4fe   :  { %v2802_v29 = vsel %vm47_vm0, %v25991_v44, -inf }
 0x4ff   :  { %2803 = vmax.xlane.f32.xlu1 %v2802_v29  ;;  %v2799_v20 = vsel %vm47_vm0, %v25992_v17, -inf  ;;  %v1838_v29 = vand.u32 4294901760, %v1837_v10 }
 0x500   :  { %2800 = vmax.xlane.f32.xlu0 %v2799_v20 }
 0x510   :  { %1746 = vrot.lane.b32.xlu1 %v26970_v62, %s26741_s9 }
 0x514   :  { %2825 = vrot.lane.b32.xlu1 %v26972_v63, %s26741_s9 }
 0x516   :  { %1744 = vrot.lane.b32.xlu0 %v26975_v8, %s26741_s9 }
 0x51a   :  { %2823 = vrot.lane.b32.xlu0 %v26962_v58, %s26741_s9 }
 0x58c   :  { %v2804_v46 = vpop.xlane.xlu1 %2803 }
 0x58d   :  { %v2806_v59 = vsub.f32 %v25991_v44, %v2804_v46  ;;  %v2801_v24 = vpop.xlane.xlu0 %2800 }
 0x58e   :  { %v2805_v30 = vsub.f32 %v25992_v17, %v2801_v24 }
 0x58f   :  { %v2809_v31 = vmul.f32 1.442695, %v2806_v59 }
 0x590   :  { %v2807_v37 = vmul.f32 1.442695, %v2805_v30  ;;  %v1747_v38 = vpop.permute.xlu1 %1746 }
 0x591   :  { %26514 = vpow2.f32 %v2809_v31  ;;  %v1755_v42 = vsel %vm1748_vm2, %v1747_v38, 0  ;;  %v1745_v47 = vpop.permute.xlu0 %1744 }
 0x592   :  { %26516 = vpow2.f32 %v2807_v37  ;;  %v1761_v49 = vand.u32 4294901760, %v1755_v42  ;;  %v1753_v50 = vsel %vm1748_vm2, %v1745_v47, 0 }
 0x593   :  { %v1758_v51 = vand.u32 4294901760, %v1753_v50 }
 0x594   :  { %v1853_v52 = vsub.f32 %v1755_v42, %v1761_v49  ;;  %v2826_v39 = vpop.permute.xlu1 %2825 }
 0x595   :  { %v27044_v54 = vpack.c.bf16 %v1761_v49, %v1758_v51  ;;  %v1846_v55 = vsub.f32 %v1753_v50, %v1758_v51  ;;  %v2839_v56 = vand.u32 4294901760, %v2826_v39  ;;  %v2824_v43 = vpop.permute.xlu0 %2823 }
 0x596   :  { %v1854_v2 = vand.u32 4294901760, %v1853_v52  ;;  %v2836_v16 = vand.u32 4294901760, %v2824_v43 }
 0x597   :  { %v1847_v19 = vand.u32 4294901760, %v1846_v55  ;;  %v27046_v53 = vsub.f32 %v2826_v39, %v2839_v56  ;;  %24930 = vmatprep.subr.bf16.mxu1 %v27044_v54  ;;  %v24937_v21 = vpack.c.bf16 %v1853_v52, %v1846_v55 }
 0x598   :  { %v27049_v57 = vpack.c.bf16 %v2839_v56, %v2836_v16  ;;  %v2924_v22 = vsub.f32 %v2824_v43, %v2836_v16  ;;  %24932 = vmatpush3.bf16.xpose.msra.mxu1 %v27044_v54  ;;  %v1855_v0 = vsub.f32 %v1853_v52, %v1854_v2 }
 0x599   :  { %v2932_v5 = vand.u32 4294901760, %v27046_v53  ;;  %v1848_v11 = vsub.f32 %v1846_v55, %v1847_v19  ;;  %v24945_v46 = vpack.c.bf16 %v1854_v2, %v1847_v19 }
 0x59a   :  { %v2925_v23 = vand.u32 4294901760, %v2924_v22  ;;  %24978 = vmatprep.subr.bf16.mxu0 %v27049_v57  ;;  %v1856_v32 = vand.u32 4294901760, %v1855_v0  ;;  %v24985_v31 = vpack.c.bf16 %v27046_v53, %v2924_v22 }
 0x59b   :  { %v27054_v35 = vpop.eup %26514  ;;  %24980 = vmatpush3.bf16.msra.mxu0 %v27049_v57  ;;  %v1849_v13 = vand.u32 4294901760, %v1848_v11  ;;  %v2933_v24 = vsub.f32 %v27046_v53, %v2932_v5 }
 0x59c   :  { %v27057_v60 = vpop.eup %26516  ;;  %v2814_v44 = vsel %vm47_vm0, %v27054_v35, 0.0  ;;  %v27061_v3 = vpack.c.bf16 %v2932_v5, %v2925_v23  ;;  %v2926_v59 = vsub.f32 %v2924_v22, %v2925_v23 }
 0x59d   :  { %2815 = vadd.xlane.f32.xlu1 %v2814_v44  ;;  %v2811_v17 = vsel %vm47_vm0, %v27057_v60, 0.0  ;;  %v24933_v20 = vpack.c.bf16 %v1856_v32, %v1849_v13 }
 0x59e   :  { %2812 = vadd.xlane.f32.xlu0 %v2811_v17 }
 0x59f   :  { %23140 = vmatmul.mubr.f32.vlgmr.msra.gmra.mrb[2].mxu1 %v1838_v29  ;;  %24934 = vmatprep.subr.bf16.mxu1 %v24933_v20 }
 0x5a0   :  { %24936 = vmatpush3.bf16.xpose.msra.mxu1 %v24933_v20  ;;  %23146 = vmatprep.mubr.f32.mxu1 %v26992_v36 }
 0x5a1   :  { %24938 = vmatprep.subr.bf16.mxu1 %v24937_v21 }
 0x5a7   :  { %23147 = vmatmul.mubr.f32.vlgmr.msra.gmra.mrb[2].mxu1 %v27039_v26 }
 0x5a8   :  { %24940 = vmatpush3.bf16.xpose.msra.mxu1 %v24937_v21  ;;  %23153 = vmatprep.mubr.f32.mxu1 %v26999_v41  ;;  %v2927_v41 = vand.u32 4294901760, %v2926_v59 }
 0x5a9   :  { %24942 = vmatprep.subr.bf16.mxu1 %v27044_v54 }
 0x5ae   :  { %3851 = vrot.lane.b32.xlu1 %v26970_v62, %s26742_s10 }
 0x5af   :  { %23154 = vmatmul.mubr.f32.vlgmr.msra.gmra.mrb[2].mxu1 %v1835_v48 }
 0x5b0   :  { %24944 = vmatpush3.bf16.xpose.msra.mxu1 %v27044_v54  ;;  %23160 = vmatprep.mubr.f32.mxu1 %v1826_v27  ;;  %v2934_v27 = vand.u32 4294901760, %v2933_v24 }
 0x5b1   :  { %24946 = vmatprep.subr.bf16.mxu1 %v24945_v46 }
 0x5b2   :  { %3847 = vrot.lane.b32.xlu1 %v26970_v62, %s26743_s11  ;;  %v24981_v30 = vpack.c.bf16 %v2934_v27, %v2927_v41 }
 0x5b4   :  { %3849 = vrot.lane.b32.xlu0 %v26975_v8, %s26742_s10 }
 0x5b6   :  { %4907 = vrot.lane.b32.xlu1 %v26970_v62, %s26744_s12 }
 0x5b7   :  { %23161 = vmatmul.mubr.f32.vlgmr.msra.gmra.mrb[2].mxu1 %v1836_v61 }
 0x5b8   :  { %3845 = vrot.lane.b32.xlu0 %v26975_v8, %s26743_s11  ;;  %24948 = vmatpush3.bf16.xpose.msra.mxu1 %v24945_v46 }
 0x5b9   :  { %23167 = vmatprep.mubr.f32.mxu1 %v26992_v36  ;;  %24950 = vmatprep.subr.bf16.mxu1 %v27044_v54 }
 0x5ba   :  { %4903 = vrot.lane.b32.xlu1 %v26970_v62, %s26745_s13 }
 0x5bc   :  { %4905 = vrot.lane.b32.xlu0 %v26975_v8, %s26744_s12 }
 0x5bf   :  { %23168 = vmatmul.mubr.f32.vlgmr.msra.gmra.mrb[2].mxu1 %v27039_v26 }
 0x5c0   :  { %4901 = vrot.lane.b32.xlu0 %v26975_v8, %s26745_s13  ;;  %24952 = vmatpush3.bf16.xpose.msra.mxu1 %v27044_v54 }
 0x5c1   :  { %23174 = vmatprep.mubr.f32.mxu1 %v26992_v36  ;;  %24982 = vmatprep.subr.bf16.mxu1 %v24981_v30 }
 0x5c7   :  { %23175 = vmatmul.mubr.f32.vlgmr.msra.gmra.mrb[2].mxu1 %v27039_v26 }
 0x5c8   :  { %24984 = vmatpush3.bf16.msra.mxu1 %v24981_v30 }
 0x5c9   :  { %24986 = vmatprep.subr.bf16.mxu1 %v24985_v31 }
 0x62a   :  { %v2816_v37 = vpop.xlane.xlu1 %2815 }
 0x62b   :  { %26518 = vrcp.f32 %v2816_v37  ;;  %v2813_v38 = vpop.xlane.xlu0 %2812 }
 0x62c   :  { %26520 = vrcp.f32 %v2813_v38 }
 0x62e   :  { %v3852_v42 = vpop.permute.xlu1 %3851 }
 0x62f   :  { %v3859_v47 = vsel %vm1748_vm2, %v3852_v42, 0  ;;  %v3850_v48 = vpop.permute.xlu0 %3849 }
 0x630   :  { %v3865_v49 = vand.u32 4294901760, %v3859_v47  ;;  %v3857_v50 = vsel %vm1748_vm2, %v3850_v48, 0 }
 0x631   :  { %v3862_v51 = vand.u32 4294901760, %v3857_v50 }
 0x632   :  { %v3848_v54 = vpop.permute.xlu1 %3847  ;;  %v27102_v56 = vsub.f32 %v3859_v47, %v3865_v49 }
 0x633   :  { %v27098_v36 = vpack.c.bf16 %v3865_v49, %v3862_v51  ;;  %v3846_v52 = vpop.permute.xlu0 %3845  ;;  %v27104_v43 = vsub.f32 %v3857_v50, %v3862_v51  ;;  %v3855_v19 = vsel %vm1748_vm2, %v3848_v54, 0 }
 0x634   :  { %v3853_v26 = vsel %vm1748_vm2, %v3846_v52, 0  ;;  %v3958_v5 = vand.u32 4294901760, %v27102_v56  ;;  %v27118_v32 = vand.u32 4294901760, %v3855_v19 }
 0x635   :  { %v26519_v39 = vpop.eup %26518  ;;  %25026 = vmatprep.subr.bf16.mxu0 %v27098_v36  ;;  %v27106_v61 = vand.u32 4294901760, %v3853_v26  ;;  %v3951_v10 = vand.u32 4294901760, %v27104_v43  ;;  %v25033_v49 = vpack.c.bf16 %v27102_v56, %v27104_v43 }
 0x636   :  { %v26521_v55 = vpop.eup %26520  ;;  %v2820_v2 = vmul.f32 %v26519_v39, %v27054_v35  ;;  %v3959_v20 = vsub.f32 %v27102_v56, %v3958_v5  ;;  %v3939_v21 = vsub.f32 %v3855_v19, %v27118_v32  ;;  %v4908_v50 = vpop.permute.xlu1 %4907 }
 0x637   :  { %v2818_v16 = vmul.f32 %v26521_v55, %v27057_v60  ;;  %v27116_v11 = vsub.f32 %v3853_v26, %v27106_v61  ;;  %v3952_v29 = vsub.f32 %v27104_v43, %v3951_v10  ;;  %v4915_v51 = vsel %vm1748_vm2, %v4908_v50, 0 }
 0x638   :  { %v2833_v53 = vsel %vm47_vm0, %v2820_v2, 0  ;;  %v3960_v30 = vand.u32 4294901760, %v3959_v20  ;;  %v4921_v39 = vand.u32 4294901760, %v4915_v51 }
 0x639   :  { %v2830_v22 = vsel %vm47_vm0, %v2818_v16, 0  ;;  %v2912_v0 = vand.u32 4294901760, %v2833_v53  ;;  %v3930_v17 = vand.u32 4294901760, %v27116_v11  ;;  %v3953_v27 = vand.u32 4294901760, %v3952_v29 }
 0x63a   :  { %v2902_v23 = vand.u32 4294901760, %v2830_v22  ;;  %v5013_v16 = vsub.f32 %v4915_v51, %v4921_v39 }
 0x63b   :  { %v2913_v35 = vsub.f32 %v2833_v53, %v2912_v0  ;;  %v3931_v41 = vsub.f32 %v27116_v11, %v3930_v17  ;;  %v25029_v42 = vpack.c.bf16 %v3960_v30, %v3953_v27  ;;  %v4904_v53 = vpop.permute.xlu1 %4903 }
 0x63c   :  { %23230 = vmatprep.mubr.f32.mxu1 %v2902_v23  ;;  %v2903_v13 = vsub.f32 %v2830_v22, %v2902_v23  ;;  %v4911_v56 = vsel %vm1748_vm2, %v4904_v53, 0  ;;  %v5014_v22 = vand.u32 4294901760, %v5013_v16 }
 0x63d   :  { %23231 = vmatmul.mubr.f32.vlgmr.msra.gmra.mrb[4].mxu1 %v2912_v0  ;;  %v2914_v60 = vand.u32 4294901760, %v2913_v35  ;;  %v3932_v38 = vand.u32 4294901760, %v3931_v41 }
 0x63e   :  { %24988 = vmatpush3.bf16.msra.mxu1 %v24985_v31  ;;  %23237 = vmatprep.mubr.f32.mxu1 %v2903_v13  ;;  %v2904_v44 = vand.u32 4294901760, %v2903_v13  ;;  %v3940_v31 = vand.u32 4294901760, %v3939_v21 }
 0x63f   :  { %24990 = vmatprep.subr.bf16.mxu1 %v27049_v57  ;;  %v2915_v46 = vsub.f32 %v2913_v35, %v2914_v60 }
 0x640   :  { %v2905_v59 = vsub.f32 %v2903_v13, %v2904_v44  ;;  %v3941_v47 = vsub.f32 %v3939_v21, %v3940_v31 }
 0x641   :  { %v2916_v37 = vand.u32 4294901760, %v2915_v46 }
 0x642   :  { %v2906_v24 = vand.u32 4294901760, %v2905_v59  ;;  %v3942_v48 = vand.u32 4294901760, %v3941_v47 }
 0x644   :  { %23223 = vmatprep.mubr.f32.mxu0 %v2906_v24 }
 0x645   :  { %23224 = vmatmul.mubr.f32.vlgmr.msra.gmra.mrb[8].mxu0 %v2916_v37  ;;  %23238 = vmatmul.mubr.f32.vlgmr.msra.gmra.mrb[4].mxu1 %v2913_v35  ;;  %v5015_v35 = vsub.f32 %v5013_v16, %v5014_v22 }
 0x646   :  { %24992 = vmatpush3.bf16.msra.mxu1 %v27049_v57  ;;  %25028 = vmatpush3.bf16.xpose.msra.mxu0 %v27098_v36 }
 0x647   :  { %23244 = vmatprep.mubr.f32.mxu1 %v2904_v44  ;;  %24994 = vmatprep.subr.bf16.mxu1 %v27061_v3 }
 0x648   :  { %23307 = vmatprep.mubr.f32.mxu0 %v3932_v38  ;;  %25030 = vmatprep.subr.bf16.mxu0 %v25029_v42 }
 0x64d   :  { %23308 = vmatmul.mubr.f32.vlgmr.msra.gmra.mrb[10].mxu0 %v3942_v48  ;;  %23245 = vmatmul.mubr.f32.vlgmr.msra.gmra.mrb[4].mxu1 %v2914_v60 }
 0x64e   :  { %24996 = vmatpush3.bf16.msra.mxu1 %v27061_v3  ;;  %25032 = vmatpush3.bf16.xpose.msra.mxu0 %v25029_v42  ;;  %v4906_v3 = vpop.permute.xlu0 %4905 }
 0x64f   :  { %23314 = vmatprep.mubr.f32.mxu0 %v27106_v61  ;;  %23251 = vmatprep.mubr.f32.mxu1 %v2902_v23  ;;  %v4913_v52 = vsel %vm1748_vm2, %v4906_v3, 0 }
 0x650   :  { %24998 = vmatprep.subr.bf16.mxu1 %v27049_v57  ;;  %25034 = vmatprep.subr.bf16.mxu0 %v25033_v49  ;;  %v4918_v54 = vand.u32 4294901760, %v4913_v52 }
 0x652   :  { %v4902_v26 = vpop.permute.xlu0 %4901  ;;  %v5006_v19 = vsub.f32 %v4913_v52, %v4918_v54 }
 0x653   :  { %v4909_v55 = vsel %vm1748_vm2, %v4902_v26, 0 }
 0x654   :  { %v4984_v2 = vand.u32 4294901760, %v4909_v55  ;;  %v25081_v24 = vpack.c.bf16 %v5013_v16, %v5006_v19 }
 0x655   :  { %23315 = vmatmul.mubr.f32.vlgmr.msra.gmra.mrb[10].mxu0 %v27118_v32  ;;  %23252 = vmatmul.mubr.f32.vlgmr.msra.gmra.mrb[4].mxu1 %v2912_v0 }
 0x656   :  { %25000 = vmatpush3.bf16.msra.mxu1 %v27049_v57  ;;  %25036 = vmatpush3.bf16.xpose.msra.mxu0 %v25033_v49  ;;  %v25041_v57 = vpack.c.bf16 %v3958_v5, %v3951_v10  ;;  %v4985_v43 = vsub.f32 %v4909_v55, %v4984_v2  ;;  %v4994_v5 = vand.u32 4294901760, %v4911_v56 }
 0x657   :  { %23321 = vmatprep.mubr.f32.mxu0 %v27116_v11  ;;  %23258 = vmatprep.mubr.f32.mxu1 %v2902_v23  ;;  %v25073_v11 = vpack.c.bf16 %v4921_v39, %v4918_v54 }
 0x658   :  { %25002 = vmatprep.subr.bf16.mxu1 %v26982_v28  ;;  %25038 = vmatprep.subr.bf16.mxu0 %v27098_v36  ;;  %v4986_v10 = vand.u32 4294901760, %v4985_v43  ;;  %v4995_v13 = vsub.f32 %v4911_v56, %v4994_v5 }
 0x65a   :  { %v4987_v60 = vsub.f32 %v4985_v43, %v4986_v10  ;;  %v4996_v29 = vand.u32 4294901760, %v4995_v13 }
 0x65c   :  { %v4988_v20 = vand.u32 4294901760, %v4987_v60  ;;  %v4997_v46 = vsub.f32 %v4995_v13, %v4996_v29 }
 0x65d   :  { %23322 = vmatmul.mubr.f32.vlgmr.msra.gmra.mrb[10].mxu0 %v3939_v21  ;;  %23259 = vmatmul.mubr.f32.vlgmr.msra.gmra.mrb[4].mxu1 %v2912_v0  ;;  %v5007_v0 = vand.u32 4294901760, %v5006_v19 }
 0x65e   :  { %25004 = vmatpush3.bf16.msra.mxu1 %v26982_v28  ;;  %25040 = vmatpush3.bf16.xpose.msra.mxu0 %v27098_v36  ;;  %v4998_v59 = vand.u32 4294901760, %v4997_v46 }
 0x65f   :  { %23328 = vmatprep.mubr.f32.mxu0 %v3930_v17  ;;  %25006 = vmatprep.subr.bf16.mxu1 %v27013_v15  ;;  %v5008_v23 = vsub.f32 %v5006_v19, %v5007_v0  ;;  %v5016_v17 = vand.u32 4294901760, %v5015_v35 }
 0x660   :  { %25042 = vmatprep.subr.bf16.mxu0 %v25041_v57 }
 0x661   :  { %v5009_v44 = vand.u32 4294901760, %v5008_v23 }
 0x663   :  { %v25077_v21 = vpack.c.bf16 %v5016_v17, %v5009_v44 }
 0x665   :  { %23329 = vmatmul.mubr.f32.vlgmr.msra.gmra.mrb[10].mxu0 %v3940_v31 }
 0x666   :  { %25044 = vmatpush3.bf16.xpose.msra.mxu0 %v25041_v57  ;;  %23335 = vmatprep.mubr.f32.mxu0 %v27106_v61 }
 0x667   :  { %25046 = vmatprep.subr.bf16.mxu0 %v27098_v36 }
 0x66d   :  { %23336 = vmatmul.mubr.f32.vlgmr.msra.gmra.mrb[10].mxu0 %v27118_v32 }
 0x66e   :  { %25048 = vmatpush3.bf16.xpose.msra.mxu0 %v27098_v36  ;;  %23342 = vmatprep.mubr.f32.mxu0 %v27106_v61  ;;  %v25089_v36 = vpack.c.bf16 %v5014_v22, %v5007_v0 }
 0x66f   :  { %25074 = vmatprep.subr.bf16.mxu0 %v25073_v11 }
 0x675   :  { %23343 = vmatmul.mubr.f32.vlgmr.msra.gmra.mrb[10].mxu0 %v27118_v32 }
 0x676   :  { %25076 = vmatpush3.bf16.xpose.msra.mxu0 %v25073_v11  ;;  %23391 = vmatprep.mubr.f32.mxu0 %v4988_v20 }
 0x677   :  { %25078 = vmatprep.subr.bf16.mxu0 %v25077_v21 }
 0x67d   :  { %23392 = vmatmul.mubr.f32.vlgmr.msra.gmra.mrb[12].mxu0 %v4998_v59 }
 0x67e   :  { %25080 = vmatpush3.bf16.xpose.msra.mxu0 %v25077_v21  ;;  %23398 = vmatprep.mubr.f32.mxu0 %v4984_v2 }
 0x67f   :  { %25082 = vmatprep.subr.bf16.mxu0 %v25081_v24 }
 0x685   :  { %23399 = vmatmul.mubr.f32.vlgmr.msra.gmra.mrb[12].mxu0 %v4994_v5 }
 0x686   :  { %25084 = vmatpush3.bf16.xpose.msra.mxu0 %v25081_v24  ;;  %23405 = vmatprep.mubr.f32.mxu0 %v4985_v43 }
 0x687   :  { %25086 = vmatprep.subr.bf16.mxu0 %v25073_v11 }
 0x68d   :  { %23406 = vmatmul.mubr.f32.vlgmr.msra.gmra.mrb[12].mxu0 %v4995_v13 }
 0x68e   :  { %25088 = vmatpush3.bf16.xpose.msra.mxu0 %v25073_v11  ;;  %23412 = vmatprep.mubr.f32.mxu0 %v4986_v10 }
 0x68f   :  { %25090 = vmatprep.subr.bf16.mxu0 %v25089_v36 }
 0x695   :  { %23413 = vmatmul.mubr.f32.vlgmr.msra.gmra.mrb[12].mxu0 %v4996_v29 }
 0x696   :  { %25092 = vmatpush3.bf16.xpose.msra.mxu0 %v25089_v36  ;;  %23419 = vmatprep.mubr.f32.mxu0 %v4984_v2 }
 0x697   :  { %25094 = vmatprep.subr.bf16.mxu0 %v25073_v11 }
 0x69a   :  { %v23176_v61 = vpop.f32.mrb[2].mxu1 }
 0x69b   :  { %v25989_v32 = vadd.f32 %v23176_v61, %v27021_v7  ;;  %v2249_v41 = vpop.f32.mrb[3].mxu1 }
 0x69c   :  { %v25990_v27 = vadd.f32 %v2249_v41, %v27023_v14 }
 0x69d   :  { %23420 = vmatmul.mubr.f32.vlgmr.msra.gmra.mrb[12].mxu0 %v4994_v5  ;;  %v2262_v30 = vsel %vm47_vm0, %v25989_v32, -inf }
 0x69e   :  { %25096 = vmatpush3.bf16.xpose.msra.mxu0 %v25073_v11  ;;  %23426 = vmatprep.mubr.f32.mxu0 %v4984_v2  ;;  %v2259_v31 = vsel %vm47_vm0, %v25990_v27, -inf }
 0x69f   :  { %2263 = vmax.xlane.f32.xlu1 %v2262_v30  ;;  %2260 = vmax.xlane.f32.xlu0 %v2259_v31 }
 0x6a5   :  { %23427 = vmatmul.mubr.f32.vlgmr.msra.gmra.mrb[12].mxu0 %v4994_v5 }
 0x718   :  { %v27164_v37 = vpop.f32.mrb[8].mxu0 }
 0x719   :  { %v27166_v38 = vpop.f32.mrb[9].mxu0 }
 0x72c   :  { %v2264_v42 = vpop.xlane.xlu1 %2263  ;;  %v2261_v3 = vpop.xlane.xlu0 %2260 }
 0x72d   :  { %v2266_v47 = vsub.f32 %v25989_v32, %v2264_v42  ;;  %v2265_v51 = vsub.f32 %v25990_v27, %v2261_v3 }
 0x72f   :  { %v2269_v48 = vmul.f32 1.442695, %v2266_v47  ;;  %v2267_v52 = vmul.f32 1.442695, %v2265_v51 }
 0x731   :  { %26522 = vpow2.f32 %v2269_v48 }
 0x732   :  { %26524 = vpow2.f32 %v2267_v52 }
 0x73b   :  { %v26523_v49 = vpop.eup %26522 }
 0x73c   :  { %v2274_v50 = vsel %vm47_vm0, %v26523_v49, 0.0  ;;  %v26525_v16 = vpop.eup %26524 }
 0x73d   :  { %2275 = vadd.xlane.f32.xlu1 %v2274_v50  ;;  %v2271_v19 = vsel %vm47_vm0, %v26525_v16, 0.0 }
 0x748   :  { %v23344_v26 = vpop.f32.mrb[10].mxu0 }
 0x749   :  { %v4353_v57 = vpop.f32.mrb[11].mxu0  ;;  %v25995_v54 = vadd.f32 %v23344_v26, %v27021_v7 }
 0x74a   :  { %v25996_v39 = vadd.f32 %v4353_v57, %v27023_v14 }
 0x74b   :  { %v4366_v2 = vsel %vm47_vm0, %v25995_v54, -inf }
 0x74c   :  { %v4363_v55 = vsel %vm47_vm0, %v25996_v39, -inf }
 0x74d   :  { %4364 = vmax.xlane.f32.xlu0 %v4363_v55 }
 0x751   :  { %4367 = vmax.xlane.f32.xlu0 %v4366_v2 }
 0x755   :  { %2272 = vadd.xlane.f32.xlu0 %v2271_v19 }
 0x778   :  { %v23428_v53 = vpop.f32.mrb[12].mxu0 }
 0x779   :  { %v25997_v56 = vadd.f32 %v23428_v53, %v27021_v7  ;;  %v5409_v43 = vpop.f32.mrb[13].mxu0 }
 0x77a   :  { %v25998_v22 = vadd.f32 %v5409_v43, %v27023_v14 }
 0x77b   :  { %v5422_v0 = vsel %vm47_vm0, %v25997_v56, -inf }
 0x77c   :  { %5423 = vmax.xlane.f32.xlu1 %v5422_v0  ;;  %v5419_v5 = vsel %vm47_vm0, %v25998_v22, -inf }
 0x77d   :  { %5420 = vmax.xlane.f32.xlu0 %v5419_v5 }
 0x7ca   :  { %v2276_v10 = vpop.xlane.xlu1 %2275 }
 0x7cb   :  { %26526 = vrcp.f32 %v2276_v10 }
 0x7d5   :  { %v26527_v44 = vpop.eup %26526 }
 0x7d6   :  { %v2280_v29 = vmul.f32 %v26527_v44, %v26523_v49 }
 0x7d8   :  { %v3341_v14 = vsel %vm47_vm0, %v2280_v29, 0 }
 0x7d9   :  { %v3420_v46 = vand.u32 4294901760, %v3341_v14 }
 0x7da   :  { %v4365_v11 = vpop.xlane.xlu0 %4364 }
 0x7db   :  { %v4369_v23 = vsub.f32 %v25996_v39, %v4365_v11  ;;  %v3421_v32 = vsub.f32 %v3341_v14, %v3420_v46 }
 0x7dd   :  { %v4371_v35 = vmul.f32 1.442695, %v4369_v23  ;;  %v3422_v30 = vand.u32 4294901760, %v3421_v32 }
 0x7de   :  { %v4368_v13 = vpop.xlane.xlu0 %4367 }
 0x7df   :  { %26528 = vpow2.f32 %v4371_v35  ;;  %v4370_v60 = vsub.f32 %v25995_v54, %v4368_v13  ;;  %v3423_v47 = vsub.f32 %v3421_v32, %v3422_v30 }
 0x7e1   :  { %v4373_v17 = vmul.f32 1.442695, %v4370_v60  ;;  %v3424_v3 = vand.u32 4294901760, %v3423_v47 }
 0x7e2   :  { %v2273_v7 = vpop.xlane.xlu0 %2272 }
 0x7e3   :  { %26530 = vpow2.f32 %v4373_v17 }
 0x7e4   :  { %26532 = vrcp.f32 %v2273_v7 }
 0x7e9   :  { %v27179_v20 = vpop.eup %26528 }
 0x7ea   :  { %v4375_v21 = vsel %vm47_vm0, %v27179_v20, 0.0 }
 0x7eb   :  { %4376 = vadd.xlane.f32.xlu0 %v4375_v21 }
 0x7ed   :  { %v27183_v59 = vpop.eup %26530 }
 0x7ee   :  { %v26533_v24 = vpop.eup %26532  ;;  %v4378_v36 = vsel %vm47_vm0, %v27183_v59, 0.0 }
 0x7ef   :  { %4379 = vadd.xlane.f32.xlu1 %v4378_v36  ;;  %v2278_v61 = vmul.f32 %v26533_v24, %v26525_v16 }
 0x7f1   :  { %v3338_v41 = vsel %vm47_vm0, %v2278_v61, 0 }
 0x7f2   :  { %v3410_v27 = vand.u32 4294901760, %v3338_v41 }
 0x7f4   :  { %v3411_v31 = vsub.f32 %v3338_v41, %v3410_v27 }
 0x7f6   :  { %v3412_v42 = vand.u32 4294901760, %v3411_v31 }
 0x7f8   :  { %v3413_v48 = vsub.f32 %v3411_v31, %v3412_v42 }
 0x7fa   :  { %v3414_v49 = vand.u32 4294901760, %v3413_v48 }
 0x7fc   :  { %23265 = vmatprep.mubr.f32.mxu1 %v3414_v49 }
 0x7fd   :  { %23266 = vmatmul.mubr.f32.vlgmr.msra.gmra.mrb[4].mxu1 %v3424_v3 }
 0x7fe   :  { %25008 = vmatpush3.bf16.msra.mxu1 %v27013_v15  ;;  %23272 = vmatprep.mubr.f32.mxu1 %v3410_v27 }
 0x7ff   :  { %25010 = vmatprep.subr.bf16.mxu1 %v26994_v40 }
 0x800   :  { %4387 = vrot.lane.b32.xlu1 %v26972_v63, %s26746_s14 }
 0x801   :  { %4385 = vrot.lane.b32.xlu0 %v26962_v58, %s26746_s14 }
 0x805   :  { %23273 = vmatmul.mubr.f32.vlgmr.msra.gmra.mrb[4].mxu1 %v3420_v46 }
 0x806   :  { %25012 = vmatpush3.bf16.msra.mxu1 %v26994_v40  ;;  %23279 = vmatprep.mubr.f32.mxu1 %v3411_v31 }
 0x807   :  { %25014 = vmatprep.subr.bf16.mxu1 %v26982_v28 }
 0x809   :  { %v5424_v50 = vpop.xlane.xlu1 %5423 }
 0x80a   :  { %v5426_v51 = vsub.f32 %v25997_v56, %v5424_v50  ;;  %v5421_v52 = vpop.xlane.xlu0 %5420 }
 0x80b   :  { %v5425_v26 = vsub.f32 %v25998_v22, %v5421_v52 }
 0x80c   :  { %v5429_v15 = vmul.f32 1.442695, %v5426_v51 }
 0x80d   :  { %23280 = vmatmul.mubr.f32.vlgmr.msra.gmra.mrb[4].mxu1 %v3421_v32  ;;  %v5427_v57 = vmul.f32 1.442695, %v5425_v26 }
 0x80e   :  { %25016 = vmatpush3.bf16.msra.mxu1 %v26982_v28  ;;  %23286 = vmatprep.mubr.f32.mxu1 %v3412_v42  ;;  %26534 = vpow2.f32 %v5429_v15 }
 0x80f   :  { %25018 = vmatprep.subr.bf16.mxu1 %v27003_v4  ;;  %26536 = vpow2.f32 %v5427_v57 }
 0x815   :  { %23287 = vmatmul.mubr.f32.vlgmr.msra.gmra.mrb[4].mxu1 %v3422_v30 }
 0x816   :  { %25020 = vmatpush3.bf16.msra.mxu1 %v27003_v4  ;;  %23293 = vmatprep.mubr.f32.mxu1 %v3410_v27 }
 0x817   :  { %25022 = vmatprep.subr.bf16.mxu1 %v26982_v28 }
 0x818   :  { %v27200_v40 = vpop.eup %26534 }
 0x819   :  { %v5434_v39 = vsel %vm47_vm0, %v27200_v40, 0.0  ;;  %v27205_v54 = vpop.eup %26536 }
 0x81a   :  { %v5431_v55 = vsel %vm47_vm0, %v27205_v54, 0.0 }
 0x81d   :  { %23294 = vmatmul.mubr.f32.vlgmr.msra.gmra.mrb[4].mxu1 %v3420_v46 }
 0x81e   :  { %25024 = vmatpush3.bf16.msra.mxu1 %v26982_v28  ;;  %23300 = vmatprep.mubr.f32.mxu1 %v3410_v27 }
 0x820   :  { %5435 = vadd.xlane.f32.xlu0 %v5434_v39 }
 0x824   :  { %5432 = vadd.xlane.f32.xlu1 %v5431_v55 }
 0x825   :  { %23301 = vmatmul.mubr.f32.vlgmr.msra.gmra.mrb[4].mxu1 %v3420_v46 }
 0x835   :  { %5443 = vrot.lane.b32.xlu1 %v26972_v63, %s26747_s15 }
 0x836   :  { %5441 = vrot.lane.b32.xlu0 %v26962_v58, %s26747_s15 }
 0x839   :  { %5961 = vrot.lane.b32.xlu1 %v26975_v8, %s26748_s16 }
 0x83a   :  { %5957 = vrot.lane.b32.xlu0 %v26975_v8, %s26749_s17 }
 0x83d   :  { %5963 = vrot.lane.b32.xlu1 %v26970_v62, %s26748_s16 }
 0x83e   :  { %7011 = vrot.lane.b32.xlu0 %v26975_v8, %s26750_s18 }
 0x841   :  { %5959 = vrot.lane.b32.xlu1 %v26970_v62, %s26749_s17 }
 0x842   :  { %7007 = vrot.lane.b32.xlu0 %v26975_v8, %s26751_s21 }
 0x845   :  { %7013 = vrot.lane.b32.xlu1 %v26970_v62, %s26750_s18 }
 0x846   :  { %8069 = vrot.lane.b32.xlu0 %v26975_v8, %s26752_s22 }
 0x849   :  { %7009 = vrot.lane.b32.xlu1 %v26970_v62, %s26751_s21 }
 0x84a   :  { %8065 = vrot.lane.b32.xlu0 %v26975_v8, %s26753_s23 }
 0x84d   :  { %8071 = vrot.lane.b32.xlu1 %v26970_v62, %s26752_s22 }
 0x84e   :  { %9125 = vrot.lane.b32.xlu0 %v26975_v8, %s26754_s24 }
 0x851   :  { %8067 = vrot.lane.b32.xlu1 %v26970_v62, %s26753_s23 }
 0x852   :  { %9121 = vrot.lane.b32.xlu0 %v26975_v8, %s26755_s25 }
 0x855   :  { %9127 = vrot.lane.b32.xlu1 %v26970_v62, %s26754_s24 }
 0x859   :  { %9123 = vrot.lane.b32.xlu1 %v26970_v62, %s26755_s25 }
 0x878   :  { %v4377_v58 = vpop.xlane.xlu0 %4376 }
 0x879   :  { %26538 = vrcp.f32 %v4377_v58 }
 0x87c   :  { %v4380_v63 = vpop.xlane.xlu1 %4379  ;;  %v4386_v28 = vpop.permute.xlu0 %4385 }
 0x87d   :  { %26540 = vrcp.f32 %v4380_v63  ;;  %v4398_v4 = vand.u32 4294901760, %v4386_v28 }
 0x87f   :  { %v4486_v2 = vsub.f32 %v4386_v28, %v4398_v4 }
 0x880   :  { %v4388_v16 = vpop.permute.xlu1 %4387 }
 0x881   :  { %v4487_v19 = vand.u32 4294901760, %v4486_v2  ;;  %v4401_v53 = vand.u32 4294901760, %v4388_v16 }
 0x883   :  { %v26539_v56 = vpop.eup %26538  ;;  %v25049_v43 = vpack.c.bf16 %v4401_v53, %v4398_v4  ;;  %v4493_v22 = vsub.f32 %v4388_v16, %v4401_v53  ;;  %v4488_v5 = vsub.f32 %v4486_v2, %v4487_v19 }
 0x884   :  { %v4382_v8 = vmul.f32 %v26539_v56, %v27179_v20 }
 0x885   :  { %v4494_v0 = vand.u32 4294901760, %v4493_v22  ;;  %25050 = vmatprep.subr.bf16.mxu1 %v25049_v43  ;;  %v4489_v13 = vand.u32 4294901760, %v4488_v5  ;;  %v25057_v32 = vpack.c.bf16 %v4493_v22, %v4486_v2 }
 0x886   :  { %25052 = vmatpush3.bf16.msra.mxu1 %v25049_v43  ;;  %v4392_v62 = vsel %vm47_vm0, %v4382_v8, 0 }
 0x887   :  { %v26541_v10 = vpop.eup %26540  ;;  %v4495_v11 = vsub.f32 %v4493_v22, %v4494_v0  ;;  %v4464_v23 = vand.u32 4294901760, %v4392_v62 }
 0x888   :  { %v4384_v35 = vmul.f32 %v26541_v10, %v27183_v59  ;;  %v25065_v59 = vpack.c.bf16 %v4494_v0, %v4487_v19 }
 0x889   :  { %v4496_v60 = vand.u32 4294901760, %v4495_v11  ;;  %v4465_v44 = vsub.f32 %v4392_v62, %v4464_v23 }
 0x88a   :  { %v4395_v17 = vsel %vm47_vm0, %v4384_v35, 0 }
 0x88b   :  { %v25053_v7 = vpack.c.bf16 %v4496_v60, %v4489_v13  ;;  %v4466_v29 = vand.u32 4294901760, %v4465_v44  ;;  %v4474_v14 = vand.u32 4294901760, %v4395_v17 }
 0x88d   :  { %25054 = vmatprep.subr.bf16.mxu1 %v25053_v7  ;;  %v4467_v20 = vsub.f32 %v4465_v44, %v4466_v29  ;;  %v4475_v21 = vsub.f32 %v4395_v17, %v4474_v14 }
 0x88f   :  { %v4468_v46 = vand.u32 4294901760, %v4467_v20  ;;  %v4476_v24 = vand.u32 4294901760, %v4475_v21 }
 0x891   :  { %23349 = vmatprep.mubr.f32.mxu1 %v4468_v46  ;;  %v4477_v36 = vsub.f32 %v4475_v21, %v4476_v24 }
 0x893   :  { %v4478_v61 = vand.u32 4294901760, %v4477_v36 }
 0x895   :  { %23350 = vmatmul.mubr.f32.vlgmr.msra.gmra.mrb[4].mxu1 %v4478_v61 }
 0x896   :  { %25056 = vmatpush3.bf16.msra.mxu1 %v25053_v7  ;;  %23356 = vmatprep.mubr.f32.mxu1 %v4464_v23 }
 0x897   :  { %25058 = vmatprep.subr.bf16.mxu1 %v25057_v32 }
 0x89d   :  { %23357 = vmatmul.mubr.f32.vlgmr.msra.gmra.mrb[4].mxu1 %v4474_v14 }
 0x89e   :  { %25060 = vmatpush3.bf16.msra.mxu1 %v25057_v32  ;;  %23363 = vmatprep.mubr.f32.mxu1 %v4465_v44 }
 0x89f   :  { %25062 = vmatprep.subr.bf16.mxu1 %v25049_v43 }
 0x8a5   :  { %23364 = vmatmul.mubr.f32.vlgmr.msra.gmra.mrb[4].mxu1 %v4475_v21 }
 0x8a6   :  { %25064 = vmatpush3.bf16.msra.mxu1 %v25049_v43  ;;  %23370 = vmatprep.mubr.f32.mxu1 %v4466_v29 }
 0x8a7   :  { %25066 = vmatprep.subr.bf16.mxu1 %v25065_v59 }
 0x8ad   :  { %23371 = vmatmul.mubr.f32.vlgmr.msra.gmra.mrb[4].mxu1 %v4476_v24  ;;  %v5436_v41 = vpop.xlane.xlu0 %5435 }
 0x8ae   :  { %25068 = vmatpush3.bf16.msra.mxu1 %v25065_v59  ;;  %26542 = vrcp.f32 %v5436_v41  ;;  %23377 = vmatprep.mubr.f32.mxu1 %v4464_v23 }
 0x8af   :  { %25070 = vmatprep.subr.bf16.mxu1 %v25049_v43 }
 0x8b1   :  { %v5433_v27 = vpop.xlane.xlu1 %5432  ;;  %v5442_v30 = vpop.permute.xlu0 %5441 }
 0x8b2   :  { %26544 = vrcp.f32 %v5433_v27  ;;  %v5454_v31 = vand.u32 4294901760, %v5442_v30 }
 0x8b4   :  { %v27249_v42 = vsub.f32 %v5442_v30, %v5454_v31 }
 0x8b5   :  { %v5444_v47 = vpop.permute.xlu1 %5443  ;;  %23378 = vmatmul.mubr.f32.vlgmr.msra.gmra.mrb[4].mxu1 %v4474_v14  ;;  %v27251_v48 = vpop.permute.xlu0 %5957 }
 0x8b6   :  { %v5543_v49 = vand.u32 4294901760, %v27249_v42  ;;  %v5457_v3 = vand.u32 4294901760, %v5444_v47  ;;  %25072 = vmatpush3.bf16.msra.mxu1 %v25049_v43  ;;  %23384 = vmatprep.mubr.f32.mxu1 %v4464_v23 }
 0x8b8   :  { %v26543_v50 = vpop.eup %26542  ;;  %v27254_v51 = vpack.c.bf16 %v5457_v3, %v5454_v31  ;;  %v27256_v52 = vsub.f32 %v5444_v47, %v5457_v3  ;;  %v5544_v55 = vsub.f32 %v27249_v42, %v5543_v49 }
 0x8b9   :  { %v5440_v15 = vmul.f32 %v26543_v50, %v27200_v40  ;;  %v27259_v26 = vpop.permute.xlu1 %5961  ;;  %v7012_v57 = vpop.permute.xlu0 %7011 }
 0x8ba   :  { %v5550_v39 = vand.u32 4294901760, %v27256_v52  ;;  %25098 = vmatprep.subr.bf16.mxu1 %v27254_v51  ;;  %v7019_v40 = vsel %vm1748_vm2, %v7012_v57, 0  ;;  %v5545_v56 = vand.u32 4294901760, %v5544_v55  ;;  %v25105_v50 = vpack.c.bf16 %v27256_v52, %v27249_v42 }
 0x8bb   :  { %v5451_v58 = vsel %vm47_vm0, %v5440_v15, 0  ;;  %v7024_v0 = vand.u32 4294901760, %v7019_v40  ;;  %v5969_v42 = vsel %vm1748_vm2, %v27259_v26, 0 }
 0x8bc   :  { %v26545_v63 = vpop.eup %26544  ;;  %v5551_v28 = vsub.f32 %v27256_v52, %v5550_v39  ;;  %v27270_v4 = vand.u32 4294901760, %v5451_v58 }
 0x8bd   :  { %v27273_v2 = vpop.permute.xlu1 %5963  ;;  %23385 = vmatmul.mubr.f32.vlgmr.msra.gmra.mrb[4].mxu1 %v4474_v14  ;;  %v7008_v16 = vpop.permute.xlu0 %7007  ;;  %v5438_v19 = vmul.f32 %v26545_v63, %v27205_v54  ;;  %v27293_v13 = vsub.f32 %v7019_v40, %v7024_v0 }
 0x8be   :  { %25100 = vmatpush3.bf16.msra.mxu1 %v27254_v51  ;;  %v7015_v53 = vsel %vm1748_vm2, %v7008_v16, 0  ;;  %v5552_v43 = vand.u32 4294901760, %v5551_v28  ;;  %v27281_v8 = vsub.f32 %v5451_v58, %v27270_v4 }
 0x8bf   :  { %v27278_v22 = vand.u32 4294901760, %v7015_v53  ;;  %v5448_v62 = vsel %vm47_vm0, %v5438_v19, 0  ;;  %v7113_v21 = vand.u32 4294901760, %v27293_v13  ;;  %v25113_v19 = vpack.c.bf16 %v5550_v39, %v5543_v49 }
 0x8c0   :  { %v25101_v5 = vpack.c.bf16 %v5552_v43, %v5545_v56  ;;  %v27289_v54 = vand.u32 4294901760, %v5448_v62  ;;  %v5532_v35 = vand.u32 4294901760, %v27281_v8  ;;  %v5965_v56 = vsel %vm1748_vm2, %v27251_v48, 0 }
 0x8c1   :  { %v27285_v10 = vsub.f32 %v7015_v53, %v27278_v22  ;;  %v27287_v11 = vpop.permute.xlu1 %5959  ;;  %v7114_v47 = vsub.f32 %v27293_v13, %v7113_v21  ;;  %v5971_v53 = vsel %vm1748_vm2, %v27273_v2, 0  ;;  %v27343_v52 = vand.u32 4294901760, %v5965_v56  ;;  %v8070_v39 = vpop.permute.xlu0 %8069 }
 0x8c2   :  { %25102 = vmatprep.subr.bf16.mxu1 %v25101_v5  ;;  %v5521_v60 = vsub.f32 %v5448_v62, %v27289_v54  ;;  %v5533_v20 = vsub.f32 %v27281_v8, %v5532_v35  ;;  %v5977_v49 = vand.u32 4294901760, %v5971_v53  ;;  %v5974_v43 = vand.u32 4294901760, %v5969_v42 }
 0x8c3   :  { %v7092_v23 = vand.u32 4294901760, %v27285_v10  ;;  %v7115_v55 = vand.u32 4294901760, %v7114_v47  ;;  %v27351_v48 = vsub.f32 %v5965_v56, %v27343_v52 }
 0x8c4   :  { %v5522_v29 = vand.u32 4294901760, %v5521_v60  ;;  %v5534_v31 = vand.u32 4294901760, %v5533_v20  ;;  %v27347_v2 = vsub.f32 %v5971_v53, %v5977_v49 }
 0x8c5   :  { %v7014_v44 = vpop.permute.xlu1 %7013  ;;  %v7093_v17 = vsub.f32 %v27285_v10, %v7092_v23  ;;  %v8066_v62 = vpop.permute.xlu0 %8065 }
 0x8c6   :  { %v7021_v7 = vsel %vm1748_vm2, %v7014_v44, 0  ;;  %v5523_v24 = vsub.f32 %v5521_v60, %v5522_v29  ;;  %v8077_v44 = vsel %vm1748_vm2, %v8070_v39, 0 }
 0x8c7   :  { %v7027_v14 = vand.u32 4294901760, %v7021_v7  ;;  %v7094_v46 = vand.u32 4294901760, %v7093_v17 }
 0x8c8   :  { %v5524_v41 = vand.u32 4294901760, %v5523_v24 }
 0x8c9   :  { %v27304_v36 = vpack.c.bf16 %v7027_v14, %v7024_v0  ;;  %v7119_v61 = vsub.f32 %v7021_v7, %v7027_v14  ;;  %v7010_v32 = vpop.permute.xlu1 %7009  ;;  %23559 = vmatprep.mubr.f32.mxu0 %v7094_v46 }
 0x8ca   :  { %v7017_v59 = vsel %vm1748_vm2, %v7010_v32, 0  ;;  %23433 = vmatprep.mubr.f32.mxu1 %v5524_v41 }
 0x8cb   :  { %v7120_v27 = vand.u32 4294901760, %v7119_v61  ;;  %v27307_v30 = vand.u32 4294901760, %v7017_v59  ;;  %25170 = vmatprep.subr.bf16.mxu0 %v27304_v36  ;;  %23434 = vmatmul.mubr.f32.vlgmr.msra.gmra.mrb[4].mxu1 %v5534_v31  ;;  %v25177_v16 = vpack.c.bf16 %v7119_v61, %v27293_v13  ;;  %v6042_v13 = vand.u32 4294901760, %v27351_v48 }
 0x8cc   :  { %25172 = vmatpush3.bf16.xpose.msra.mxu0 %v27304_v36  ;;  %25104 = vmatpush3.bf16.msra.mxu1 %v25101_v5  ;;  %v27357_v5 = vsub.f32 %v5969_v42, %v5974_v43 }
 0x8cd   :  { %v27315_v3 = vsub.f32 %v7017_v59, %v27307_v30  ;;  %v7121_v15 = vsub.f32 %v7119_v61, %v7120_v27  ;;  %23440 = vmatprep.mubr.f32.mxu1 %v27289_v54  ;;  %25106 = vmatprep.subr.bf16.mxu1 %v25105_v50  ;;  %v8072_v0 = vpop.permute.xlu1 %8071  ;;  %v25185_v26 = vpack.c.bf16 %v7120_v27, %v7113_v21 }
 0x8ce   :  { %v6063_v17 = vand.u32 4294901760, %v27357_v5  ;;  %v6043_v21 = vsub.f32 %v27351_v48, %v6042_v13 }
 0x8cf   :  { %v7102_v57 = vand.u32 4294901760, %v27315_v3  ;;  %v7122_v58 = vand.u32 4294901760, %v7121_v15 }
 0x8d0   :  { %v6064_v24 = vsub.f32 %v27357_v5, %v6063_v17  ;;  %v6044_v47 = vand.u32 4294901760, %v6043_v21 }
 0x8d1   :  { %v7103_v63 = vsub.f32 %v27315_v3, %v7102_v57  ;;  %v25173_v28 = vpack.c.bf16 %v7122_v58, %v7115_v55 }
 0x8d3   :  { %v7104_v40 = vand.u32 4294901760, %v7103_v63  ;;  %25174 = vmatprep.subr.bf16.mxu0 %v25173_v28  ;;  %23441 = vmatmul.mubr.f32.vlgmr.msra.gmra.mrb[4].mxu1 %v27270_v4 }
 0x8d4   :  { %25108 = vmatpush3.bf16.msra.mxu1 %v25105_v50  ;;  %23447 = vmatprep.mubr.f32.mxu1 %v5521_v60  ;;  %v6070_v60 = vand.u32 4294901760, %v27347_v2 }
 0x8d5   :  { %23560 = vmatmul.mubr.f32.vlgmr.msra.gmra.mrb[14].mxu0 %v7104_v40  ;;  %25110 = vmatprep.subr.bf16.mxu1 %v27254_v51 }
 0x8d6   :  { %25176 = vmatpush3.bf16.xpose.msra.mxu0 %v25173_v28  ;;  %23566 = vmatprep.mubr.f32.mxu0 %v27278_v22  ;;  %v6071_v14 = vsub.f32 %v27347_v2, %v6070_v60 }
 0x8d7   :  { %25178 = vmatprep.subr.bf16.mxu0 %v25177_v16 }
 0x8d8   :  { %v6072_v32 = vand.u32 4294901760, %v6071_v14 }
 0x8db   :  { %23448 = vmatmul.mubr.f32.vlgmr.msra.gmra.mrb[4].mxu1 %v27281_v8  ;;  %v5967_v8 = vsel %vm1748_vm2, %v27287_v11, 0  ;;  %v8082_v11 = vand.u32 4294901760, %v8077_v44 }
 0x8dc   :  { %25112 = vmatpush3.bf16.msra.mxu1 %v27254_v51  ;;  %23454 = vmatprep.mubr.f32.mxu1 %v5522_v29  ;;  %v27369_v7 = vand.u32 4294901760, %v5967_v8  ;;  %v27372_v29 = vpack.c.bf16 %v5977_v49, %v5974_v43 }
 0x8dd   :  { %25114 = vmatprep.subr.bf16.mxu1 %v25113_v19  ;;  %23567 = vmatmul.mubr.f32.vlgmr.msra.gmra.mrb[14].mxu0 %v27307_v30  ;;  %v27398_v61 = vsub.f32 %v8077_v44, %v8082_v11 }
 0x8de   :  { %25180 = vmatpush3.bf16.xpose.msra.mxu0 %v25177_v16  ;;  %23573 = vmatprep.mubr.f32.mxu0 %v27285_v10  ;;  %v8073_v10 = vsel %vm1748_vm2, %v8066_v62, 0  ;;  %v27389_v46 = vsub.f32 %v5967_v8, %v27369_v7 }
 0x8df   :  { %25182 = vmatprep.subr.bf16.mxu0 %v27304_v36  ;;  %v27380_v20 = vand.u32 4294901760, %v8073_v10  ;;  %v8171_v50 = vand.u32 4294901760, %v27398_v61 }
 0x8e0   :  { %v6052_v27 = vand.u32 4294901760, %v27389_v46 }
 0x8e1   :  { %v27401_v59 = vsub.f32 %v8073_v10, %v27380_v20  ;;  %v8172_v40 = vsub.f32 %v27398_v61, %v8171_v50 }
 0x8e2   :  { %v6053_v63 = vsub.f32 %v27389_v46, %v6052_v27 }
 0x8e3   :  { %23455 = vmatmul.mubr.f32.vlgmr.msra.gmra.mrb[4].mxu1 %v5532_v35  ;;  %v8079_v35 = vsel %vm1748_vm2, %v8072_v0, 0  ;;  %v8150_v58 = vand.u32 4294901760, %v27401_v59  ;;  %v8173_v42 = vand.u32 4294901760, %v8172_v40 }
 0x8e4   :  { %25116 = vmatpush3.bf16.msra.mxu1 %v25113_v19  ;;  %23461 = vmatprep.mubr.f32.mxu1 %v27289_v54  ;;  %v6054_v19 = vand.u32 4294901760, %v6053_v63 }
 0x8e5   :  { %25118 = vmatprep.subr.bf16.mxu1 %v27254_v51  ;;  %23574 = vmatmul.mubr.f32.vlgmr.msra.gmra.mrb[14].mxu0 %v27315_v3  ;;  %v6065_v3 = vand.u32 4294901760, %v6064_v24  ;;  %v8151_v16 = vsub.f32 %v27401_v59, %v8150_v58 }
 0x8e6   :  { %25184 = vmatpush3.bf16.xpose.msra.mxu0 %v27304_v36  ;;  %23580 = vmatprep.mubr.f32.mxu0 %v7092_v23  ;;  %v8085_v23 = vand.u32 4294901760, %v8079_v35 }
 0x8e7   :  { %25186 = vmatprep.subr.bf16.mxu0 %v25185_v26 }
 0x8e8   :  { %v27410_v55 = vpack.c.bf16 %v8085_v23, %v8082_v11 }
 0x8eb   :  { %23462 = vmatmul.mubr.f32.vlgmr.msra.gmra.mrb[4].mxu1 %v27270_v4 }
 0x8ec   :  { %25120 = vmatpush3.bf16.msra.mxu1 %v27254_v51  ;;  %23468 = vmatprep.mubr.f32.mxu1 %v27289_v54  ;;  %v27391_v51 = vsub.f32 %v8079_v35, %v8085_v23  ;;  %v8068_v54 = vpop.permute.xlu1 %8067 }
 0x8ed   :  { %25122 = vmatprep.subr.bf16.mxu1 %v27372_v29  ;;  %23581 = vmatmul.mubr.f32.vlgmr.msra.gmra.mrb[14].mxu0 %v7102_v57  ;;  %v8075_v41 = vsel %vm1748_vm2, %v8068_v54, 0  ;;  %v25125_v57 = vpack.c.bf16 %v6072_v32, %v6065_v3 }
 0x8ee   :  { %25188 = vmatpush3.bf16.xpose.msra.mxu0 %v25185_v26  ;;  %23587 = vmatprep.mubr.f32.mxu0 %v27278_v22  ;;  %v8178_v31 = vand.u32 4294901760, %v27391_v51  ;;  %v27408_v15 = vand.u32 4294901760, %v8075_v41  ;;  %v25225_v0 = vpack.c.bf16 %v27391_v51, %v27398_v61  ;;  %v9126_v26 = vpop.permute.xlu0 %9125 }
 0x8ef   :  { %25190 = vmatprep.subr.bf16.mxu0 %v27304_v36  ;;  %v9133_v62 = vsel %vm1748_vm2, %v9126_v26, 0 }
 0x8f0   :  { %v8159_v28 = vsub.f32 %v8075_v41, %v27408_v15  ;;  %v9128_v8 = vpop.permute.xlu1 %9127  ;;  %v9138_v44 = vand.u32 4294901760, %v9133_v62 }
 0x8f2   :  { %v8160_v56 = vand.u32 4294901760, %v8159_v28  ;;  %v9226_v23 = vsub.f32 %v9133_v62, %v9138_v44 }
 0x8f3   :  { %23469 = vmatmul.mubr.f32.vlgmr.msra.gmra.mrb[4].mxu1 %v27270_v4  ;;  %v8179_v4 = vsub.f32 %v27391_v51, %v8178_v31 }
 0x8f4   :  { %23475 = vmatprep.mubr.f32.mxu1 %v6044_v47  ;;  %v8161_v39 = vsub.f32 %v8159_v28, %v8160_v56  ;;  %v9124_v10 = vpop.permute.xlu1 %9123 }
 0x8f5   :  { %25124 = vmatpush3.bf16.xpose.msra.mxu1 %v27372_v29  ;;  %23588 = vmatmul.mubr.f32.vlgmr.msra.gmra.mrb[14].mxu0 %v27307_v30  ;;  %v8180_v53 = vand.u32 4294901760, %v8179_v4  ;;  %v9131_v14 = vsel %vm1748_vm2, %v9124_v10, 0 }
 0x8f6   :  { %25126 = vmatprep.subr.bf16.mxu1 %v25125_v57  ;;  %25192 = vmatpush3.bf16.xpose.msra.mxu0 %v27304_v36  ;;  %v25129_v36 = vpack.c.bf16 %v27347_v2, %v27357_v5  ;;  %v8162_v43 = vand.u32 4294901760, %v8161_v39  ;;  %v25233_v2 = vpack.c.bf16 %v8178_v31, %v8171_v50  ;;  %v9135_v5 = vsel %vm1748_vm2, %v9128_v8, 0 }
 0x8f7   :  { %23594 = vmatprep.mubr.f32.mxu0 %v27278_v22  ;;  %25218 = vmatprep.subr.bf16.mxu0 %v27410_v55  ;;  %v8152_v22 = vand.u32 4294901760, %v8151_v16  ;;  %v25221_v49 = vpack.c.bf16 %v8180_v53, %v8173_v42  ;;  %v9214_v51 = vand.u32 4294901760, %v9131_v14 }
 0x8f9   :  { %v9215_v24 = vsub.f32 %v9131_v14, %v9214_v51 }
 0x8fb   :  { %v9216_v41 = vand.u32 4294901760, %v9215_v24 }
 0x8fc   :  { %23476 = vmatmul.mubr.f32.vlgmr.msra.gmra.mrb[6].mxu1 %v6054_v19 }
 0x8fd   :  { %25128 = vmatpush3.bf16.xpose.msra.mxu1 %v25125_v57  ;;  %23482 = vmatprep.mubr.f32.mxu1 %v27343_v52  ;;  %v9217_v47 = vsub.f32 %v9215_v24, %v9216_v41 }
 0x8fe   :  { %25130 = vmatprep.subr.bf16.mxu1 %v25129_v36  ;;  %23595 = vmatmul.mubr.f32.vlgmr.msra.gmra.mrb[14].mxu0 %v27307_v30  ;;  %v25137_v30 = vpack.c.bf16 %v6070_v60, %v6063_v17  ;;  %v9141_v60 = vand.u32 4294901760, %v9135_v5 }
 0x8ff   :  { %25220 = vmatpush3.bf16.xpose.msra.mxu0 %v27410_v55  ;;  %23643 = vmatprep.mubr.f32.mxu0 %v8152_v22  ;;  %v9218_v3 = vand.u32 4294901760, %v9217_v47 }
 0x900   :  { %25222 = vmatprep.subr.bf16.mxu0 %v25221_v49  ;;  %v9233_v17 = vsub.f32 %v9135_v5, %v9141_v60 }
 0x902   :  { %v9234_v21 = vand.u32 4294901760, %v9233_v17  ;;  %v25273_v50 = vpack.c.bf16 %v9233_v17, %v9226_v23 }
 0x904   :  { %23483 = vmatmul.mubr.f32.vlgmr.msra.gmra.mrb[6].mxu1 %v27369_v7  ;;  %v9235_v54 = vsub.f32 %v9233_v17, %v9234_v21 }
 0x905   :  { %25132 = vmatpush3.bf16.xpose.msra.mxu1 %v25129_v36  ;;  %23489 = vmatprep.mubr.f32.mxu1 %v27351_v48  ;;  %v9122_v48 = vpop.permute.xlu0 %9121 }
 0x906   :  { %23644 = vmatmul.mubr.f32.vlgmr.msra.gmra.mrb[16].mxu0 %v8162_v43  ;;  %25134 = vmatprep.subr.bf16.mxu1 %v27372_v29  ;;  %v9129_v35 = vsel %vm1748_vm2, %v9122_v48, 0 }
 0x907   :  { %25224 = vmatpush3.bf16.xpose.msra.mxu0 %v25221_v49  ;;  %23650 = vmatprep.mubr.f32.mxu0 %v27380_v20 }
 0x908   :  { %25226 = vmatprep.subr.bf16.mxu0 %v25225_v0 }
 0x90c   :  { %23490 = vmatmul.mubr.f32.vlgmr.msra.gmra.mrb[6].mxu1 %v27389_v46  ;;  %v9227_v46 = vand.u32 4294901760, %v9226_v23 }
 0x90d   :  { %25136 = vmatpush3.bf16.xpose.msra.mxu1 %v27372_v29  ;;  %23496 = vmatprep.mubr.f32.mxu1 %v6042_v13  ;;  %v9204_v13 = vand.u32 4294901760, %v9129_v35 }
 0x90e   :  { %23651 = vmatmul.mubr.f32.vlgmr.msra.gmra.mrb[16].mxu0 %v27408_v15  ;;  %25138 = vmatprep.subr.bf16.mxu1 %v25137_v30  ;;  %v9228_v61 = vsub.f32 %v9226_v23, %v9227_v46 }
 0x90f   :  { %25228 = vmatpush3.bf16.xpose.msra.mxu0 %v25225_v0  ;;  %23657 = vmatprep.mubr.f32.mxu0 %v27401_v59  ;;  %v9205_v11 = vsub.f32 %v9129_v35, %v9204_v13  ;;  %v9236_v59 = vand.u32 4294901760, %v9235_v54 }
 0x910   :  { %25230 = vmatprep.subr.bf16.mxu0 %v27410_v55 }
 0x914   :  { %23497 = vmatmul.mubr.f32.vlgmr.msra.gmra.mrb[6].mxu1 %v6052_v27 }
 0x915   :  { %25140 = vmatpush3.bf16.xpose.msra.mxu1 %v25137_v30  ;;  %23503 = vmatprep.mubr.f32.mxu1 %v27343_v52 }
 0x916   :  { %23658 = vmatmul.mubr.f32.vlgmr.msra.gmra.mrb[16].mxu0 %v8159_v28  ;;  %25142 = vmatprep.subr.bf16.mxu1 %v27372_v29  ;;  %v26655_v28 = vld [vmem:[#allocation5 + $0x50] sm:$0xff] }
 0x917   :  { %25232 = vmatpush3.bf16.xpose.msra.mxu0 %v27410_v55  ;;  %23664 = vmatprep.mubr.f32.mxu0 %v8150_v58  ;;  %v26654_v58 = vld [vmem:[#allocation5 + $0x60] sm:$0xff] }
 0x918   :  { %25234 = vmatprep.subr.bf16.mxu0 %v25233_v2 }
 0x91c   :  { %23504 = vmatmul.mubr.f32.vlgmr.msra.gmra.mrb[6].mxu1 %v27369_v7 }
 0x91d   :  { %25144 = vmatpush3.bf16.xpose.msra.mxu1 %v27372_v29  ;;  %23510 = vmatprep.mubr.f32.mxu1 %v27343_v52  ;;  %v9206_v52 = vand.u32 4294901760, %v9205_v11  ;;  %v25265_v29 = vpack.c.bf16 %v9141_v60, %v9138_v44 }
 0x91e   :  { %23665 = vmatmul.mubr.f32.vlgmr.msra.gmra.mrb[16].mxu0 %v8160_v56  ;;  %25146 = vmatprep.subr.bf16.mxu1 %v26989_v6 }
 0x91f   :  { %25236 = vmatpush3.bf16.xpose.msra.mxu0 %v25233_v2  ;;  %23671 = vmatprep.mubr.f32.mxu0 %v27380_v20  ;;  %v9207_v32 = vsub.f32 %v9205_v11, %v9206_v52 }
 0x920   :  { %25238 = vmatprep.subr.bf16.mxu0 %v27410_v55 }
 0x921   :  { %v9208_v27 = vand.u32 4294901760, %v9207_v32 }
 0x924   :  { %23511 = vmatmul.mubr.f32.vlgmr.msra.gmra.mrb[6].mxu1 %v27369_v7  ;;  %v9229_v7 = vand.u32 4294901760, %v9228_v61 }
 0x925   :  { %25148 = vmatpush3.bf16.msra.mxu1 %v26989_v6 }
 0x926   :  { %23672 = vmatmul.mubr.f32.vlgmr.msra.gmra.mrb[16].mxu0 %v27408_v15  ;;  %25150 = vmatprep.subr.bf16.mxu1 %v27015_v25  ;;  %v25269_v31 = vpack.c.bf16 %v9236_v59, %v9229_v7 }
 0x927   :  { %25240 = vmatpush3.bf16.xpose.msra.mxu0 %v27410_v55  ;;  %23678 = vmatprep.mubr.f32.mxu0 %v27380_v20  ;;  %v25281_v20 = vpack.c.bf16 %v9234_v21, %v9227_v46 }
 0x928   :  { %25266 = vmatprep.subr.bf16.mxu0 %v25265_v29 }
 0x92e   :  { %23679 = vmatmul.mubr.f32.vlgmr.msra.gmra.mrb[16].mxu0 %v27408_v15 }
 0x92f   :  { %25268 = vmatpush3.bf16.xpose.msra.mxu0 %v25265_v29  ;;  %23727 = vmatprep.mubr.f32.mxu0 %v9208_v27 }
 0x930   :  { %25270 = vmatprep.subr.bf16.mxu0 %v25269_v31 }
 0x936   :  { %23728 = vmatmul.mubr.f32.vlgmr.msra.gmra.mrb[18].mxu0 %v9218_v3 }
 0x937   :  { %25272 = vmatpush3.bf16.xpose.msra.mxu0 %v25269_v31  ;;  %23734 = vmatprep.mubr.f32.mxu0 %v9204_v13 }
 0x938   :  { %25274 = vmatprep.subr.bf16.mxu0 %v25273_v50 }
 0x93e   :  { %23735 = vmatmul.mubr.f32.vlgmr.msra.gmra.mrb[18].mxu0 %v9214_v51 }
 0x93f   :  { %25276 = vmatpush3.bf16.xpose.msra.mxu0 %v25273_v50  ;;  %23741 = vmatprep.mubr.f32.mxu0 %v9205_v11 }
 0x940   :  { %25278 = vmatprep.subr.bf16.mxu0 %v25265_v29 }
 0x946   :  { %23742 = vmatmul.mubr.f32.vlgmr.msra.gmra.mrb[18].mxu0 %v9215_v24 }
 0x947   :  { %25280 = vmatpush3.bf16.xpose.msra.mxu0 %v25265_v29  ;;  %23748 = vmatprep.mubr.f32.mxu0 %v9206_v52 }
 0x948   :  { %25282 = vmatprep.subr.bf16.mxu0 %v25281_v20 }
 0x94e   :  { %23749 = vmatmul.mubr.f32.vlgmr.msra.gmra.mrb[18].mxu0 %v9216_v41 }
 0x94f   :  { %25284 = vmatpush3.bf16.xpose.msra.mxu0 %v25281_v20  ;;  %23755 = vmatprep.mubr.f32.mxu0 %v9204_v13 }
 0x950   :  { %25286 = vmatprep.subr.bf16.mxu0 %v25265_v29 }
 0x956   :  { %23756 = vmatmul.mubr.f32.vlgmr.msra.gmra.mrb[18].mxu0 %v9214_v51 }
 0x957   :  { %25288 = vmatpush3.bf16.xpose.msra.mxu0 %v25265_v29  ;;  %23762 = vmatprep.mubr.f32.mxu0 %v9204_v13 }
 0x95e   :  { %23763 = vmatmul.mubr.f32.vlgmr.msra.gmra.mrb[18].mxu0 %v9214_v51 }
 0x9d1   :  { %v23596_v15 = vpop.f32.mrb[14].mxu0 }
 0x9d2   :  { %v7515_v57 = vpop.f32.mrb[15].mxu0  ;;  %v26001_v56 = vadd.f32 %v26654_v58, %v23596_v15 }
 0x9d3   :  { %v26002_v19 = vadd.f32 %v26655_v28, %v7515_v57 }
 0x9d4   :  { %v7528_v49 = vsel %vm47_vm0, %v26001_v56, -inf }
 0x9d5   :  { %v7525_v36 = vsel %vm47_vm0, %v26002_v19, -inf }
 0x9f7   :  { %v23512_v55 = vpop.f32.mrb[6].mxu1 }
 0x9f8   :  { %v25999_v63 = vadd.f32 %v26654_v58, %v23512_v55  ;;  %v6465_v4 = vpop.f32.mrb[7].mxu1 }
 0x9f9   :  { %v26000_v40 = vadd.f32 %v26655_v28, %v6465_v4 }
 0x9fa   :  { %v6478_v16 = vsel %vm47_vm0, %v25999_v63, -inf }
 0x9fb   :  { %6479 = vmax.xlane.f32.xlu1 %v6478_v16  ;;  %v6475_v53 = vsel %vm47_vm0, %v26000_v40, -inf }
 0x9fc   :  { %6476 = vmax.xlane.f32.xlu0 %v6475_v53 }
 0xa00   :  { %7526 = vmax.xlane.f32.xlu0 %v7525_v36 }
 0xa01   :  { %v23680_v42 = vpop.f32.mrb[16].mxu0 }
 0xa02   :  { %v8573_v22 = vpop.f32.mrb[17].mxu0  ;;  %v26003_v23 = vadd.f32 %v26654_v58, %v23680_v42 }
 0xa03   :  { %v26004_v14 = vadd.f32 %v26655_v28, %v8573_v22 }
 0xa04   :  { %7529 = vmax.xlane.f32.xlu0 %v7528_v49  ;;  %v8586_v46 = vsel %vm47_vm0, %v26003_v23, -inf }
 0xa05   :  { %v8583_v51 = vsel %vm47_vm0, %v26004_v14, -inf }
 0xa31   :  { %v23764_v39 = vpop.f32.mrb[18].mxu0 }
 0xa32   :  { %v9629_v43 = vpop.f32.mrb[19].mxu0  ;;  %v27481_v54 = vadd.f32 %v26654_v58, %v23764_v39 }
 0xa33   :  { %v27483_v24 = vadd.f32 %v26655_v28, %v9629_v43 }
 0xa34   :  { %v9642_v41 = vsel %vm47_vm0, %v27481_v54, -inf }
 0xa35   :  { %v9639_v59 = vsel %vm47_vm0, %v27483_v24, -inf }
 0xa88   :  { %v6480_v0 = vpop.xlane.xlu1 %6479 }
 0xa89   :  { %v6482_v30 = vsub.f32 %v25999_v63, %v6480_v0  ;;  %v6477_v26 = vpop.xlane.xlu0 %6476 }
 0xa8a   :  { %v6481_v8 = vsub.f32 %v26000_v40, %v6477_v26 }
 0xa8b   :  { %v6485_v2 = vmul.f32 1.442695, %v6482_v30 }
 0xa8c   :  { %v6483_v48 = vmul.f32 1.442695, %v6481_v8 }
 0xa8d   :  { %26546 = vpow2.f32 %v6485_v2  ;;  %v7527_v5 = vpop.xlane.xlu0 %7526 }
 0xa8e   :  { %26548 = vpow2.f32 %v6483_v48  ;;  %v7531_v62 = vsub.f32 %v26002_v19, %v7527_v5 }
 0xa90   :  { %v7533_v35 = vmul.f32 1.442695, %v7531_v62 }
 0xa91   :  { %v7530_v60 = vpop.xlane.xlu0 %7529 }
 0xa92   :  { %v7532_v44 = vsub.f32 %v26001_v56, %v7530_v60  ;;  %26550 = vpow2.f32 %v7533_v35 }
 0xa94   :  { %v7535_v13 = vmul.f32 1.442695, %v7532_v44 }
 0xa96   :  { %26552 = vpow2.f32 %v7535_v13 }
 0xa97   :  { %v26547_v17 = vpop.eup %26546 }
 0xa98   :  { %v26549_v10 = vpop.eup %26548  ;;  %v6490_v11 = vsel %vm47_vm0, %v26547_v17, 0.0 }
 0xa99   :  { %6491 = vadd.xlane.f32.xlu1 %v6490_v11  ;;  %v6487_v21 = vsel %vm47_vm0, %v26549_v10, 0.0 }
 0xa9a   :  { %6488 = vadd.xlane.f32.xlu0 %v6487_v21 }
 0xa9c   :  { %v27477_v52 = vpop.eup %26550 }
 0xa9d   :  { %8587 = vmax.xlane.f32.xlu1 %v8586_v46  ;;  %v7537_v61 = vsel %vm47_vm0, %v27477_v52, 0.0 }
 0xa9e   :  { %8584 = vmax.xlane.f32.xlu0 %v8583_v51 }
 0xaa0   :  { %v27479_v29 = vpop.eup %26552 }
 0xaa1   :  { %v7540_v32 = vsel %vm47_vm0, %v27479_v29, 0.0 }
 0xaa2   :  { %7538 = vadd.xlane.f32.xlu0 %v7537_v61  ;;  %7541 = vadd.xlane.f32.xlu1 %v7540_v32 }
 0xaa6   :  { %9640 = vmax.xlane.f32.xlu0 %v9639_v59  ;;  %9643 = vmax.xlane.f32.xlu1 %v9642_v41 }
 0xab7   :  { %7551 = vrot.lane.b32.xlu1 %v26977_v9, %s26741_s9 }
 0xabc   :  { %7549 = vrot.lane.b32.xlu0 %v26965_v12, %s26741_s9 }
 0xb26   :  { %v6492_v7 = vpop.xlane.xlu1 %6491 }
 0xb27   :  { %26554 = vrcp.f32 %v6492_v7  ;;  %v6489_v27 = vpop.xlane.xlu0 %6488 }
 0xb28   :  { %26556 = vrcp.f32 %v6489_v27 }
 0xb2a   :  { %v8588_v31 = vpop.xlane.xlu1 %8587 }
 0xb2b   :  { %v8590_v47 = vsub.f32 %v26003_v23, %v8588_v31  ;;  %v8585_v3 = vpop.xlane.xlu0 %8584 }
 0xb2c   :  { %v8589_v50 = vsub.f32 %v26004_v14, %v8585_v3 }
 0xb2d   :  { %v8593_v20 = vmul.f32 1.442695, %v8590_v47 }
 0xb2e   :  { %v8591_v15 = vmul.f32 1.442695, %v8589_v50 }
 0xb2f   :  { %26558 = vpow2.f32 %v8593_v20  ;;  %v7539_v8 = vpop.xlane.xlu0 %7538  ;;  %v7542_v2 = vpop.xlane.xlu1 %7541 }
 0xb30   :  { %26560 = vpow2.f32 %v8591_v15 }
 0xb31   :  { %v26555_v57 = vpop.eup %26554  ;;  %26562 = vrcp.f32 %v7539_v8 }
 0xb32   :  { %v26557_v55 = vpop.eup %26556  ;;  %v6496_v58 = vmul.f32 %v26555_v57, %v26547_v17  ;;  %26564 = vrcp.f32 %v7542_v2 }
 0xb33   :  { %v6494_v63 = vmul.f32 %v26557_v55, %v26549_v10  ;;  %v9644_v48 = vpop.xlane.xlu1 %9643  ;;  %v9641_v5 = vpop.xlane.xlu0 %9640 }
 0xb34   :  { %v6501_v4 = vsel %vm47_vm0, %v6496_v58, 0  ;;  %v9646_v11 = vsub.f32 %v27481_v54, %v9644_v48  ;;  %v9645_v46 = vsub.f32 %v27483_v24, %v9641_v5 }
 0xb35   :  { %v6498_v28 = vsel %vm47_vm0, %v6494_v63, 0  ;;  %v27499_v40 = vand.u32 4294901760, %v6501_v4 }
 0xb36   :  { %v27501_v16 = vand.u32 4294901760, %v6498_v28  ;;  %v9647_v59 = vmul.f32 1.442695, %v9645_v46 }
 0xb37   :  { %v6581_v19 = vsub.f32 %v6501_v4, %v27499_v40  ;;  %v7552_v35 = vpop.permute.xlu1 %7551  ;;  %v7550_v60 = vpop.permute.xlu0 %7549 }
 0xb38   :  { %v6571_v53 = vsub.f32 %v6498_v28, %v27501_v16  ;;  %v7565_v44 = vand.u32 4294901760, %v7552_v35  ;;  %v7562_v13 = vand.u32 4294901760, %v7550_v60 }
 0xb39   :  { %v27505_v56 = vpop.eup %26558  ;;  %v6582_v36 = vand.u32 4294901760, %v6581_v19 }
 0xb3a   :  { %v27507_v42 = vpop.eup %26560  ;;  %v8598_v22 = vsel %vm47_vm0, %v27505_v56, 0.0  ;;  %v6572_v39 = vand.u32 4294901760, %v6571_v53  ;;  %v7657_v14 = vsub.f32 %v7552_v35, %v7565_v44  ;;  %v7650_v21 = vsub.f32 %v7550_v60, %v7562_v13 }
 0xb3b   :  { %8599 = vadd.xlane.f32.xlu0 %v8598_v22  ;;  %v8595_v49 = vsel %vm47_vm0, %v27507_v42, 0.0  ;;  %v6583_v43 = vsub.f32 %v6581_v19, %v6582_v36  ;;  %v25193_v27 = vpack.c.bf16 %v7565_v44, %v7562_v13 }
 0xb3c   :  { %8596 = vadd.xlane.f32.xlu1 %v8595_v49  ;;  %v6573_v0 = vsub.f32 %v6571_v53, %v6572_v39  ;;  %v7658_v61 = vand.u32 4294901760, %v7657_v14  ;;  %v7651_v32 = vand.u32 4294901760, %v7650_v21  ;;  %v25201_v28 = vpack.c.bf16 %v7657_v14, %v7650_v21 }
 0xb3d   :  { %v6584_v26 = vand.u32 4294901760, %v6583_v43 }
 0xb3e   :  { %v6574_v30 = vand.u32 4294901760, %v6573_v0  ;;  %v7659_v7 = vsub.f32 %v7657_v14, %v7658_v61  ;;  %v7652_v24 = vsub.f32 %v7650_v21, %v7651_v32 }
 0xb40   :  { %23517 = vmatprep.mubr.f32.mxu1 %v6574_v30  ;;  %v7653_v47 = vand.u32 4294901760, %v7652_v24  ;;  %v7660_v3 = vand.u32 4294901760, %v7659_v7 }
 0xb41   :  { %23518 = vmatmul.mubr.f32.vlgmr.msra.gmra.mrb[4].mxu1 %v6584_v26 }
 0xb42   :  { %25152 = vmatpush3.bf16.msra.mxu1 %v27015_v25  ;;  %23524 = vmatprep.mubr.f32.mxu1 %v27501_v16  ;;  %v26563_v25 = vpop.eup %26562  ;;  %v25197_v15 = vpack.c.bf16 %v7660_v3, %v7653_v47 }
 0xb43   :  { %25154 = vmatprep.subr.bf16.mxu1 %v27001_v45  ;;  %v7544_v62 = vmul.f32 %v26563_v25, %v27477_v52 }
 0xb45   :  { %v7556_v17 = vsel %vm47_vm0, %v7544_v62, 0 }
 0xb46   :  { %v27528_v23 = vand.u32 4294901760, %v7556_v17 }
 0xb48   :  { %v7629_v51 = vsub.f32 %v7556_v17, %v27528_v23 }
 0xb49   :  { %23525 = vmatmul.mubr.f32.vlgmr.msra.gmra.mrb[4].mxu1 %v27499_v40 }
 0xb4a   :  { %25156 = vmatpush3.bf16.msra.mxu1 %v27001_v45  ;;  %23531 = vmatprep.mubr.f32.mxu1 %v6571_v53  ;;  %v26565_v45 = vpop.eup %26564  ;;  %v7630_v41 = vand.u32 4294901760, %v7629_v51 }
 0xb4b   :  { %25158 = vmatprep.subr.bf16.mxu1 %v26989_v6  ;;  %v7546_v10 = vmul.f32 %v26565_v45, %v27479_v29  ;;  %v9649_v29 = vmul.f32 1.442695, %v9646_v11 }
 0xb4c   :  { %v7631_v31 = vsub.f32 %v7629_v51, %v7630_v41 }
 0xb4d   :  { %8607 = vrot.lane.b32.xlu1 %v26977_v9, %s26746_s14  ;;  %v7559_v52 = vsel %vm47_vm0, %v7546_v10, 0  ;;  %26566 = vpow2.f32 %v9649_v29 }
 0xb4e   :  { %v7638_v54 = vand.u32 4294901760, %v7559_v52  ;;  %26568 = vpow2.f32 %v9647_v59  ;;  %v7632_v20 = vand.u32 4294901760, %v7631_v31 }
 0xb51   :  { %8605 = vrot.lane.b32.xlu0 %v26965_v12, %s26746_s14  ;;  %23532 = vmatmul.mubr.f32.vlgmr.msra.gmra.mrb[4].mxu1 %v6581_v19 }
 0xb52   :  { %25160 = vmatpush3.bf16.msra.mxu1 %v26989_v6  ;;  %23538 = vmatprep.mubr.f32.mxu1 %v6572_v39 }
 0xb53   :  { %25162 = vmatprep.subr.bf16.mxu1 %v27006_v18 }
 0xb57   :  { %v27541_v57 = vpop.eup %26566 }
 0xb58   :  { %v27543_v58 = vpop.eup %26568 }
 0xb59   :  { %23539 = vmatmul.mubr.f32.vlgmr.msra.gmra.mrb[4].mxu1 %v6582_v36  ;;  %v9651_v63 = vsel %vm47_vm0, %v27543_v58, 0.0 }
 0xb5a   :  { %25164 = vmatpush3.bf16.msra.mxu1 %v27006_v18  ;;  %23545 = vmatprep.mubr.f32.mxu1 %v27501_v16  ;;  %v7639_v18 = vsub.f32 %v7559_v52, %v7638_v54 }
 0xb5b   :  { %25166 = vmatprep.subr.bf16.mxu1 %v26989_v6 }
 0xb5c   :  { %v7640_v50 = vand.u32 4294901760, %v7639_v18 }
 0xb5e   :  { %v7641_v55 = vsub.f32 %v7639_v18, %v7640_v50 }
 0xb60   :  { %v7642_v4 = vand.u32 4294901760, %v7641_v55 }
 0xb61   :  { %23546 = vmatmul.mubr.f32.vlgmr.msra.gmra.mrb[4].mxu1 %v27499_v40 }
 0xb62   :  { %25168 = vmatpush3.bf16.msra.mxu1 %v26989_v6  ;;  %23552 = vmatprep.mubr.f32.mxu1 %v27501_v16  ;;  %v9654_v6 = vsel %vm47_vm0, %v27541_v57, 0.0 }
 0xb63   :  { %25194 = vmatprep.subr.bf16.mxu1 %v25193_v27 }
 0xb69   :  { %23553 = vmatmul.mubr.f32.vlgmr.msra.gmra.mrb[4].mxu1 %v27499_v40  ;;  %v25209_v40 = vpack.c.bf16 %v7658_v61, %v7651_v32 }
 0xb6a   :  { %25196 = vmatpush3.bf16.msra.mxu1 %v25193_v27  ;;  %23601 = vmatprep.mubr.f32.mxu1 %v7632_v20 }
 0xb6b   :  { %25198 = vmatprep.subr.bf16.mxu1 %v25197_v15 }
 0xb70   :  { %9655 = vadd.xlane.f32.xlu0 %v9654_v6 }
 0xb71   :  { %9652 = vadd.xlane.f32.xlu1 %v9651_v63  ;;  %23602 = vmatmul.mubr.f32.vlgmr.msra.gmra.mrb[4].mxu1 %v7642_v4 }
 0xb72   :  { %25200 = vmatpush3.bf16.msra.mxu1 %v25197_v15  ;;  %23608 = vmatprep.mubr.f32.mxu1 %v27528_v23 }
 0xb73   :  { %25202 = vmatprep.subr.bf16.mxu1 %v25201_v28 }
 0xb79   :  { %23609 = vmatmul.mubr.f32.vlgmr.msra.gmra.mrb[4].mxu1 %v7638_v54 }
 0xb7a   :  { %25204 = vmatpush3.bf16.msra.mxu1 %v25201_v28  ;;  %23615 = vmatprep.mubr.f32.mxu1 %v7629_v51 }
 0xb7b   :  { %25206 = vmatprep.subr.bf16.mxu1 %v25193_v27 }
 0xb81   :  { %23616 = vmatmul.mubr.f32.vlgmr.msra.gmra.mrb[4].mxu1 %v7639_v18 }
 0xb82   :  { %9663 = vrot.lane.b32.xlu1 %v26977_v9, %s26747_s15  ;;  %25208 = vmatpush3.bf16.msra.mxu1 %v25193_v27 }
 0xb83   :  { %23622 = vmatprep.mubr.f32.mxu1 %v7630_v41  ;;  %25210 = vmatprep.subr.bf16.mxu1 %v25209_v40 }
 0xb86   :  { %9661 = vrot.lane.b32.xlu0 %v26965_v12, %s26747_s15 }
 0xb89   :  { %23623 = vmatmul.mubr.f32.vlgmr.msra.gmra.mrb[4].mxu1 %v7640_v50 }
 0xb8a   :  { %25212 = vmatpush3.bf16.msra.mxu1 %v25209_v40  ;;  %23629 = vmatprep.mubr.f32.mxu1 %v27528_v23 }
 0xb8b   :  { %25214 = vmatprep.subr.bf16.mxu1 %v25193_v27 }
 0xb91   :  { %23630 = vmatmul.mubr.f32.vlgmr.msra.gmra.mrb[4].mxu1 %v7638_v54 }
 0xb92   :  { %25216 = vmatpush3.bf16.msra.mxu1 %v25193_v27  ;;  %23636 = vmatprep.mubr.f32.mxu1 %v27528_v23 }
 0xb99   :  { %23637 = vmatmul.mubr.f32.vlgmr.msra.gmra.mrb[4].mxu1 %v7638_v54 }
 0xbc8   :  { %v8600_v16 = vpop.xlane.xlu0 %8599 }
 0xbc9   :  { %26570 = vrcp.f32 %v8600_v16  ;;  %v8597_v9 = vpop.xlane.xlu1 %8596 }
 0xbca   :  { %26572 = vrcp.f32 %v8597_v9 }
 0xbcc   :  { %v8606_v19 = vpop.permute.xlu0 %8605 }
 0xbcd   :  { %v8618_v53 = vand.u32 4294901760, %v8606_v19  ;;  %v8608_v36 = vpop.permute.xlu1 %8607 }
 0xbce   :  { %v8621_v22 = vand.u32 4294901760, %v8608_v36 }
 0xbcf   :  { %v8706_v49 = vsub.f32 %v8606_v19, %v8618_v53 }
 0xbd0   :  { %v25241_v12 = vpack.c.bf16 %v8621_v22, %v8618_v53  ;;  %v8713_v39 = vsub.f32 %v8608_v36, %v8621_v22 }
 0xbd1   :  { %v8707_v43 = vand.u32 4294901760, %v8706_v49 }
 0xbd2   :  { %v8714_v0 = vand.u32 4294901760, %v8713_v39  ;;  %25242 = vmatprep.subr.bf16.mxu1 %v25241_v12 }
 0xbd3   :  { %v26571_v30 = vpop.eup %26570  ;;  %v8708_v26 = vsub.f32 %v8706_v49, %v8707_v43  ;;  %25244 = vmatpush3.bf16.msra.mxu1 %v25241_v12 }
 0xbd4   :  { %v26573_v8 = vpop.eup %26572  ;;  %v8604_v2 = vmul.f32 %v26571_v30, %v27505_v56  ;;  %v8715_v48 = vsub.f32 %v8713_v39, %v8714_v0  ;;  %v25257_v51 = vpack.c.bf16 %v8714_v0, %v8707_v43 }
 0xbd5   :  { %v8602_v5 = vmul.f32 %v26573_v8, %v27507_v42  ;;  %v8709_v25 = vand.u32 4294901760, %v8708_v26  ;;  %v25249_v42 = vpack.c.bf16 %v8713_v39, %v8706_v49  ;;  %v560_v26 = vld [vmem:[#allocation5 + $0x24] ss:$0 sm:$0xff] }
 0xbd6   :  { %v8716_v62 = vand.u32 4294901760, %v8715_v48  ;;  %v8615_v35 = vsel %vm47_vm0, %v8604_v2, 0 }
 0xbd7   :  { %v8612_v60 = vsel %vm47_vm0, %v8602_v5, 0  ;;  %v8694_v45 = vand.u32 4294901760, %v8615_v35 }
 0xbd8   :  { %v25245_v44 = vpack.c.bf16 %v8716_v62, %v8709_v25  ;;  %v8684_v13 = vand.u32 4294901760, %v8612_v60 }
 0xbd9   :  { %v8695_v17 = vsub.f32 %v8615_v35, %v8694_v45 }
 0xbda   :  { %25246 = vmatprep.subr.bf16.mxu1 %v25245_v44  ;;  %v8685_v10 = vsub.f32 %v8612_v60, %v8684_v13 }
 0xbdb   :  { %v8696_v23 = vand.u32 4294901760, %v8695_v17 }
 0xbdc   :  { %v8686_v11 = vand.u32 4294901760, %v8685_v10 }
 0xbdd   :  { %v8697_v14 = vsub.f32 %v8695_v17, %v8696_v23 }
 0xbde   :  { %v8687_v21 = vsub.f32 %v8685_v10, %v8686_v11 }
 0xbdf   :  { %v8698_v46 = vand.u32 4294901760, %v8697_v14  ;;  %v578_v14 = vld [vmem:[#allocation5 + $0x190] sm:$0xff] }
 0xbe0   :  { %v8688_v56 = vand.u32 4294901760, %v8687_v21 }
 0xbe2   :  { %23685 = vmatprep.mubr.f32.mxu1 %v8688_v56 }
 0xbe3   :  { %23686 = vmatmul.mubr.f32.vlgmr.msra.gmra.mrb[4].mxu1 %v8698_v46  ;;  %v579_v46 = vld [vmem:[#allocation5 + $0x1a0] sm:$0xff] }
 0xbe4   :  { %25248 = vmatpush3.bf16.msra.mxu1 %v25245_v44  ;;  %23692 = vmatprep.mubr.f32.mxu1 %v8684_v13 }
 0xbe5   :  { %25250 = vmatprep.subr.bf16.mxu1 %v25249_v42 }
 0xbeb   :  { %23693 = vmatmul.mubr.f32.vlgmr.msra.gmra.mrb[4].mxu1 %v8694_v45 }
 0xbec   :  { %25252 = vmatpush3.bf16.msra.mxu1 %v25249_v42  ;;  %23699 = vmatprep.mubr.f32.mxu1 %v8685_v10  ;;  %v10224_v42 = vand.u32 4294901760, %v578_v14 }
 0xbed   :  { %25254 = vmatprep.subr.bf16.mxu1 %v25241_v12 }
 0xbf3   :  { %23700 = vmatmul.mubr.f32.vlgmr.msra.gmra.mrb[4].mxu1 %v8695_v17 }
 0xbf4   :  { %25256 = vmatpush3.bf16.msra.mxu1 %v25241_v12  ;;  %23706 = vmatprep.mubr.f32.mxu1 %v8686_v11  ;;  %v577_v11 = vld [vmem:[#allocation5 + $0x180] sm:$0xff] }
 0xbf5   :  { %25258 = vmatprep.subr.bf16.mxu1 %v25257_v51  ;;  %v10221_v56 = vand.u32 4294901760, %v577_v11 }
 0xbfb   :  { %23707 = vmatmul.mubr.f32.vlgmr.msra.gmra.mrb[4].mxu1 %v8696_v23  ;;  %v576_v23 = vld [vmem:[#allocation5 + $0x170] sm:$0xff] }
 0xbfc   :  { %25260 = vmatpush3.bf16.msra.mxu1 %v25257_v51  ;;  %23713 = vmatprep.mubr.f32.mxu1 %v8684_v13  ;;  %v10218_v21 = vand.u32 4294901760, %v576_v23  ;;  %v10227_v51 = vand.u32 4294901760, %v579_v46 }
 0xbfd   :  { %25262 = vmatprep.subr.bf16.mxu1 %v25241_v12  ;;  %v9656_v52 = vpop.xlane.xlu0 %9655 }
 0xbfe   :  { %26574 = vrcp.f32 %v9656_v52  ;;  %v9653_v29 = vpop.xlane.xlu1 %9652  ;;  %v27580_v52 = vpack.c.bf16 %v10221_v56, %v10218_v21 }
 0xbff   :  { %26576 = vrcp.f32 %v9653_v29  ;;  %v27582_v29 = vpack.c.bf16 %v10227_v51, %v10224_v42 }
 0xc01   :  { %v9662_v61 = vpop.permute.xlu0 %9661 }
 0xc02   :  { %v9674_v32 = vand.u32 4294901760, %v9662_v61  ;;  %v9664_v59 = vpop.permute.xlu1 %9663 }
 0xc03   :  { %v9677_v54 = vand.u32 4294901760, %v9664_v59  ;;  %23714 = vmatmul.mubr.f32.vlgmr.msra.gmra.mrb[4].mxu1 %v8694_v45 }
 0xc04   :  { %v9762_v41 = vsub.f32 %v9662_v61, %v9674_v32  ;;  %25264 = vmatpush3.bf16.msra.mxu1 %v25241_v12  ;;  %23720 = vmatprep.mubr.f32.mxu1 %v8684_v13  ;;  %v10308_v61 = vsub.f32 %v576_v23, %v10218_v21  ;;  %v581_v23 = vld [vmem:[#allocation5 + $0x200] sm:$0xff] }
 0xc05   :  { %v25289_v7 = vpack.c.bf16 %v9677_v54, %v9674_v32  ;;  %v9769_v27 = vsub.f32 %v9664_v59, %v9677_v54  ;;  %v10315_v32 = vsub.f32 %v577_v11, %v10221_v56  ;;  %v582_v56 = vld [vmem:[#allocation5 + $0x210] sm:$0xff] }
 0xc06   :  { %v9763_v24 = vand.u32 4294901760, %v9762_v41  ;;  %v10309_v59 = vand.u32 4294901760, %v10308_v61 }
 0xc07   :  { %v9770_v18 = vand.u32 4294901760, %v9769_v27  ;;  %25290 = vmatprep.subr.bf16.mxu1 %v25289_v7  ;;  %v25297_v12 = vpack.c.bf16 %v9769_v27, %v9762_v41  ;;  %v10316_v54 = vand.u32 4294901760, %v10315_v32 }
 0xc08   :  { %v26575_v31 = vpop.eup %26574  ;;  %v9764_v47 = vsub.f32 %v9762_v41, %v9763_v24  ;;  %v10322_v41 = vsub.f32 %v578_v14, %v10224_v42  ;;  %v10751_v14 = vand.u32 4294901760, %v581_v23  ;;  %v10754_v42 = vand.u32 4294901760, %v582_v56 }
 0xc09   :  { %v26577_v3 = vpop.eup %26576  ;;  %v9660_v50 = vmul.f32 %v26575_v31, %v27541_v57  ;;  %v9771_v20 = vsub.f32 %v9769_v27, %v9770_v18  ;;  %v25305_v39 = vpack.c.bf16 %v9770_v18, %v9763_v24  ;;  %v10310_v27 = vsub.f32 %v10308_v61, %v10309_v59 }
 0xc0a   :  { %v9658_v15 = vmul.f32 %v26577_v3, %v27543_v58  ;;  %v9765_v55 = vand.u32 4294901760, %v9764_v47  ;;  %v10317_v24 = vsub.f32 %v10315_v32, %v10316_v54  ;;  %v10323_v18 = vand.u32 4294901760, %v10322_v41 }
 0xc0b   :  { %23721 = vmatmul.mubr.f32.vlgmr.msra.gmra.mrb[4].mxu1 %v8694_v45  ;;  %v9772_v6 = vand.u32 4294901760, %v9771_v20  ;;  %v9671_v63 = vsel %vm47_vm0, %v9660_v50, 0  ;;  %v10311_v47 = vand.u32 4294901760, %v10310_v27 }
 0xc0c   :  { %25292 = vmatpush3.bf16.msra.mxu1 %v25289_v7  ;;  %v9668_v4 = vsel %vm47_vm0, %v9658_v15, 0  ;;  %v9750_v28 = vand.u32 4294901760, %v9671_v63  ;;  %v10318_v3 = vand.u32 4294901760, %v10317_v24  ;;  %v10324_v50 = vsub.f32 %v10322_v41, %v10323_v18 }
 0xc0d   :  { %v25293_v40 = vpack.c.bf16 %v9772_v6, %v9765_v55  ;;  %v9740_v16 = vand.u32 4294901760, %v9668_v4 }
 0xc0e   :  { %v9751_v9 = vsub.f32 %v9671_v63, %v9750_v28  ;;  %v25321_v15 = vpack.c.bf16 %v10318_v3, %v10311_v47  ;;  %v10325_v55 = vand.u32 4294901760, %v10324_v50  ;;  %v25329_v63 = vpack.c.bf16 %v10315_v32, %v10308_v61 }
 0xc0f   :  { %25294 = vmatprep.subr.bf16.mxu1 %v25293_v40  ;;  %v9741_v19 = vsub.f32 %v9668_v4, %v9740_v16  ;;  %v10845_v32 = vsub.f32 %v581_v23, %v10751_v14 }
 0xc10   :  { %v9752_v53 = vand.u32 4294901760, %v9751_v9 }
 0xc11   :  { %v9742_v36 = vand.u32 4294901760, %v9741_v19 }
 0xc12   :  { %v9753_v57 = vsub.f32 %v9751_v9, %v9752_v53 }
 0xc13   :  { %v9743_v22 = vsub.f32 %v9741_v19, %v9742_v36 }
 0xc14   :  { %v9754_v58 = vand.u32 4294901760, %v9753_v57 }
 0xc15   :  { %v9744_v49 = vand.u32 4294901760, %v9743_v22 }
 0xc17   :  { %23769 = vmatprep.mubr.f32.mxu1 %v9744_v49 }
 0xc18   :  { %23770 = vmatmul.mubr.f32.vlgmr.msra.gmra.mrb[4].mxu1 %v9754_v58  ;;  %v558_v58 = vld [vmem:[#allocation5 + $0x22] ss:$0 sm:$0xff] }
 0xc19   :  { %25296 = vmatpush3.bf16.msra.mxu1 %v25293_v40  ;;  %23776 = vmatprep.mubr.f32.mxu1 %v9740_v16  ;;  %v25345_v40 = vpack.c.bf16 %v10316_v54, %v10309_v59  ;;  %v10846_v59 = vand.u32 4294901760, %v10845_v32 }
 0xc1a   :  { %25298 = vmatprep.subr.bf16.mxu1 %v25297_v12 }
 0xc20   :  { %23777 = vmatmul.mubr.f32.vlgmr.msra.gmra.mrb[4].mxu1 %v9750_v28 }
 0xc21   :  { %25300 = vmatpush3.bf16.msra.mxu1 %v25297_v12  ;;  %23783 = vmatprep.mubr.f32.mxu1 %v9741_v19 }
 0xc22   :  { %25302 = vmatprep.subr.bf16.mxu1 %v25289_v7 }
 0xc28   :  { %23784 = vmatmul.mubr.f32.vlgmr.msra.gmra.mrb[4].mxu1 %v9751_v9 }
 0xc29   :  { %25304 = vmatpush3.bf16.msra.mxu1 %v25289_v7  ;;  %23790 = vmatprep.mubr.f32.mxu1 %v9742_v36 }
 0xc2a   :  { %25306 = vmatprep.subr.bf16.mxu1 %v25305_v39 }
 0xc30   :  { %23791 = vmatmul.mubr.f32.vlgmr.msra.gmra.mrb[4].mxu1 %v9752_v53 }
 0xc31   :  { %25308 = vmatpush3.bf16.msra.mxu1 %v25305_v39  ;;  %23797 = vmatprep.mubr.f32.mxu1 %v9740_v16 }
 0xc32   :  { %25310 = vmatprep.subr.bf16.mxu1 %v25289_v7 }
 0xc38   :  { %23798 = vmatmul.mubr.f32.vlgmr.msra.gmra.mrb[4].mxu1 %v9750_v28 }
 0xc39   :  { %25312 = vmatpush3.bf16.msra.mxu1 %v25289_v7  ;;  %23804 = vmatprep.mubr.f32.mxu1 %v9740_v16  ;;  %v10329_v7 = vsub.f32 %v579_v46, %v10227_v51  ;;  %v583_v46 = vld [vmem:[#allocation5 + $0x220] sm:$0xff] }
 0xc3a   :  { %25314 = vmatprep.subr.bf16.mxu1 %v27580_v52  ;;  %v10757_v51 = vand.u32 4294901760, %v583_v46 }
 0xc3b   :  { %v10330_v31 = vand.u32 4294901760, %v10329_v7 }
 0xc3c   :  { %v10859_v27 = vsub.f32 %v583_v46, %v10757_v51  ;;  %v11288_v46 = vld [vmem:[#allocation5 + $0xc0] sm:$0xff] }
 0xc3d   :  { %v10331_v20 = vsub.f32 %v10329_v7, %v10330_v31  ;;  %v25349_v16 = vpack.c.bf16 %v10330_v31, %v10323_v18 }
 0xc3e   :  { %v10860_v47 = vand.u32 4294901760, %v10859_v27 }
 0xc3f   :  { %v10332_v6 = vand.u32 4294901760, %v10331_v20 }
 0xc40   :  { %23805 = vmatmul.mubr.f32.vlgmr.msra.gmra.mrb[4].mxu1 %v9750_v28  ;;  %v25333_v28 = vpack.c.bf16 %v10329_v7, %v10322_v41  ;;  %v10847_v41 = vsub.f32 %v10845_v32, %v10846_v59  ;;  %v10852_v7 = vsub.f32 %v582_v56, %v10754_v42  ;;  %v10861_v20 = vsub.f32 %v10859_v27, %v10860_v47  ;;  %v11287_v56 = vld [vmem:[#allocation5 + $0xb0] sm:$0xff] }
 0xc41   :  { %25316 = vmatpush3.bf16.msra.mxu1 %v27580_v52  ;;  %v25325_v4 = vpack.c.bf16 %v10332_v6, %v10325_v55 }
 0xc42   :  { %25318 = vmatprep.subr.bf16.mxu1 %v27582_v29  ;;  %v10848_v18 = vand.u32 4294901760, %v10847_v41  ;;  %v10853_v31 = vand.u32 4294901760, %v10852_v7  ;;  %v10862_v55 = vand.u32 4294901760, %v10861_v20 }
 0xc44   :  { %v10854_v50 = vsub.f32 %v10852_v7, %v10853_v31 }
 0xc45   :  { %25320 = vmatpush3.bf16.msra.mxu1 %v27582_v29 }
 0xc46   :  { %25322 = vmatprep.subr.bf16.mxu1 %v25321_v15 }
 0xd13   :  { %v23806_v43 = vpop.f32.mrb[4].mxu1 }
 0xd14   :  { %v25993_v0 = vadd.f32 %v23806_v43, %v27164_v37  ;;  %v10165_v30 = vpop.f32.mrb[5].mxu1 }
 0xd15   :  { %v25994_v8 = vadd.f32 %v10165_v30, %v27166_v38 }
 0xd16   :  { %v10178_v2 = vadd.f32 %v25993_v0, %v26803_v34  ;;  %v559_v0 = vld [vmem:[#allocation5 + $0x23] ss:$0 sm:$0xff] }
 0xd17   :  { %v10177_v48 = vadd.f32 %v25994_v8, %v26801_v33 }
 0xd18   :  { %v27568_v5 = vadd.f32 %v10178_v2, %v560_v26 }
 0xd19   :  { %v27570_v25 = vadd.f32 %v10177_v48, %v560_v26 }
 0xd1a   :  { %v10184_v62 = vsel %vm584_vm1, %v27568_v5, 0.0 }
 0xd1b   :  { %10185 = vadd.xlane.f32.xlu0 %v10184_v62  ;;  %v10181_v35 = vsel %vm584_vm1, %v27570_v25, 0.0 }
 0xd1c   :  { %10182 = vadd.xlane.f32.xlu1 %v10181_v35 }
 0xda8   :  { %v10186_v37 = vpop.xlane.xlu0 %10185 }
 0xda9   :  { %v10188_v60 = vmul.f32 0.03125, %v10186_v37  ;;  %v10183_v45 = vpop.xlane.xlu1 %10182 }
 0xdaa   :  { %v10187_v38 = vmul.f32 0.03125, %v10183_v45 }
 0xdab   :  { %v10190_v34 = vsub.f32 %v27568_v5, %v10188_v60 }
 0xdac   :  { %v10189_v33 = vsub.f32 %v27570_v25, %v10187_v38 }
 0xdad   :  { %v10192_v44 = vmul.f32 %v10190_v34, %v10190_v34 }
 0xdae   :  { %v10191_v13 = vmul.f32 %v10189_v33, %v10189_v33 }
 0xdaf   :  { %v10196_v17 = vsel %vm584_vm1, %v10192_v44, 0.0 }
 0xdb0   :  { %10197 = vadd.xlane.f32.xlu1 %v10196_v17  ;;  %v10193_v10 = vsel %vm584_vm1, %v10191_v13, 0.0 }
 0xdb1   :  { %10194 = vadd.xlane.f32.xlu0 %v10193_v10 }
 0xe3d   :  { %v10198_v9 = vpop.xlane.xlu1 %10197 }
 0xe3e   :  { %v10200_v19 = vmul.f32 0.03125, %v10198_v9  ;;  %v10195_v53 = vpop.xlane.xlu0 %10194 }
 0xe3f   :  { %v10199_v36 = vmul.f32 0.03125, %v10195_v53 }
 0xe40   :  { %v10202_v57 = vadd.f32 1e-05, %v10200_v19 }
 0xe41   :  { %v10201_v22 = vadd.f32 1e-05, %v10199_v36 }
 0xe42   :  { %26578 = vrsqrt.f32 %v10202_v57 }
 0xe43   :  { %26580 = vrsqrt.f32 %v10201_v22 }
 0xe4c   :  { %v26579_v49 = vpop.eup %26578 }
 0xe4d   :  { %v26581_v12 = vpop.eup %26580  ;;  %v10206_v39 = vmul.f32 %v26579_v49, %v10190_v34 }
 0xe4e   :  { %v10205_v43 = vmul.f32 %v26581_v12, %v10189_v33  ;;  %v580_v33 = vld [vmem:[#allocation5 + $0x1f0] sm:$0xff] }
 0xe4f   :  { %v10208_v30 = vmul.f32 %v10206_v39, %v558_v58  ;;  %v10748_v11 = vand.u32 4294901760, %v580_v33 }
 0xe50   :  { %v10207_v26 = vmul.f32 %v10205_v43, %v558_v58 }
 0xe51   :  { %v10210_v8 = vadd.f32 %v10208_v30, %v559_v0  ;;  %v27598_v21 = vpack.c.bf16 %v10751_v14, %v10748_v11  ;;  %v10838_v61 = vsub.f32 %v580_v33, %v10748_v11 }
 0xe52   :  { %v10209_v2 = vadd.f32 %v10207_v26, %v559_v0 }
 0xe53   :  { %v10215_v48 = vsel %vm584_vm1, %v10210_v8, 0  ;;  %25362 = vmatprep.subr.bf16.mxu0 %v27598_v21 }
 0xe54   :  { %v10212_v62 = vsel %vm584_vm1, %v10209_v2, 0  ;;  %v10296_v35 = vand.u32 4294901760, %v10215_v48  ;;  %25364 = vmatpush3.bf16.xpose.msra.mxu0 %v27598_v21 }
 0xe55   :  { %v10286_v37 = vand.u32 4294901760, %v10212_v62 }
 0xe56   :  { %v10297_v60 = vsub.f32 %v10215_v48, %v10296_v35  ;;  %v561_v48 = vld [vmem:[#allocation5 + $0x25] ss:$0 sm:$0xff] }
 0xe57   :  { %v10287_v45 = vsub.f32 %v10212_v62, %v10286_v37 }
 0xe58   :  { %v10298_v38 = vand.u32 4294901760, %v10297_v60 }
 0xe59   :  { %v10288_v44 = vand.u32 4294901760, %v10287_v45 }
 0xe5a   :  { %v10299_v13 = vsub.f32 %v10297_v60, %v10298_v38 }
 0xe5b   :  { %v10289_v17 = vsub.f32 %v10287_v45, %v10288_v44 }
 0xe5c   :  { %v10300_v34 = vand.u32 4294901760, %v10299_v13 }
 0xe5d   :  { %v10290_v10 = vand.u32 4294901760, %v10289_v17 }
 0xe5f   :  { %23815 = vmatprep.mubr.f32.mxu1 %v10290_v10 }
 0xe60   :  { %23816 = vmatmul.mubr.f32.vlgmr.msra.gmra.mrb[8].mxu1 %v10300_v34 }
 0xe61   :  { %25324 = vmatpush3.bf16.msra.mxu1 %v25321_v15  ;;  %23826 = vmatprep.mubr.f32.mxu1 %v10286_v37  ;;  %v10855_v15 = vand.u32 4294901760, %v10854_v50 }
 0xe62   :  { %25326 = vmatprep.subr.bf16.mxu1 %v25325_v4 }
 0xe63   :  { %v25373_v6 = vpack.c.bf16 %v10862_v55, %v10855_v15 }
 0xe65   :  { %25328 = vmatpush3.bf16.msra.mxu1 %v25325_v4  ;;  %v25381_v4 = vpack.c.bf16 %v10859_v27, %v10852_v7 }
 0xe66   :  { %25330 = vmatprep.subr.bf16.mxu1 %v25329_v63 }
 0xe68   :  { %23827 = vmatmul.mubr.f32.vlgmr.msra.gmra.mrb[8].mxu1 %v10296_v35 }
 0xe69   :  { %25332 = vmatpush3.bf16.msra.mxu1 %v25329_v63  ;;  %23837 = vmatprep.mubr.f32.mxu1 %v10287_v45  ;;  %v25377_v63 = vpack.c.bf16 %v10845_v32, %v10838_v61 }
 0xe6a   :  { %25334 = vmatprep.subr.bf16.mxu1 %v25333_v28 }
 0xe6d   :  { %25336 = vmatpush3.bf16.msra.mxu1 %v25333_v28 }
 0xe6e   :  { %25338 = vmatprep.subr.bf16.mxu1 %v27580_v52 }
 0xe70   :  { %23838 = vmatmul.mubr.f32.vlgmr.msra.gmra.mrb[8].mxu1 %v10297_v60 }
 0xe71   :  { %25340 = vmatpush3.bf16.msra.mxu1 %v27580_v52  ;;  %23848 = vmatprep.mubr.f32.mxu1 %v10288_v44 }
 0xe72   :  { %25342 = vmatprep.subr.bf16.mxu1 %v27582_v29 }
 0xe75   :  { %25344 = vmatpush3.bf16.msra.mxu1 %v27582_v29 }
 0xe76   :  { %25346 = vmatprep.subr.bf16.mxu1 %v25345_v40 }
 0xe78   :  { %23849 = vmatmul.mubr.f32.vlgmr.msra.gmra.mrb[8].mxu1 %v10298_v38 }
 0xe79   :  { %25348 = vmatpush3.bf16.msra.mxu1 %v25345_v40  ;;  %23859 = vmatprep.mubr.f32.mxu1 %v10286_v37  ;;  %v25397_v40 = vpack.c.bf16 %v10860_v47, %v10853_v31 }
 0xe7a   :  { %25350 = vmatprep.subr.bf16.mxu1 %v25349_v16 }
 0xe7d   :  { %25352 = vmatpush3.bf16.msra.mxu1 %v25349_v16  ;;  %v563_v16 = vld [vmem:[#allocation5 + $0x27] ss:$0 sm:$0xff] }
 0xe7e   :  { %25354 = vmatprep.subr.bf16.mxu1 %v27580_v52 }
 0xe80   :  { %23860 = vmatmul.mubr.f32.vlgmr.msra.gmra.mrb[8].mxu1 %v10296_v35 }
 0xe81   :  { %25356 = vmatpush3.bf16.msra.mxu1 %v27580_v52  ;;  %23870 = vmatprep.mubr.f32.mxu1 %v10286_v37  ;;  %v27602_v52 = vpack.c.bf16 %v10757_v51, %v10754_v42  ;;  %v11289_v42 = vld [vmem:[#allocation5 + $0xd0] sm:$0xff]  ;;  %v11344_v51 = vand.u32 4294901760, %v11287_v56 }
 0xe82   :  { %25358 = vmatprep.subr.bf16.mxu1 %v27582_v29  ;;  %v11350_v32 = vand.u32 4294901760, %v11289_v42 }
 0xe83   :  { %25366 = vmatprep.subr.bf16.mxu0 %v27602_v52  ;;  %v11434_v41 = vsub.f32 %v11287_v56, %v11344_v51  ;;  %v11294_v56 = vld [vmem:[#allocation5 + $0x148] sm:$0xff] }
 0xe84   :  { %25368 = vmatpush3.bf16.xpose.msra.mxu0 %v27602_v52  ;;  %v11448_v47 = vsub.f32 %v11289_v42, %v11350_v32  ;;  %v11875_v42 = vand.u32 4294901760, %v11294_v56 }
 0xe85   :  { %25360 = vmatpush3.bf16.msra.mxu1 %v27582_v29  ;;  %v10839_v29 = vand.u32 4294901760, %v10838_v61  ;;  %v11435_v27 = vand.u32 4294901760, %v11434_v41 }
 0xe86   :  { %v11449_v15 = vand.u32 4294901760, %v11448_v47 }
 0xe87   :  { %v10840_v54 = vsub.f32 %v10838_v61, %v10839_v29  ;;  %v25393_v28 = vpack.c.bf16 %v10846_v59, %v10839_v29  ;;  %v11290_v61 = vld [vmem:[#allocation5 + $0xe0] sm:$0xff] }
 0xe88   :  { %23871 = vmatmul.mubr.f32.vlgmr.msra.gmra.mrb[8].mxu1 %v10296_v35  ;;  %v11353_v29 = vand.u32 4294901760, %v11290_v61 }
 0xe89   :  { %v10841_v24 = vand.u32 4294901760, %v10840_v54 }
 0xe8a   :  { %v27630_v54 = vpack.c.bf16 %v11353_v29, %v11350_v32  ;;  %v11298_v32 = vld [vmem:[#allocation5 + $0x168] sm:$0xff] }
 0xe8b   :  { %v25369_v3 = vpack.c.bf16 %v10848_v18, %v10841_v24  ;;  %v11436_v18 = vsub.f32 %v11434_v41, %v11435_v27 }
 0xe8d   :  { %25370 = vmatprep.subr.bf16.mxu0 %v25369_v3  ;;  %v11437_v50 = vand.u32 4294901760, %v11436_v18  ;;  %v11883_v18 = vand.u32 4294901760, %v11298_v32 }
 0xf5b   :  { %v23872_v9 = vpop.f32.mrb[8].mxu1 }
 0xf5c   :  { %v26007_v19 = vadd.f32 %v23872_v9, %v563_v16  ;;  %v10735_v53 = vpop.f32.mrb[9].mxu1 }
 0xf5d   :  { %v26008_v36 = vadd.f32 %v10735_v53, %v563_v16 }
 0xf5e   :  { %v10746_v57 = vmax.f32 %v26007_v19, 0.0 }
 0xf5f   :  { %v10745_v22 = vmax.f32 %v26008_v36, 0.0 }
 0xf60   :  { %v10826_v49 = vand.u32 4294901760, %v10746_v57 }
 0xf61   :  { %v10816_v58 = vand.u32 4294901760, %v10745_v22 }
 0xf62   :  { %v10827_v12 = vsub.f32 %v10746_v57, %v10826_v49 }
 0xf63   :  { %v10817_v39 = vsub.f32 %v10745_v22, %v10816_v58 }
 0xf64   :  { %v10828_v43 = vand.u32 4294901760, %v10827_v12 }
 0xf65   :  { %v10818_v0 = vand.u32 4294901760, %v10817_v39 }
 0xf66   :  { %v10829_v30 = vsub.f32 %v10827_v12, %v10828_v43 }
 0xf67   :  { %v10819_v26 = vsub.f32 %v10817_v39, %v10818_v0 }
 0xf68   :  { %v10830_v2 = vand.u32 4294901760, %v10829_v30 }
 0xf69   :  { %v10820_v8 = vand.u32 4294901760, %v10819_v26 }
 0xf6b   :  { %23881 = vmatprep.mubr.f32.mxu0 %v10820_v8  ;;  %v11280_v8 = vld [vmem:[#allocation5 + $0x31] ss:$0 sm:$0xff] }
 0xf6c   :  { %23882 = vmatmul.mubr.f32.vlgmr.msra.gmra.mrb[20].mxu0 %v10830_v2 }
 0xf6d   :  { %25372 = vmatpush3.bf16.xpose.msra.mxu0 %v25369_v3  ;;  %23892 = vmatprep.mubr.f32.mxu0 %v10816_v58  ;;  %v11455_v3 = vsub.f32 %v11290_v61, %v11353_v29  ;;  %v11296_v61 = vld [vmem:[#allocation5 + $0x158] sm:$0xff] }
 0xf6e   :  { %25374 = vmatprep.subr.bf16.mxu0 %v25373_v6 }
 0xf6f   :  { %v11456_v55 = vand.u32 4294901760, %v11455_v3  ;;  %v25429_v19 = vpack.c.bf16 %v11455_v3, %v11448_v47 }
 0xf71   :  { %v27636_v36 = vpack.c.bf16 %v11456_v55, %v11449_v15 }
 0xf75   :  { %25376 = vmatpush3.bf16.xpose.msra.mxu0 %v25373_v6 }
 0xf76   :  { %25378 = vmatprep.subr.bf16.mxu0 %v25377_v63 }
 0xf7c   :  { %23893 = vmatmul.mubr.f32.vlgmr.msra.gmra.mrb[20].mxu0 %v10826_v49 }
 0xf7d   :  { %25380 = vmatpush3.bf16.xpose.msra.mxu0 %v25377_v63  ;;  %23903 = vmatprep.mubr.f32.mxu0 %v10817_v39  ;;  %v11450_v63 = vsub.f32 %v11448_v47, %v11449_v15  ;;  %v11297_v47 = vld [vmem:[#allocation5 + $0x160] sm:$0xff] }
 0xf7e   :  { %25382 = vmatprep.subr.bf16.mxu0 %v25381_v4  ;;  %v11885_v15 = vand.u32 4294901760, %v11297_v47 }
 0xf85   :  { %25384 = vmatpush3.bf16.xpose.msra.mxu0 %v25381_v4  ;;  %v11457_v4 = vsub.f32 %v11455_v3, %v11456_v55 }
 0xf86   :  { %25386 = vmatprep.subr.bf16.mxu0 %v27598_v21 }
 0xf87   :  { %v11458_v16 = vand.u32 4294901760, %v11457_v4 }
 0xf8c   :  { %23904 = vmatmul.mubr.f32.vlgmr.msra.gmra.mrb[20].mxu0 %v10827_v12 }
 0xf8d   :  { %25388 = vmatpush3.bf16.xpose.msra.mxu0 %v27598_v21  ;;  %23914 = vmatprep.mubr.f32.mxu0 %v10818_v0  ;;  %v11279_v0 = vld [vmem:[#allocation5 + $0x30] ss:$0 sm:$0xff] }
 0xf8e   :  { %25390 = vmatprep.subr.bf16.mxu0 %v27602_v52 }
 0xf95   :  { %25392 = vmatpush3.bf16.xpose.msra.mxu0 %v27602_v52 }
 0xf96   :  { %25394 = vmatprep.subr.bf16.mxu0 %v25393_v28 }
 0xf9c   :  { %23915 = vmatmul.mubr.f32.vlgmr.msra.gmra.mrb[20].mxu0 %v10828_v43 }
 0xf9d   :  { %25396 = vmatpush3.bf16.xpose.msra.mxu0 %v25393_v28  ;;  %23925 = vmatprep.mubr.f32.mxu0 %v10816_v58 }
 0xf9e   :  { %25398 = vmatprep.subr.bf16.mxu0 %v25397_v40 }
 0xfa5   :  { %25400 = vmatpush3.bf16.xpose.msra.mxu0 %v25397_v40  ;;  %v11451_v40 = vand.u32 4294901760, %v11450_v63 }
 0xfa6   :  { %25402 = vmatprep.subr.bf16.mxu0 %v27598_v21 }
 0xfa7   :  { %v25421_v9 = vpack.c.bf16 %v11458_v16, %v11451_v40  ;;  %v27701_v16 = vsub.f32 %v11297_v47, %v11885_v15 }
 0xfac   :  { %23926 = vmatmul.mubr.f32.vlgmr.msra.gmra.mrb[20].mxu0 %v10826_v49 }
 0xfad   :  { %25404 = vmatpush3.bf16.xpose.msra.mxu0 %v27598_v21  ;;  %23936 = vmatprep.mubr.f32.mxu0 %v10816_v58 }
 0xfae   :  { %25406 = vmatprep.subr.bf16.mxu0 %v27602_v52 }
 0xfb5   :  { %25408 = vmatpush3.bf16.xpose.msra.mxu0 %v27602_v52  ;;  %v11347_v52 = vand.u32 4294901760, %v11288_v46 }
 0xfb7   :  { %v27628_v59 = vpack.c.bf16 %v11347_v52, %v11344_v51  ;;  %v11441_v7 = vsub.f32 %v11288_v46, %v11347_v52  ;;  %v11291_v51 = vld [vmem:[#allocation5 + $0x130] sm:$0xff]  ;;  %v11293_v52 = vld [vmem:[#allocation5 + $0x140] sm:$0xff] }
 0xfb8   :  { %v11873_v29 = vand.u32 4294901760, %v11291_v51 }
 0xfb9   :  { %25410 = vmatprep.subr.bf16.mxu1 %v27628_v59  ;;  %v11442_v24 = vand.u32 4294901760, %v11441_v7  ;;  %v25425_v28 = vpack.c.bf16 %v11441_v7, %v11434_v41  ;;  %v11877_v41 = vand.u32 4294901760, %v11293_v52 }
 0xfba   :  { %25412 = vmatpush3.bf16.msra.mxu1 %v27628_v59  ;;  %v27683_v3 = vsub.f32 %v11291_v51, %v11873_v29 }
 0xfbb   :  { %25414 = vmatprep.subr.bf16.mxu1 %v27630_v54  ;;  %v11443_v31 = vsub.f32 %v11441_v7, %v11442_v24  ;;  %v25441_v53 = vpack.c.bf16 %v11442_v24, %v11435_v27  ;;  %v27680_v27 = vsub.f32 %v11294_v56, %v11875_v42  ;;  %v11879_v24 = vand.u32 4294901760, %v11296_v61 }
 0xfbc   :  { %23937 = vmatmul.mubr.f32.vlgmr.msra.gmra.mrb[20].mxu0 %v10826_v49 }
 0xfbd   :  { %v11444_v20 = vand.u32 4294901760, %v11443_v31  ;;  %v11295_v31 = vld [vmem:[#allocation5 + $0x150] sm:$0xff]  ;;  %v27688_v55 = vsub.f32 %v11296_v61, %v11879_v24  ;;  %v11980_v4 = vand.u32 4294901760, %v27680_v27 }
 0xfbe   :  { %25416 = vmatpush3.bf16.msra.mxu1 %v27630_v54 }
 0xfbf   :  { %v25417_v6 = vpack.c.bf16 %v11444_v20, %v11437_v50  ;;  %v27685_v50 = vsub.f32 %v11293_v52, %v11877_v41  ;;  %v11881_v20 = vand.u32 4294901760, %v11295_v31 }
 0xfc1   :  { %25418 = vmatprep.subr.bf16.mxu1 %v25417_v6  ;;  %v27699_v40 = vsub.f32 %v11295_v31, %v11881_v20  ;;  %v25475_v51 = vpack.c.bf16 %v27685_v50, %v27683_v3 }
 0xfc3   :  { %v25479_v52 = vpack.c.bf16 %v27701_v16, %v27699_v40 }
0x108f   :  { %v23938_v62 = vpop.f32.mrb[20].mxu0 }
0x1090   :  { %v11276_v35 = vadd.f32 %v23938_v62, %v27568_v5  ;;  %v11265_v37 = vpop.f32.mrb[21].mxu0 }
0x1091   :  { %v11275_v60 = vadd.f32 %v11265_v37, %v27570_v25 }
0x1092   :  { %v27616_v45 = vadd.f32 %v11276_v35, %v561_v48 }
0x1093   :  { %v27618_v38 = vadd.f32 %v11275_v60, %v561_v48 }
0x1094   :  { %v11310_v44 = vsel %vm584_vm1, %v27616_v45, 0.0 }
0x1095   :  { %11311 = vadd.xlane.f32.xlu1 %v11310_v44  ;;  %v11307_v13 = vsel %vm584_vm1, %v27618_v38, 0.0 }
0x1096   :  { %11308 = vadd.xlane.f32.xlu0 %v11307_v13 }
0x1122   :  { %v11312_v17 = vpop.xlane.xlu1 %11311 }
0x1123   :  { %v11314_v10 = vmul.f32 0.03125, %v11312_v17  ;;  %v11309_v34 = vpop.xlane.xlu0 %11308 }
0x1124   :  { %v11313_v33 = vmul.f32 0.03125, %v11309_v34 }
0x1125   :  { %v11316_v5 = vsub.f32 %v27616_v45, %v11314_v10 }
0x1126   :  { %v11315_v25 = vsub.f32 %v27618_v38, %v11313_v33 }
0x1127   :  { %v11318_v23 = vmul.f32 %v11316_v5, %v11316_v5 }
0x1128   :  { %v11317_v11 = vmul.f32 %v11315_v25, %v11315_v25 }
0x1129   :  { %v11322_v14 = vsel %vm584_vm1, %v11318_v23, 0.0 }
0x112a   :  { %11323 = vadd.xlane.f32.xlu1 %v11322_v14  ;;  %v11319_v21 = vsel %vm584_vm1, %v11317_v11, 0.0 }
0x112b   :  { %11320 = vadd.xlane.f32.xlu0 %v11319_v21  ;;  %v11292_v21 = vld [vmem:[#allocation5 + $0x138] sm:$0xff] }
0x112c   :  { %v11871_v46 = vand.u32 4294901760, %v11292_v21 }
0x112e   :  { %v27678_v7 = vsub.f32 %v11292_v21, %v11871_v46 }
0x1130   :  { %v11968_v63 = vand.u32 4294901760, %v27678_v7 }
0x11b7   :  { %v11324_v57 = vpop.xlane.xlu1 %11323 }
0x11b8   :  { %v11326_v22 = vmul.f32 0.03125, %v11324_v57  ;;  %v11321_v49 = vpop.xlane.xlu0 %11320 }
0x11b9   :  { %v11325_v58 = vmul.f32 0.03125, %v11321_v49  ;;  %v27716_v49 = vpack.c.bf16 %v11883_v18, %v11879_v24 }
0x11ba   :  { %v11328_v12 = vadd.f32 1e-05, %v11326_v22  ;;  %v27714_v22 = vpack.c.bf16 %v11877_v41, %v11873_v29 }
0x11bb   :  { %v11327_v39 = vadd.f32 1e-05, %v11325_v58 }
0x11bc   :  { %26582 = vrsqrt.f32 %v11328_v12 }
0x11bd   :  { %26584 = vrsqrt.f32 %v11327_v39  ;;  %v11998_v39 = vand.u32 4294901760, %v27699_v40 }
0x11c6   :  { %v26583_v43 = vpop.eup %26582 }
0x11c7   :  { %v26585_v30 = vpop.eup %26584  ;;  %v11332_v26 = vmul.f32 %v26583_v43, %v11316_v5  ;;  %v12010_v43 = vand.u32 4294901760, %v27701_v16 }
0x11c8   :  { %v11331_v2 = vmul.f32 %v26585_v30, %v11315_v25 }
0x11c9   :  { %v11334_v48 = vmul.f32 %v11332_v26, %v11279_v0 }
0x11ca   :  { %v11333_v62 = vmul.f32 %v11331_v2, %v11279_v0 }
0x11cb   :  { %v11336_v35 = vadd.f32 %v11334_v48, %v11280_v8 }
0x11cc   :  { %v11335_v37 = vadd.f32 %v11333_v62, %v11280_v8  ;;  %v25463_v8 = vpack.c.bf16 %v11885_v15, %v11881_v20  ;;  %v11999_v62 = vsub.f32 %v27699_v40, %v11998_v39 }
0x11cd   :  { %v11341_v60 = vsel %vm584_vm1, %v11336_v35, 0  ;;  %v12011_v35 = vsub.f32 %v27701_v16, %v12010_v43 }
0x11ce   :  { %v11338_v44 = vsel %vm584_vm1, %v11335_v37, 0  ;;  %v27640_v13 = vand.u32 4294901760, %v11341_v60 }
0x11cf   :  { %v27642_v17 = vand.u32 4294901760, %v11338_v44  ;;  %v12012_v21 = vand.u32 4294901760, %v12011_v35 }
0x11d0   :  { %v27645_v10 = vsub.f32 %v11341_v60, %v27640_v13 }
0x11d1   :  { %v27648_v34 = vsub.f32 %v11338_v44, %v27642_v17 }
0x11d2   :  { %v27651_v33 = vand.u32 4294901760, %v27645_v10 }
0x11d3   :  { %v27654_v5 = vand.u32 4294901760, %v27648_v34 }
0x11d4   :  { %v11425_v25 = vsub.f32 %v27645_v10, %v27651_v33 }
0x11d5   :  { %v11415_v23 = vsub.f32 %v27648_v34, %v27654_v5 }
0x11d6   :  { %v27662_v14 = vand.u32 4294901760, %v11425_v25 }
0x11d7   :  { %v27660_v11 = vand.u32 4294901760, %v11415_v23  ;;  %v12000_v23 = vand.u32 4294901760, %v11999_v62 }
0x11d9   :  { %23947 = vmatprep.mubr.f32.mxu1 %v27660_v11 }
0x11da   :  { %23948 = vmatmul.mubr.f32.vlgmr.msra.gmra.mrb[10].mxu1 %v27662_v14 }
0x11db   :  { %25420 = vmatpush3.bf16.msra.mxu1 %v25417_v6  ;;  %23958 = vmatprep.mubr.f32.mxu1 %v27642_v17  ;;  %v27690_v6 = vsub.f32 %v11298_v32, %v11883_v18  ;;  %v25495_v32 = vpack.c.bf16 %v12010_v43, %v11998_v39 }
0x11dc   :  { %25422 = vmatprep.subr.bf16.mxu1 %v25421_v9 }
0x11dd   :  { %v12004_v57 = vand.u32 4294901760, %v27690_v6 }
0x11df   :  { %25424 = vmatpush3.bf16.msra.mxu1 %v25421_v9  ;;  %v11974_v9 = vand.u32 4294901760, %v27683_v3  ;;  %v12005_v26 = vsub.f32 %v27690_v6, %v12004_v57 }
0x11e0   :  { %25426 = vmatprep.subr.bf16.mxu1 %v25425_v28 }
0x11e1   :  { %v11975_v58 = vsub.f32 %v27683_v3, %v11974_v9  ;;  %v12006_v44 = vand.u32 4294901760, %v12005_v26 }
0x11e2   :  { %23959 = vmatmul.mubr.f32.vlgmr.msra.gmra.mrb[10].mxu1 %v27640_v13 }
0x11e3   :  { %25428 = vmatpush3.bf16.msra.mxu1 %v25425_v28  ;;  %23969 = vmatprep.mubr.f32.mxu1 %v27648_v34  ;;  %v27695_v28 = vpack.c.bf16 %v11875_v42, %v11871_v46  ;;  %v11976_v2 = vand.u32 4294901760, %v11975_v58  ;;  %v25471_v46 = vpack.c.bf16 %v12012_v21, %v12000_v23  ;;  %v25473_v42 = vpack.c.bf16 %v27680_v27, %v27678_v7 }
0x11e4   :  { %25430 = vmatprep.subr.bf16.mxu1 %v25429_v19 }
0x11e7   :  { %25432 = vmatpush3.bf16.msra.mxu1 %v25429_v19  ;;  %v11986_v19 = vand.u32 4294901760, %v27685_v50 }
0x11e8   :  { %25434 = vmatprep.subr.bf16.mxu1 %v27628_v59 }
0x11e9   :  { %v11987_v12 = vsub.f32 %v27685_v50, %v11986_v19 }
0x11ea   :  { %23970 = vmatmul.mubr.f32.vlgmr.msra.gmra.mrb[10].mxu1 %v27645_v10 }
0x11eb   :  { %25436 = vmatpush3.bf16.msra.mxu1 %v27628_v59  ;;  %23980 = vmatprep.mubr.f32.mxu1 %v27654_v5  ;;  %v11988_v48 = vand.u32 4294901760, %v11987_v12 }
0x11ec   :  { %25438 = vmatprep.subr.bf16.mxu1 %v27630_v54 }
0x11ed   :  { %v25467_v25 = vpack.c.bf16 %v11988_v48, %v11976_v2 }
0x11ef   :  { %25440 = vmatpush3.bf16.msra.mxu1 %v27630_v54 }
0x11f0   :  { %25442 = vmatprep.subr.bf16.mxu1 %v25441_v53 }
0x11f2   :  { %23981 = vmatmul.mubr.f32.vlgmr.msra.gmra.mrb[10].mxu1 %v27651_v33 }
0x11f3   :  { %25444 = vmatpush3.bf16.msra.mxu1 %v25441_v53  ;;  %23991 = vmatprep.mubr.f32.mxu1 %v27642_v17  ;;  %v11969_v53 = vsub.f32 %v27678_v7, %v11968_v63 }
0x11f4   :  { %25446 = vmatprep.subr.bf16.mxu1 %v27636_v36 }
0x11f5   :  { %v11970_v0 = vand.u32 4294901760, %v11969_v53 }
0x11f7   :  { %25448 = vmatpush3.bf16.msra.mxu1 %v27636_v36  ;;  %v11992_v36 = vand.u32 4294901760, %v27688_v55 }
0x11f8   :  { %25450 = vmatprep.subr.bf16.mxu1 %v27628_v59 }
0x11f9   :  { %v25493_v61 = vpack.c.bf16 %v12004_v57, %v11992_v36 }
0x11fa   :  { %23992 = vmatmul.mubr.f32.vlgmr.msra.gmra.mrb[10].mxu1 %v27640_v13 }
0x11fb   :  { %25452 = vmatpush3.bf16.msra.mxu1 %v27628_v59  ;;  %24002 = vmatprep.mubr.f32.mxu1 %v27642_v17  ;;  %v11981_v59 = vsub.f32 %v27680_v27, %v11980_v4 }
0x11fc   :  { %25454 = vmatprep.subr.bf16.mxu1 %v27630_v54 }
0x11fd   :  { %v11982_v30 = vand.u32 4294901760, %v11981_v59 }
0x11ff   :  { %25456 = vmatpush3.bf16.msra.mxu1 %v27630_v54  ;;  %v11993_v54 = vsub.f32 %v27688_v55, %v11992_v36  ;;  %v25465_v37 = vpack.c.bf16 %v11982_v30, %v11970_v0 }
0x1200   :  { %25458 = vmatprep.subr.bf16.mxu1 %v27695_v28 }
0x1201   :  { %v11994_v60 = vand.u32 4294901760, %v11993_v54 }
0x1202   :  { %24003 = vmatmul.mubr.f32.vlgmr.msra.gmra.mrb[10].mxu1 %v27640_v13 }
0x1203   :  { %25460 = vmatpush1.bf16.msra.mxu1 %v27714_v22  ;;  %11943 = vmatprep.mubr.f32.mxu1 %v26738_v1  ;;  %v25469_v56 = vpack.c.bf16 %v12006_v44, %v11994_v60 }
0x1204   :  { %25462 = vmatprep.subr.bf16.mxu1 %v27716_v49 }
0x1207   :  { %25464 = vmatpush1.bf16.msra.mxu1 %v25463_v8 }
0x1208   :  { %25466 = vmatprep.subr.bf16.mxu1 %v25465_v37 }
0x120a   :  { %11949 = vmatmul.mubr.f32.vlgmr.msra.gmra.mrb[12].mxu1 %v27660_v11  ;;  %v25477_v11 = vpack.c.bf16 %v27690_v6, %v27688_v55 }
0x120b   :  { %25468 = vmatpush1.bf16.msra.mxu1 %v25467_v25  ;;  %11954 = vmatprep.mubr.f32.mxu1 %v26738_v1 }
0x120c   :  { %25470 = vmatprep.subr.bf16.mxu1 %v25469_v56 }
0x120e   :  { %11960 = vmatmul.mubr.f32.gmra.mrb[14].mxu1 %v27662_v14  ;;  %v25489_v14 = vpack.c.bf16 %v11980_v4, %v11968_v63 }
0x120f   :  { %25472 = vmatpush1.bf16.msra.mxu1 %v25471_v46  ;;  %12070 = vmatprep.mubr.f32.mxu1 %v26738_v1 }
0x1210   :  { %25474 = vmatprep.subr.bf16.mxu1 %v25473_v42 }
0x1212   :  { %12072 = vmatmul.mubr.f32.vlgmr.msra.gmra.mrb[12].mxu1 %v27642_v17 }
0x1213   :  { %25476 = vmatpush1.bf16.msra.mxu1 %v25475_v51  ;;  %12077 = vmatprep.mubr.f32.mxu1 %v26738_v1 }
0x1214   :  { %25478 = vmatprep.subr.bf16.mxu1 %v25477_v11 }
0x1216   :  { %12079 = vmatmul.mubr.f32.gmra.mrb[14].mxu1 %v27640_v13 }
0x1217   :  { %25480 = vmatpush1.bf16.msra.mxu1 %v25479_v52  ;;  %12165 = vmatprep.mubr.f32.mxu1 %v26738_v1 }
0x1218   :  { %25482 = vmatprep.subr.bf16.mxu1 %v27695_v28 }
0x121a   :  { %12168 = vmatmul.mubr.f32.vlgmr.msra.gmra.mrb[12].mxu1 %v27648_v34  ;;  %v25491_v34 = vpack.c.bf16 %v11986_v19, %v11974_v9 }
0x121b   :  { %25484 = vmatpush1.bf16.msra.mxu1 %v27714_v22  ;;  %12173 = vmatprep.mubr.f32.mxu1 %v26738_v1 }
0x121c   :  { %25486 = vmatprep.subr.bf16.mxu1 %v27716_v49 }
0x121e   :  { %12176 = vmatmul.mubr.f32.gmra.mrb[14].mxu1 %v27645_v10  ;;  %v11285_v10 = vld [vmem:[#allocation5 + $0x36] ss:$0 sm:$0xff] }
0x121f   :  { %25488 = vmatpush1.bf16.msra.mxu1 %v25463_v8  ;;  %12254 = vmatprep.mubr.f32.mxu1 %v26738_v1 }
0x1220   :  { %25490 = vmatprep.subr.bf16.mxu1 %v25489_v14 }
0x1222   :  { %12258 = vmatmul.mubr.f32.vlgmr.msra.gmra.mrb[12].mxu1 %v27654_v5 }
0x1223   :  { %25492 = vmatpush1.bf16.msra.mxu1 %v25491_v34  ;;  %12263 = vmatprep.mubr.f32.mxu1 %v26738_v1 }
0x1224   :  { %25494 = vmatprep.subr.bf16.mxu1 %v25493_v61 }
0x1226   :  { %12267 = vmatmul.mubr.f32.gmra.mrb[14].mxu1 %v27651_v33 }
0x1227   :  { %25496 = vmatpush1.bf16.msra.mxu1 %v25495_v32  ;;  %12361 = vmatprep.mubr.f32.mxu1 %v26738_v1 }
0x1228   :  { %25498 = vmatprep.subr.bf16.mxu1 %v27695_v28 }
0x122a   :  { %12363 = vmatmul.mubr.f32.vlgmr.msra.gmra.mrb[12].mxu1 %v27642_v17 }
0x122b   :  { %25500 = vmatpush1.bf16.msra.mxu1 %v27714_v22  ;;  %12368 = vmatprep.mubr.f32.mxu1 %v26738_v1 }
0x122c   :  { %25502 = vmatprep.subr.bf16.mxu1 %v27716_v49 }
0x122e   :  { %12370 = vmatmul.mubr.f32.gmra.mrb[14].mxu1 %v27640_v13 }
0x122f   :  { %25504 = vmatpush1.bf16.msra.mxu1 %v25463_v8  ;;  %12448 = vmatprep.mubr.f32.mxu1 %v26738_v1 }
0x1232   :  { %12450 = vmatmul.mubr.f32.vlgmr.msra.gmra.mrb[12].mxu1 %v27642_v17 }
0x1233   :  { %12455 = vmatprep.mubr.f32.mxu1 %v26738_v1 }
0x1236   :  { %12457 = vmatmul.mubr.f32.gmra.mrb[14].mxu1 %v27640_v13 }
0x12d5   :  { %v24004_v33 = vpop.f32.mrb[10].mxu1 }
0x12d6   :  { %v27785_v5 = vadd.f32 %v24004_v33, %v11285_v10  ;;  %v11861_v29 = vpop.f32.mrb[11].mxu1 }
0x12d7   :  { %v27787_v41 = vadd.f32 %v11861_v29, %v11285_v10 }
0x12d8   :  { %13007 = vrot.lane.b32.xlu1 %v27785_v5, %s26739_s1  ;;  %v12471_v51 = vsel %vm1748_vm2, %v27785_v5, 0 }
0x12d9   :  { %13005 = vrot.lane.b32.xlu0 %v27787_v41, %s26739_s1  ;;  %v12469_v17 = vsel %vm1748_vm2, %v27787_v41, 0  ;;  %v27876_v29 = vand.u32 4294901760, %v12471_v51 }
0x12da   :  { %v27795_v7 = vand.u32 4294901760, %v12469_v17 }
0x12dc   :  { %13001 = vrot.lane.b32.xlu1 %v27787_v41, %s26740_s8  ;;  %v27800_v1 = vsub.f32 %v12469_v17, %v27795_v7 }
0x12dd   :  { %12465 = vrot.lane.b32.xlu0 %v27787_v41, %s26741_s9 }
0x12de   :  { %v12546_v13 = vand.u32 4294901760, %v27800_v1 }
0x12e0   :  { %13003 = vrot.lane.b32.xlu1 %v27785_v5, %s26740_s8  ;;  %v12547_v27 = vsub.f32 %v27800_v1, %v12546_v13 }
0x12e1   :  { %14569 = vrot.lane.b32.xlu0 %v27787_v41, %s26742_s10 }
0x12e2   :  { %v12548_v24 = vand.u32 4294901760, %v12547_v27 }
0x12e4   :  { %12467 = vrot.lane.b32.xlu1 %v27785_v5, %s26741_s9  ;;  %24009 = vmatprep.mubr.f32.mxu0 %v12548_v24 }
0x12e5   :  { %14565 = vrot.lane.b32.xlu0 %v27787_v41, %s26743_s11 }
0x12e8   :  { %14571 = vrot.lane.b32.xlu1 %v27785_v5, %s26742_s10 }
0x12ec   :  { %14567 = vrot.lane.b32.xlu1 %v27785_v5, %s26743_s11 }
0x1305   :  { %v27820_v18 = vpop.f32.mrb[12].mxu1 }
0x1306   :  { %v14064_v31 = vand.u32 4294901760, %v27820_v18  ;;  %v27823_v47 = vpop.f32.mrb[13].mxu1 }
0x1307   :  { %v17224_v3 = vand.u32 4294901760, %v27823_v47 }
0x1308   :  { %v14152_v50 = vsub.f32 %v27820_v18, %v14064_v31 }
0x1309   :  { %v17312_v20 = vsub.f32 %v27823_v47, %v17224_v3  ;;  %v27828_v15 = vpop.f32.mrb[14].mxu1 }
0x130a   :  { %v14067_v55 = vand.u32 4294901760, %v27828_v15  ;;  %v27831_v6 = vpop.f32.mrb[15].mxu1  ;;  %v14153_v63 = vand.u32 4294901760, %v14152_v50 }
0x130b   :  { %v17227_v4 = vand.u32 4294901760, %v27831_v6  ;;  %v17313_v28 = vand.u32 4294901760, %v17312_v20 }
0x130c   :  { %v27834_v40 = vpack.c.bf16 %v14067_v55, %v14064_v31  ;;  %v14159_v16 = vsub.f32 %v27828_v15, %v14067_v55  ;;  %v14154_v53 = vsub.f32 %v14152_v50, %v14153_v63 }
0x130d   :  { %v27837_v9 = vpack.c.bf16 %v17227_v4, %v17224_v3  ;;  %v17319_v19 = vsub.f32 %v27831_v6, %v17227_v4  ;;  %v17314_v57 = vsub.f32 %v17312_v20, %v17313_v28 }
0x130e   :  { %v14160_v59 = vand.u32 4294901760, %v14159_v16  ;;  %v27840_v36 = vpack.c.bf16 %v14159_v16, %v14152_v50  ;;  %v14155_v0 = vand.u32 4294901760, %v14154_v53 }
0x130f   :  { %v17320_v22 = vand.u32 4294901760, %v17319_v19  ;;  %v27842_v49 = vpack.c.bf16 %v17319_v19, %v17312_v20  ;;  %v17315_v54 = vand.u32 4294901760, %v17314_v57 }
0x1310   :  { %v14161_v58 = vsub.f32 %v14159_v16, %v14160_v59  ;;  %v27844_v12 = vpack.c.bf16 %v14160_v59, %v14153_v63 }
0x1311   :  { %v17321_v39 = vsub.f32 %v17319_v19, %v17320_v22  ;;  %v27846_v43 = vpack.c.bf16 %v17320_v22, %v17313_v28  ;;  %v27892_v28 = vsub.f32 %v12471_v51, %v27876_v29 }
0x1312   :  { %v14162_v30 = vand.u32 4294901760, %v14161_v58 }
0x1313   :  { %v17322_v26 = vand.u32 4294901760, %v17321_v39 }
0x1314   :  { %v27848_v8 = vpack.c.bf16 %v14162_v30, %v14155_v0  ;;  %v12556_v30 = vand.u32 4294901760, %v27892_v28 }
0x1315   :  { %v27850_v2 = vpack.c.bf16 %v17322_v26, %v17315_v54 }
0x134a   :  { %v13008_v48 = vpop.permute.xlu1 %13007 }
0x134b   :  { %v13015_v62 = vsel %vm1748_vm2, %v13008_v48, 0  ;;  %v13006_v35 = vpop.permute.xlu0 %13005 }
0x134c   :  { %v13021_v37 = vand.u32 4294901760, %v13015_v62  ;;  %v13013_v60 = vsel %vm1748_vm2, %v13006_v35, 0 }
0x134d   :  { %v13018_v44 = vand.u32 4294901760, %v13013_v60 }
0x134e   :  { %v27854_v25 = vsub.f32 %v13015_v62, %v13021_v37  ;;  %v13002_v23 = vpop.permute.xlu1 %13001 }
0x134f   :  { %v27856_v21 = vpack.c.bf16 %v13021_v37, %v13018_v44  ;;  %v27858_v56 = vsub.f32 %v13013_v60, %v13018_v44  ;;  %v13009_v46 = vsel %vm1748_vm2, %v13002_v23, 0  ;;  %v12466_v42 = vpop.permute.xlu0 %12465  ;;  %v12557_v37 = vsub.f32 %v27892_v28, %v12556_v30 }
0x1350   :  { %v13114_v11 = vand.u32 4294901760, %v27854_v25  ;;  %v27864_v52 = vand.u32 4294901760, %v13009_v46  ;;  %v12473_v14 = vsel %vm1748_vm2, %v12466_v42, 0 }
0x1351   :  { %v13107_v34 = vand.u32 4294901760, %v27858_v56  ;;  %v12478_v61 = vand.u32 4294901760, %v12473_v14  ;;  %25530 = vmatprep.subr.bf16.mxu1 %v27856_v21  ;;  %v25537_v35 = vpack.c.bf16 %v27854_v25, %v27858_v56  ;;  %v12558_v23 = vand.u32 4294901760, %v12557_v37 }
0x1352   :  { %v13115_v32 = vsub.f32 %v27854_v25, %v13114_v11  ;;  %v27873_v10 = vsub.f32 %v13009_v46, %v27864_v52  ;;  %v13004_v33 = vpop.permute.xlu1 %13003  ;;  %25532 = vmatpush3.bf16.xpose.msra.mxu1 %v27856_v21 }
0x1353   :  { %v13108_v17 = vsub.f32 %v27858_v56, %v13107_v34  ;;  %v13011_v27 = vsel %vm1748_vm2, %v13004_v33, 0  ;;  %v27883_v31 = vsub.f32 %v12473_v14, %v12478_v61  ;;  %v14570_v51 = vpop.permute.xlu0 %14569 }
0x1354   :  { %v13086_v24 = vand.u32 4294901760, %v27873_v10  ;;  %v27885_v3 = vand.u32 4294901760, %v13011_v27  ;;  %v13116_v50 = vand.u32 4294901760, %v13115_v32  ;;  %v14577_v33 = vsel %vm1748_vm2, %v14570_v51, 0 }
0x1355   :  { %v13109_v20 = vand.u32 4294901760, %v13108_v17  ;;  %v12567_v53 = vand.u32 4294901760, %v27883_v31 }
0x1356   :  { %v27888_v55 = vsub.f32 %v13011_v27, %v27885_v3  ;;  %v12468_v63 = vpop.permute.xlu1 %12467  ;;  %v13087_v4 = vsub.f32 %v27873_v10, %v13086_v24 }
0x1357   :  { %v12475_v16 = vsel %vm1748_vm2, %v12468_v63, 0  ;;  %v25533_v19 = vpack.c.bf16 %v13116_v50, %v13109_v20  ;;  %v12568_v54 = vsub.f32 %v27883_v31, %v12567_v53  ;;  %v14566_v32 = vpop.permute.xlu0 %14565 }
0x1358   :  { %v13096_v59 = vand.u32 4294901760, %v27888_v55  ;;  %v12481_v57 = vand.u32 4294901760, %v12475_v16  ;;  %v13088_v22 = vand.u32 4294901760, %v13087_v4  ;;  %v14573_v17 = vsel %vm1748_vm2, %v14566_v32, 0 }
0x1359   :  { %25534 = vmatprep.subr.bf16.mxu1 %v25533_v19  ;;  %v12569_v60 = vand.u32 4294901760, %v12568_v54  ;;  %v27926_v56 = vand.u32 4294901760, %v14573_v17 }
0x135a   :  { %v13097_v58 = vsub.f32 %v27888_v55, %v13096_v59  ;;  %v27898_v39 = vpack.c.bf16 %v12481_v57, %v12478_v61  ;;  %v12573_v0 = vsub.f32 %v12475_v16, %v12481_v57  ;;  %24051 = vmatprep.mubr.f32.mxu1 %v13088_v22  ;;  %v14572_v14 = vpop.permute.xlu1 %14571  ;;  %v25545_v61 = vpack.c.bf16 %v13114_v11, %v13107_v34 }
0x135c   :  { %v13098_v26 = vand.u32 4294901760, %v13097_v58  ;;  %v12574_v48 = vand.u32 4294901760, %v12573_v0  ;;  %25506 = vmatprep.subr.bf16.mxu0 %v27898_v39  ;;  %v25513_v42 = vpack.c.bf16 %v12573_v0, %v27883_v31  ;;  %v14582_v31 = vand.u32 4294901760, %v14577_v33 }
0x135d   :  { %25508 = vmatpush3.bf16.xpose.msra.mxu0 %v27898_v39 }
0x135e   :  { %v12575_v62 = vsub.f32 %v12573_v0, %v12574_v48  ;;  %24052 = vmatmul.mubr.f32.vlgmr.msra.gmra.mrb[16].mxu1 %v13098_v26  ;;  %v25521_v50 = vpack.c.bf16 %v12574_v48, %v12567_v53  ;;  %v14568_v11 = vpop.permute.xlu1 %14567  ;;  %v14670_v34 = vsub.f32 %v14577_v33, %v14582_v31  ;;  %v27951_v26 = vld [vmem:[#allocation5 + $0x50] sm:$0xff] }
0x135f   :  { %25536 = vmatpush3.bf16.xpose.msra.mxu1 %v25533_v19  ;;  %24058 = vmatprep.mubr.f32.mxu1 %v27864_v52  ;;  %v14575_v20 = vsel %vm1748_vm2, %v14568_v11, 0 }
0x1360   :  { %25538 = vmatprep.subr.bf16.mxu1 %v25537_v35  ;;  %v12576_v44 = vand.u32 4294901760, %v12575_v62  ;;  %v14671_v63 = vand.u32 4294901760, %v14670_v34  ;;  %v14658_v4 = vand.u32 4294901760, %v14575_v20 }
0x1362   :  { %v25509_v46 = vpack.c.bf16 %v12576_v44, %v12569_v60  ;;  %v14672_v16 = vsub.f32 %v14670_v34, %v14671_v63  ;;  %v14659_v19 = vsub.f32 %v14575_v20, %v14658_v4 }
0x1364   :  { %24010 = vmatmul.mubr.f32.vlgmr.msra.gmra.mrb[22].mxu0 %v12558_v23  ;;  %25510 = vmatprep.subr.bf16.mxu0 %v25509_v46  ;;  %v14660_v57 = vand.u32 4294901760, %v14659_v19  ;;  %v14673_v22 = vand.u32 4294901760, %v14672_v16 }
0x1365   :  { %25512 = vmatpush3.bf16.xpose.msra.mxu0 %v25509_v46  ;;  %24016 = vmatprep.mubr.f32.mxu0 %v27795_v7 }
0x1366   :  { %25514 = vmatprep.subr.bf16.mxu0 %v25513_v42  ;;  %24059 = vmatmul.mubr.f32.vlgmr.msra.gmra.mrb[16].mxu1 %v27885_v3 }
0x1367   :  { %25540 = vmatpush3.bf16.xpose.msra.mxu1 %v25537_v35  ;;  %24065 = vmatprep.mubr.f32.mxu1 %v27873_v10  ;;  %v14579_v10 = vsel %vm1748_vm2, %v14572_v14, 0 }
0x1368   :  { %25542 = vmatprep.subr.bf16.mxu1 %v27856_v21  ;;  %v14585_v27 = vand.u32 4294901760, %v14579_v10 }
0x136a   :  { %v14677_v25 = vsub.f32 %v14579_v10, %v14585_v27 }
0x136c   :  { %24017 = vmatmul.mubr.f32.vlgmr.msra.gmra.mrb[22].mxu0 %v27876_v29 }
0x136d   :  { %25516 = vmatpush3.bf16.xpose.msra.mxu0 %v25513_v42  ;;  %24023 = vmatprep.mubr.f32.mxu0 %v27800_v1 }
0x136e   :  { %25518 = vmatprep.subr.bf16.mxu0 %v27898_v39  ;;  %24066 = vmatmul.mubr.f32.vlgmr.msra.gmra.mrb[16].mxu1 %v27888_v55  ;;  %v14678_v55 = vand.u32 4294901760, %v14677_v25 }
0x136f   :  { %25544 = vmatpush3.bf16.xpose.msra.mxu1 %v27856_v21  ;;  %24072 = vmatprep.mubr.f32.mxu1 %v13086_v24  ;;  %v14649_v24 = vsub.f32 %v14573_v17, %v27926_v56 }
0x1370   :  { %25546 = vmatprep.subr.bf16.mxu1 %v25545_v61 }
0x1371   :  { %v14650_v1 = vand.u32 4294901760, %v14649_v24 }
0x1373   :  { %v14651_v53 = vsub.f32 %v14649_v24, %v14650_v1 }
0x1374   :  { %24024 = vmatmul.mubr.f32.vlgmr.msra.gmra.mrb[22].mxu0 %v27892_v28  ;;  %v14679_v28 = vsub.f32 %v14677_v25, %v14678_v55 }
0x1375   :  { %25520 = vmatpush3.bf16.xpose.msra.mxu0 %v27898_v39  ;;  %24030 = vmatprep.mubr.f32.mxu0 %v12546_v13  ;;  %v25601_v13 = vpack.c.bf16 %v14585_v27, %v14582_v31  ;;  %v14652_v58 = vand.u32 4294901760, %v14651_v53 }
0x1376   :  { %25522 = vmatprep.subr.bf16.mxu0 %v25521_v50  ;;  %24073 = vmatmul.mubr.f32.vlgmr.msra.gmra.mrb[16].mxu1 %v13096_v59  ;;  %v14680_v59 = vand.u32 4294901760, %v14679_v28 }
0x1377   :  { %25548 = vmatpush3.bf16.xpose.msra.mxu1 %v25545_v61  ;;  %24079 = vmatprep.mubr.f32.mxu1 %v27864_v52 }
0x1378   :  { %25550 = vmatprep.subr.bf16.mxu1 %v27856_v21  ;;  %v25605_v0 = vpack.c.bf16 %v14680_v59, %v14673_v22 }
0x137c   :  { %24031 = vmatmul.mubr.f32.vlgmr.msra.gmra.mrb[22].mxu0 %v12556_v30  ;;  %v25609_v30 = vpack.c.bf16 %v14677_v25, %v14670_v34 }
0x137d   :  { %25524 = vmatpush3.bf16.xpose.msra.mxu0 %v25521_v50  ;;  %24037 = vmatprep.mubr.f32.mxu0 %v27795_v7 }
0x137e   :  { %25526 = vmatprep.subr.bf16.mxu0 %v27898_v39  ;;  %24080 = vmatmul.mubr.f32.vlgmr.msra.gmra.mrb[16].mxu1 %v27885_v3 }
0x137f   :  { %25552 = vmatpush3.bf16.xpose.msra.mxu1 %v27856_v21  ;;  %24086 = vmatprep.mubr.f32.mxu1 %v27864_v52  ;;  %v14661_v21 = vsub.f32 %v14659_v19, %v14660_v57 }
0x1380   :  { %25602 = vmatprep.subr.bf16.mxu1 %v25601_v13 }
0x1381   :  { %v14662_v52 = vand.u32 4294901760, %v14661_v21 }
0x1384   :  { %24038 = vmatmul.mubr.f32.vlgmr.msra.gmra.mrb[22].mxu0 %v27876_v29 }
0x1385   :  { %25528 = vmatpush3.bf16.xpose.msra.mxu0 %v27898_v39  ;;  %24044 = vmatprep.mubr.f32.mxu0 %v27795_v7  ;;  %v25617_v7 = vpack.c.bf16 %v14678_v55, %v14671_v63 }
0x1386   :  { %24087 = vmatmul.mubr.f32.vlgmr.msra.gmra.mrb[16].mxu1 %v27885_v3  ;;  %v27948_v3 = vld [vmem:[#allocation5 + $0x60] sm:$0xff] }
0x1387   :  { %25604 = vmatpush3.bf16.xpose.msra.mxu1 %v25601_v13  ;;  %24177 = vmatprep.mubr.f32.mxu1 %v14652_v58 }
0x1388   :  { %25606 = vmatprep.subr.bf16.mxu1 %v25605_v0 }
0x138c   :  { %24045 = vmatmul.mubr.f32.vlgmr.msra.gmra.mrb[22].mxu0 %v27876_v29 }
0x138e   :  { %24178 = vmatmul.mubr.f32.vlgmr.msra.gmra.mrb[18].mxu1 %v14662_v52 }
0x138f   :  { %25608 = vmatpush3.bf16.xpose.msra.mxu1 %v25605_v0  ;;  %24184 = vmatprep.mubr.f32.mxu1 %v27926_v56 }
0x1390   :  { %25610 = vmatprep.subr.bf16.mxu1 %v25609_v30 }
0x1396   :  { %24185 = vmatmul.mubr.f32.vlgmr.msra.gmra.mrb[18].mxu1 %v14658_v4 }
0x1397   :  { %25612 = vmatpush3.bf16.xpose.msra.mxu1 %v25609_v30  ;;  %24191 = vmatprep.mubr.f32.mxu1 %v14649_v24 }
0x1398   :  { %25614 = vmatprep.subr.bf16.mxu1 %v25601_v13 }
0x139e   :  { %24192 = vmatmul.mubr.f32.vlgmr.msra.gmra.mrb[18].mxu1 %v14659_v19 }
0x139f   :  { %25616 = vmatpush3.bf16.xpose.msra.mxu1 %v25601_v13  ;;  %24198 = vmatprep.mubr.f32.mxu1 %v14650_v1 }
0x13a0   :  { %25618 = vmatprep.subr.bf16.mxu1 %v25617_v7 }
0x13a6   :  { %24199 = vmatmul.mubr.f32.vlgmr.msra.gmra.mrb[18].mxu1 %v14660_v57 }
0x13a7   :  { %25620 = vmatpush3.bf16.xpose.msra.mxu1 %v25617_v7  ;;  %24205 = vmatprep.mubr.f32.mxu1 %v27926_v56 }
0x13a8   :  { %25622 = vmatprep.subr.bf16.mxu1 %v25601_v13 }
0x13ae   :  { %24206 = vmatmul.mubr.f32.vlgmr.msra.gmra.mrb[18].mxu1 %v14658_v4 }
0x13af   :  { %25624 = vmatpush3.bf16.xpose.msra.mxu1 %v25601_v13  ;;  %24212 = vmatprep.mubr.f32.mxu1 %v27926_v56 }
0x13b6   :  { %24213 = vmatmul.mubr.f32.vlgmr.msra.gmra.mrb[18].mxu1 %v14658_v4 }
0x1459   :  { %v24088_v29 = vpop.f32.mrb[16].mxu1 }
0x145a   :  { %v26013_v39 = vadd.f32 %v27948_v3, %v24088_v29  ;;  %v13509_v54 = vpop.f32.mrb[17].mxu1 }
0x145b   :  { %v26014_v48 = vadd.f32 %v27951_v26, %v13509_v54 }
0x145c   :  { %v13522_v62 = vsel %vm47_vm0, %v26013_v39, -inf }
0x145d   :  { %13523 = vmax.xlane.f32.xlu1 %v13522_v62  ;;  %v13519_v35 = vsel %vm47_vm0, %v26014_v48, -inf }
0x145e   :  { %13520 = vmax.xlane.f32.xlu0 %v13519_v35 }
0x145f   :  { %v24046_v37 = vpop.f32.mrb[22].mxu0 }
0x1460   :  { %v12969_v60 = vpop.f32.mrb[23].mxu0  ;;  %v26011_v23 = vadd.f32 %v27948_v3, %v24046_v37 }
0x1461   :  { %v26012_v44 = vadd.f32 %v27951_v26, %v12969_v60 }
0x1462   :  { %v12982_v42 = vsel %vm47_vm0, %v26011_v23, -inf }
0x1463   :  { %v12979_v46 = vsel %vm47_vm0, %v26012_v44, -inf }
0x1464   :  { %12980 = vmax.xlane.f32.xlu0 %v12979_v46 }
0x1468   :  { %12983 = vmax.xlane.f32.xlu0 %v12982_v42 }
0x1489   :  { %v24214_v51 = vpop.f32.mrb[18].mxu1 }
0x148a   :  { %v26015_v14 = vadd.f32 %v27948_v3, %v24214_v51  ;;  %v15073_v61 = vpop.f32.mrb[19].mxu1 }
0x148b   :  { %v26016_v32 = vadd.f32 %v27951_v26, %v15073_v61 }
0x148c   :  { %v15086_v10 = vsel %vm47_vm0, %v26015_v14, -inf }
0x148d   :  { %15087 = vmax.xlane.f32.xlu1 %v15086_v10  ;;  %v15083_v33 = vsel %vm47_vm0, %v26016_v32, -inf }
0x148e   :  { %15084 = vmax.xlane.f32.xlu0 %v15083_v33 }
0x14ea   :  { %v13524_v17 = vpop.xlane.xlu1 %13523 }
0x14eb   :  { %v13526_v27 = vsub.f32 %v26013_v39, %v13524_v17  ;;  %v13521_v31 = vpop.xlane.xlu0 %13520 }
0x14ec   :  { %v13525_v50 = vsub.f32 %v26014_v48, %v13521_v31 }
0x14ed   :  { %v13529_v56 = vmul.f32 1.442695, %v13526_v27 }
0x14ee   :  { %v13527_v25 = vmul.f32 1.442695, %v13525_v50 }
0x14ef   :  { %26586 = vpow2.f32 %v13529_v56 }
0x14f0   :  { %26588 = vpow2.f32 %v13527_v25 }
0x14f1   :  { %v12981_v55 = vpop.xlane.xlu0 %12980 }
0x14f2   :  { %v12985_v4 = vsub.f32 %v26012_v44, %v12981_v55 }
0x14f4   :  { %v12987_v16 = vmul.f32 1.442695, %v12985_v4 }
0x14f5   :  { %v12984_v63 = vpop.xlane.xlu0 %12983 }
0x14f6   :  { %v12986_v1 = vsub.f32 %v26011_v23, %v12984_v63  ;;  %26590 = vpow2.f32 %v12987_v16 }
0x14f8   :  { %v12989_v53 = vmul.f32 1.442695, %v12986_v1 }
0x14f9   :  { %v27964_v11 = vpop.eup %26586 }
0x14fa   :  { %v27966_v34 = vpop.eup %26588  ;;  %v13534_v24 = vsel %vm47_vm0, %v27964_v11, 0.0  ;;  %26592 = vpow2.f32 %v12989_v53 }
0x14fb   :  { %13535 = vadd.xlane.f32.xlu1 %v13534_v24  ;;  %v13531_v20 = vsel %vm47_vm0, %v27966_v34, 0.0 }
0x14fc   :  { %13532 = vadd.xlane.f32.xlu0 %v13531_v20 }
0x1500   :  { %v27976_v58 = vpop.eup %26590 }
0x1501   :  { %v12991_v21 = vsel %vm47_vm0, %v27976_v58, 0.0 }
0x1504   :  { %v27978_v0 = vpop.eup %26592 }
0x1505   :  { %v12994_v30 = vsel %vm47_vm0, %v27978_v0, 0.0 }
0x150c   :  { %13545 = vrot.lane.b32.xlu1 %v27828_v15, %s26741_s9 }
0x1512   :  { %13543 = vrot.lane.b32.xlu0 %v27820_v18, %s26741_s9 }
0x151a   :  { %v15088_v13 = vpop.xlane.xlu1 %15087 }
0x151b   :  { %v15085_v28 = vpop.xlane.xlu0 %15084  ;;  %v15090_v19 = vsub.f32 %v26015_v14, %v15088_v13 }
0x151c   :  { %v15089_v59 = vsub.f32 %v26016_v32, %v15085_v28 }
0x151d   :  { %v15093_v57 = vmul.f32 1.442695, %v15090_v19 }
0x151e   :  { %v15091_v22 = vmul.f32 1.442695, %v15089_v59 }
0x151f   :  { %26594 = vpow2.f32 %v15093_v57 }
0x1520   :  { %26596 = vpow2.f32 %v15091_v22 }
0x1529   :  { %v27982_v52 = vpop.eup %26594 }
0x152a   :  { %v27986_v7 = vpop.eup %26596  ;;  %v15098_v29 = vsel %vm47_vm0, %v27982_v52, 0.0 }
0x152b   :  { %v15095_v39 = vsel %vm47_vm0, %v27986_v7, 0.0 }
0x1530   :  { %12992 = vadd.xlane.f32.xlu1 %v12991_v21 }
0x1531   :  { %12995 = vadd.xlane.f32.xlu0 %v12994_v30 }
0x1534   :  { %15099 = vadd.xlane.f32.xlu1 %v15098_v29 }
0x1535   :  { %15096 = vadd.xlane.f32.xlu0 %v15095_v39 }
0x1545   :  { %15107 = vrot.lane.b32.xlu1 %v27828_v15, %s26746_s14 }
0x1549   :  { %15625 = vrot.lane.b32.xlu1 %v27787_v41, %s26744_s12 }
0x154b   :  { %15105 = vrot.lane.b32.xlu0 %v27820_v18, %s26746_s14 }
0x154d   :  { %15627 = vrot.lane.b32.xlu1 %v27785_v5, %s26744_s12 }
0x154f   :  { %15621 = vrot.lane.b32.xlu0 %v27787_v41, %s26745_s13 }
0x1551   :  { %15623 = vrot.lane.b32.xlu1 %v27785_v5, %s26745_s13 }
0x1553   :  { %16681 = vrot.lane.b32.xlu0 %v27787_v41, %s26748_s16 }
0x1555   :  { %16683 = vrot.lane.b32.xlu1 %v27785_v5, %s26748_s16 }
0x1557   :  { %16677 = vrot.lane.b32.xlu0 %v27787_v41, %s26749_s17 }
0x1559   :  { %16679 = vrot.lane.b32.xlu1 %v27785_v5, %s26749_s17 }
0x155b   :  { %17731 = vrot.lane.b32.xlu0 %v27787_v41, %s26750_s18 }
0x155d   :  { %17733 = vrot.lane.b32.xlu1 %v27785_v5, %s26750_s18 }
0x155f   :  { %17727 = vrot.lane.b32.xlu0 %v27787_v41, %s26751_s21 }
0x1561   :  { %17729 = vrot.lane.b32.xlu1 %v27785_v5, %s26751_s21 }
0x1563   :  { %18789 = vrot.lane.b32.xlu0 %v27787_v41, %s26752_s22 }
0x1565   :  { %18791 = vrot.lane.b32.xlu1 %v27785_v5, %s26752_s22 }
0x1567   :  { %18785 = vrot.lane.b32.xlu0 %v27787_v41, %s26753_s23 }
0x1569   :  { %18787 = vrot.lane.b32.xlu1 %v27785_v5, %s26753_s23 }
0x1588   :  { %v13536_v54 = vpop.xlane.xlu1 %13535 }
0x1589   :  { %26598 = vrcp.f32 %v13536_v54  ;;  %v13533_v48 = vpop.xlane.xlu0 %13532 }
0x158a   :  { %26600 = vrcp.f32 %v13533_v48 }
0x158c   :  { %v13546_v62 = vpop.permute.xlu1 %13545 }
0x158d   :  { %v13559_v35 = vand.u32 4294901760, %v13546_v62  ;;  %v13544_v37 = vpop.permute.xlu0 %13543 }
0x158e   :  { %v13556_v60 = vand.u32 4294901760, %v13544_v37 }
0x158f   :  { %v13651_v44 = vsub.f32 %v13546_v62, %v13559_v35 }
0x1590   :  { %v25553_v23 = vpack.c.bf16 %v13559_v35, %v13556_v60  ;;  %v13644_v46 = vsub.f32 %v13544_v37, %v13556_v60 }
0x1591   :  { %v13652_v42 = vand.u32 4294901760, %v13651_v44 }
0x1592   :  { %v13645_v51 = vand.u32 4294901760, %v13644_v46  ;;  %25554 = vmatprep.subr.bf16.mxu0 %v25553_v23 }
0x1593   :  { %v26599_v14 = vpop.eup %26598  ;;  %v13653_v61 = vsub.f32 %v13651_v44, %v13652_v42  ;;  %25556 = vmatpush3.bf16.msra.mxu0 %v25553_v23 }
0x1594   :  { %v26601_v32 = vpop.eup %26600  ;;  %v13540_v10 = vmul.f32 %v26599_v14, %v27964_v11  ;;  %v13646_v33 = vsub.f32 %v13644_v46, %v13645_v51  ;;  %v25569_v19 = vpack.c.bf16 %v13652_v42, %v13645_v51 }
0x1595   :  { %v13538_v17 = vmul.f32 %v26601_v32, %v27966_v34  ;;  %v13654_v27 = vand.u32 4294901760, %v13653_v61  ;;  %v25561_v34 = vpack.c.bf16 %v13651_v44, %v13644_v46 }
0x1596   :  { %v13647_v31 = vand.u32 4294901760, %v13646_v33  ;;  %v13553_v50 = vsel %vm47_vm0, %v13540_v10, 0 }
0x1597   :  { %v13550_v56 = vsel %vm47_vm0, %v13538_v17, 0  ;;  %v13632_v25 = vand.u32 4294901760, %v13553_v50 }
0x1598   :  { %v25557_v24 = vpack.c.bf16 %v13654_v27, %v13647_v31  ;;  %v13622_v20 = vand.u32 4294901760, %v13550_v56 }
0x1599   :  { %v13633_v55 = vsub.f32 %v13553_v50, %v13632_v25 }
0x159a   :  { %25558 = vmatprep.subr.bf16.mxu0 %v25557_v24  ;;  %v13623_v63 = vsub.f32 %v13550_v56, %v13622_v20 }
0x159b   :  { %v13634_v4 = vand.u32 4294901760, %v13633_v55 }
0x159c   :  { %v13624_v1 = vand.u32 4294901760, %v13623_v63 }
0x159d   :  { %v13635_v13 = vsub.f32 %v13633_v55, %v13634_v4 }
0x159e   :  { %v13625_v28 = vsub.f32 %v13623_v63, %v13624_v1 }
0x159f   :  { %v13636_v16 = vand.u32 4294901760, %v13635_v13 }
0x15a0   :  { %v13626_v11 = vand.u32 4294901760, %v13625_v28 }
0x15a2   :  { %24093 = vmatprep.mubr.f32.mxu0 %v13626_v11 }
0x15a3   :  { %24094 = vmatmul.mubr.f32.vlgmr.msra.gmra.mrb[24].mxu0 %v13636_v16 }
0x15a4   :  { %25560 = vmatpush3.bf16.msra.mxu0 %v25557_v24  ;;  %24100 = vmatprep.mubr.f32.mxu0 %v13622_v20 }
0x15a5   :  { %25562 = vmatprep.subr.bf16.mxu0 %v25561_v34 }
0x15ab   :  { %24101 = vmatmul.mubr.f32.vlgmr.msra.gmra.mrb[24].mxu0 %v13632_v25 }
0x15ac   :  { %25564 = vmatpush3.bf16.msra.mxu0 %v25561_v34  ;;  %24107 = vmatprep.mubr.f32.mxu0 %v13623_v63 }
0x15ad   :  { %25566 = vmatprep.subr.bf16.mxu0 %v25553_v23 }
0x15b3   :  { %24108 = vmatmul.mubr.f32.vlgmr.msra.gmra.mrb[24].mxu0 %v13633_v55 }
0x15b4   :  { %25568 = vmatpush3.bf16.msra.mxu0 %v25553_v23  ;;  %24114 = vmatprep.mubr.f32.mxu0 %v13624_v1 }
0x15b5   :  { %25570 = vmatprep.subr.bf16.mxu0 %v25569_v19 }
0x15bb   :  { %24115 = vmatmul.mubr.f32.vlgmr.msra.gmra.mrb[24].mxu0 %v13634_v4 }
0x15bc   :  { %25572 = vmatpush3.bf16.msra.mxu0 %v25569_v19  ;;  %24121 = vmatprep.mubr.f32.mxu0 %v13622_v20 }
0x15bd   :  { %25574 = vmatprep.subr.bf16.mxu0 %v25553_v23  ;;  %v12993_v53 = vpop.xlane.xlu1 %12992 }
0x15be   :  { %26602 = vrcp.f32 %v12993_v53  ;;  %v12996_v59 = vpop.xlane.xlu0 %12995 }
0x15bf   :  { %26604 = vrcp.f32 %v12996_v59 }
0x15c1   :  { %v28032_v57 = vpop.xlane.xlu1 %15099 }
0x15c2   :  { %v15097_v22 = vpop.xlane.xlu0 %15096 }
0x15c3   :  { %24122 = vmatmul.mubr.f32.vlgmr.msra.gmra.mrb[24].mxu0 %v13632_v25  ;;  %26606 = vrcp.f32 %v15097_v22 }
0x15c4   :  { %25576 = vmatpush3.bf16.msra.mxu0 %v25553_v23  ;;  %24128 = vmatprep.mubr.f32.mxu0 %v13622_v20  ;;  %26608 = vrcp.f32 %v28032_v57 }
0x15c5   :  { %25578 = vmatprep.subr.bf16.mxu0 %v27834_v40  ;;  %v28035_v21 = vpop.permute.xlu1 %15107 }
0x15c6   :  { %v28037_v30 = vpop.permute.xlu0 %15105 }
0x15c8   :  { %v26603_v29 = vpop.eup %26602 }
0x15c9   :  { %v26605_v39 = vpop.eup %26604  ;;  %v12998_v54 = vmul.f32 %v26603_v29, %v27976_v58  ;;  %v15626_v48 = vpop.permute.xlu1 %15625 }
0x15ca   :  { %v13000_v62 = vmul.f32 %v26605_v39, %v27978_v0  ;;  %v28041_v35 = vpop.permute.xlu0 %15621  ;;  %v15633_v60 = vsel %vm1748_vm2, %v15626_v48, 0 }
0x15cb   :  { %24129 = vmatmul.mubr.f32.vlgmr.msra.gmra.mrb[24].mxu0 %v13632_v25  ;;  %v14058_v37 = vsel %vm47_vm0, %v12998_v54, 0  ;;  %v15638_v14 = vand.u32 4294901760, %v15633_v60 }
0x15cc   :  { %25580 = vmatpush3.bf16.msra.mxu0 %v27834_v40  ;;  %v28046_v44 = vand.u32 4294901760, %v14058_v37  ;;  %v14061_v23 = vsel %vm47_vm0, %v13000_v62, 0 }
0x15cd   :  { %25582 = vmatprep.subr.bf16.mxu0 %v27848_v8  ;;  %v15628_v46 = vpop.permute.xlu1 %15627  ;;  %v28050_v58 = vand.u32 4294901760, %v14061_v23 }
0x15ce   :  { %v15635_v0 = vsel %vm1748_vm2, %v15628_v46, 0  ;;  %v16682_v42 = vpop.permute.xlu0 %16681  ;;  %v28054_v51 = vsub.f32 %v14058_v37, %v28046_v44  ;;  %v15726_v46 = vsub.f32 %v15633_v60, %v15638_v14 }
0x15cf   :  { %v15641_v61 = vand.u32 4294901760, %v15635_v0  ;;  %v16689_v32 = vsel %vm1748_vm2, %v16682_v42, 0  ;;  %v28058_v10 = vsub.f32 %v14061_v23, %v28050_v58 }
0x15d0   :  { %v16694_v33 = vand.u32 4294901760, %v16689_v32  ;;  %v14132_v17 = vand.u32 4294901760, %v28054_v51 }
0x15d1   :  { %v28061_v27 = vpack.c.bf16 %v15641_v61, %v15638_v14  ;;  %v28063_v31 = vpop.permute.xlu1 %15623  ;;  %v14142_v50 = vand.u32 4294901760, %v28058_v10  ;;  %v15733_v42 = vsub.f32 %v15635_v0, %v15641_v61  ;;  %v15727_v0 = vand.u32 4294901760, %v15726_v46 }
0x15d2   :  { %v16678_v56 = vpop.permute.xlu0 %16677  ;;  %v14133_v25 = vsub.f32 %v28054_v51, %v14132_v17  ;;  %v28069_v24 = vsub.f32 %v16689_v32, %v16694_v33 }
0x15d3   :  { %v16685_v20 = vsel %vm1748_vm2, %v16678_v56, 0  ;;  %v14143_v55 = vsub.f32 %v28058_v10, %v14142_v50  ;;  %v15734_v14 = vand.u32 4294901760, %v15733_v42 }
0x15d4   :  { %v28075_v63 = vand.u32 4294901760, %v16685_v20  ;;  %v14134_v4 = vand.u32 4294901760, %v14133_v25  ;;  %v16783_v16 = vand.u32 4294901760, %v28069_v24 }
0x15d5   :  { %v16684_v1 = vpop.permute.xlu1 %16683  ;;  %v14144_v13 = vand.u32 4294901760, %v14143_v55  ;;  %v15728_v55 = vsub.f32 %v15726_v46, %v15727_v0 }
0x15d6   :  { %v28078_v28 = vsub.f32 %v16685_v20, %v28075_v63  ;;  %v16691_v11 = vsel %vm1748_vm2, %v16684_v1, 0  ;;  %24135 = vmatprep.mubr.f32.mxu0 %v14134_v4  ;;  %v26607_v20 = vpop.eup %26606  ;;  %v15735_v4 = vsub.f32 %v15733_v42, %v15734_v14 }
0x15d7   :  { %v16697_v34 = vand.u32 4294901760, %v16691_v11  ;;  %24136 = vmatmul.mubr.f32.vlgmr.msra.gmra.mrb[24].mxu0 %v14144_v13  ;;  %v15102_v57 = vmul.f32 %v26607_v20, %v27986_v7  ;;  %v15729_v1 = vand.u32 4294901760, %v15728_v55 }
0x15d8   :  { %v16762_v19 = vand.u32 4294901760, %v28078_v28  ;;  %25584 = vmatpush3.bf16.msra.mxu0 %v27848_v8  ;;  %24142 = vmatprep.mubr.f32.mxu0 %v28046_v44  ;;  %v16784_v8 = vsub.f32 %v28069_v24, %v16783_v16  ;;  %v15736_v13 = vand.u32 4294901760, %v15735_v4 }
0x15d9   :  { %v28085_v53 = vpack.c.bf16 %v16697_v34, %v16694_v33  ;;  %v28087_v59 = vsub.f32 %v16691_v11, %v16697_v34  ;;  %25586 = vmatprep.subr.bf16.mxu0 %v27840_v36  ;;  %v16680_v29 = vpop.permute.xlu1 %16679  ;;  %v28126_v11 = vpack.c.bf16 %v15733_v42, %v15726_v46  ;;  %v26609_v34 = vpop.eup %26608  ;;  %v15112_v7 = vsel %vm47_vm0, %v15102_v57, 0 }
0x15da   :  { %v16687_v39 = vsel %vm1748_vm2, %v16680_v29, 0  ;;  %v16763_v54 = vsub.f32 %v28078_v28, %v16762_v19  ;;  %v16785_v33 = vand.u32 4294901760, %v16784_v8  ;;  %v15121_v29 = vand.u32 4294901760, %v28035_v21  ;;  %v17732_v46 = vpop.permute.xlu0 %17731 }
0x15db   :  { %v16790_v48 = vand.u32 4294901760, %v28087_v59  ;;  %v28098_v62 = vand.u32 4294901760, %v16687_v39  ;;  %25698 = vmatprep.subr.bf16.mxu1 %v28085_v53  ;;  %v28133_v8 = vpack.c.bf16 %v15734_v14, %v15727_v0 }
0x15dc   :  { %25700 = vmatpush3.bf16.xpose.msra.mxu1 %v28085_v53  ;;  %v16764_v37 = vand.u32 4294901760, %v16763_v54  ;;  %v28131_v54 = vpack.c.bf16 %v15736_v13, %v15729_v1 }
0x15dd   :  { %v16791_v22 = vsub.f32 %v28087_v59, %v16790_v48  ;;  %v28106_v23 = vsub.f32 %v16687_v39, %v28098_v62  ;;  %v15118_v39 = vand.u32 4294901760, %v28037_v30 }
0x15de   :  { %24345 = vmatprep.mubr.f32.mxu1 %v16764_v37  ;;  %v28141_v37 = vsub.f32 %v28035_v21, %v15121_v29 }
0x15df   :  { %v16772_v32 = vand.u32 4294901760, %v28106_v23  ;;  %24143 = vmatmul.mubr.f32.vlgmr.msra.gmra.mrb[24].mxu0 %v28050_v58  ;;  %v16792_v56 = vand.u32 4294901760, %v16791_v22  ;;  %v28144_v22 = vsub.f32 %v28037_v30, %v15118_v39 }
0x15e0   :  { %25588 = vmatpush3.bf16.msra.mxu0 %v27840_v36  ;;  %24149 = vmatprep.mubr.f32.mxu0 %v28054_v51  ;;  %v25705_v36 = vpack.c.bf16 %v28087_v59, %v28069_v24  ;;  %v15104_v51 = vmul.f32 %v26609_v34, %v27982_v52  ;;  %v15214_v30 = vand.u32 4294901760, %v28141_v37  ;;  %v28173_v24 = vpack.c.bf16 %v15121_v29, %v15118_v39 }
0x15e1   :  { %v16773_v25 = vsub.f32 %v28106_v23, %v16772_v32  ;;  %25590 = vmatprep.subr.bf16.mxu0 %v27834_v40  ;;  %v25701_v60 = vpack.c.bf16 %v16792_v56, %v16785_v33  ;;  %v15207_v42 = vand.u32 4294901760, %v28144_v22  ;;  %v17734_v33 = vpop.permute.xlu1 %17733  ;;  %v17739_v59 = vsel %vm1748_vm2, %v17732_v46, 0 }
0x15e2   :  { %v15115_v21 = vsel %vm47_vm0, %v15104_v51, 0  ;;  %v17741_v56 = vsel %vm1748_vm2, %v17734_v33, 0  ;;  %v17744_v14 = vand.u32 4294901760, %v17739_v59 }
0x15e3   :  { %v16774_v61 = vand.u32 4294901760, %v16773_v25  ;;  %25702 = vmatprep.subr.bf16.mxu1 %v25701_v60 }
0x15e4   :  { %v28198_v57 = vsub.f32 %v17739_v59, %v17744_v14 }
0x15e5   :  { %24346 = vmatmul.mubr.f32.vlgmr.msra.gmra.mrb[20].mxu1 %v16774_v61 }
0x15e6   :  { %25704 = vmatpush3.bf16.xpose.msra.mxu1 %v25701_v60  ;;  %24352 = vmatprep.mubr.f32.mxu1 %v28075_v63  ;;  %v15215_v60 = vsub.f32 %v28141_v37, %v15214_v30  ;;  %v17833_v29 = vand.u32 4294901760, %v28198_v57 }
0x15e7   :  { %25706 = vmatprep.subr.bf16.mxu1 %v25705_v36  ;;  %24150 = vmatmul.mubr.f32.vlgmr.msra.gmra.mrb[24].mxu0 %v28058_v10  ;;  %v28163_v10 = vand.u32 4294901760, %v15115_v21 }
0x15e8   :  { %25592 = vmatpush3.bf16.msra.mxu0 %v27834_v40  ;;  %24156 = vmatprep.mubr.f32.mxu0 %v14132_v17  ;;  %v28138_v17 = vand.u32 4294901760, %v15112_v7  ;;  %v15216_v20 = vand.u32 4294901760, %v15215_v60 }
0x15e9   :  { %25594 = vmatprep.subr.bf16.mxu0 %v27844_v12 }
0x15ea   :  { %v28153_v52 = vsub.f32 %v15112_v7, %v28138_v17 }
0x15ec   :  { %v15186_v25 = vand.u32 4294901760, %v28153_v52 }
0x15ed   :  { %24353 = vmatmul.mubr.f32.vlgmr.msra.gmra.mrb[20].mxu1 %v28098_v62 }
0x15ee   :  { %25708 = vmatpush3.bf16.xpose.msra.mxu1 %v25705_v36  ;;  %24359 = vmatprep.mubr.f32.mxu1 %v28078_v28  ;;  %v15187_v0 = vsub.f32 %v28153_v52, %v15186_v25 }
0x15ef   :  { %25710 = vmatprep.subr.bf16.mxu1 %v28085_v53  ;;  %24157 = vmatmul.mubr.f32.vlgmr.msra.gmra.mrb[24].mxu0 %v14142_v50  ;;  %v17728_v50 = vpop.permute.xlu0 %17727 }
0x15f0   :  { %25596 = vmatpush3.bf16.msra.mxu0 %v27844_v12  ;;  %24163 = vmatprep.mubr.f32.mxu0 %v28046_v44  ;;  %v25713_v12 = vpack.c.bf16 %v16790_v48, %v16783_v16  ;;  %v15208_v16 = vsub.f32 %v28144_v22, %v15207_v42  ;;  %v17735_v28 = vsel %vm1748_vm2, %v17728_v50, 0  ;;  %v28185_v48 = vsub.f32 %v15115_v21, %v28163_v10 }
0x15f1   :  { %25598 = vmatprep.subr.bf16.mxu0 %v27834_v40  ;;  %v28190_v36 = vand.u32 4294901760, %v17735_v28  ;;  %v15188_v4 = vand.u32 4294901760, %v15187_v0  ;;  %v17834_v21 = vsub.f32 %v28198_v57, %v17833_v29  ;;  %v15629_v0 = vsel %vm1748_vm2, %v28041_v35, 0 }
0x15f2   :  { %v15209_v61 = vand.u32 4294901760, %v15208_v16  ;;  %v15196_v55 = vand.u32 4294901760, %v28185_v48 }
0x15f3   :  { %v28203_v13 = vsub.f32 %v17735_v28, %v28190_v36 }
0x15f4   :  { %v25629_v1 = vpack.c.bf16 %v15216_v20, %v15209_v61 }
0x15f5   :  { %24360 = vmatmul.mubr.f32.vlgmr.msra.gmra.mrb[20].mxu1 %v28106_v23 }
0x15f6   :  { %25712 = vmatpush3.bf16.xpose.msra.mxu1 %v28085_v53  ;;  %24366 = vmatprep.mubr.f32.mxu1 %v16762_v19  ;;  %v17747_v19 = vand.u32 4294901760, %v17741_v56 }
0x15f7   :  { %25714 = vmatprep.subr.bf16.mxu1 %v25713_v12  ;;  %24164 = vmatmul.mubr.f32.vlgmr.msra.gmra.mrb[24].mxu0 %v28050_v58 }
0x15f8   :  { %25600 = vmatpush3.bf16.msra.mxu0 %v27834_v40  ;;  %24170 = vmatprep.mubr.f32.mxu0 %v28046_v44  ;;  %v28192_v40 = vsub.f32 %v17741_v56, %v17747_v19  ;;  %v17730_v44 = vpop.permute.xlu1 %17729  ;;  %v28215_v7 = vpack.c.bf16 %v17747_v19, %v17744_v14  ;;  %v17835_v56 = vand.u32 4294901760, %v17834_v21  ;;  %v28251_v14 = vand.u32 4294901760, %v15629_v0 }
0x15f9   :  { %25626 = vmatprep.subr.bf16.mxu0 %v28173_v24  ;;  %v17737_v34 = vsel %vm1748_vm2, %v17730_v44, 0 }
0x15fa   :  { %v17840_v23 = vand.u32 4294901760, %v28192_v40  ;;  %v28212_v39 = vand.u32 4294901760, %v17737_v34  ;;  %v25753_v19 = vpack.c.bf16 %v28192_v40, %v28198_v57  ;;  %v28260_v35 = vsub.f32 %v15629_v0, %v28251_v14 }
0x15fc   :  { %v17841_v51 = vsub.f32 %v28192_v40, %v17840_v23  ;;  %v28223_v33 = vsub.f32 %v17737_v34, %v28212_v39 }
0x15fd   :  { %24367 = vmatmul.mubr.f32.vlgmr.msra.gmra.mrb[20].mxu1 %v16772_v32  ;;  %v15197_v32 = vsub.f32 %v28185_v48, %v15196_v55 }
0x15fe   :  { %25716 = vmatpush3.bf16.xpose.msra.mxu1 %v25713_v12  ;;  %24373 = vmatprep.mubr.f32.mxu1 %v28075_v63  ;;  %v25633_v12 = vpack.c.bf16 %v28141_v37, %v28144_v22  ;;  %v18790_v37 = vpop.permute.xlu0 %18789  ;;  %v15631_v22 = vsel %vm1748_vm2, %v28063_v31, 0 }
0x15ff   :  { %25718 = vmatprep.subr.bf16.mxu1 %v28085_v53  ;;  %24171 = vmatmul.mubr.f32.vlgmr.msra.gmra.mrb[24].mxu0 %v28050_v58  ;;  %v17812_v58 = vand.u32 4294901760, %v28203_v13  ;;  %v15198_v46 = vand.u32 4294901760, %v15197_v32  ;;  %v18797_v20 = vsel %vm1748_vm2, %v18790_v37, 0 }
0x1600   :  { %25628 = vmatpush3.bf16.msra.mxu0 %v28173_v24  ;;  %24219 = vmatprep.mubr.f32.mxu0 %v15188_v4  ;;  %v18802_v4 = vand.u32 4294901760, %v18797_v20 }
0x1601   :  { %25630 = vmatprep.subr.bf16.mxu0 %v25629_v1  ;;  %v17813_v50 = vsub.f32 %v28203_v13, %v17812_v58 }
0x1602   :  { %v18890_v34 = vsub.f32 %v18797_v20, %v18802_v4 }
0x1603   :  { %v17814_v60 = vand.u32 4294901760, %v17813_v50 }
0x1605   :  { %24374 = vmatmul.mubr.f32.vlgmr.msra.gmra.mrb[20].mxu1 %v28098_v62 }
0x1606   :  { %25720 = vmatpush3.bf16.xpose.msra.mxu1 %v28085_v53  ;;  %24380 = vmatprep.mubr.f32.mxu1 %v28075_v63  ;;  %v17842_v53 = vand.u32 4294901760, %v17841_v51  ;;  %v17822_v63 = vand.u32 4294901760, %v28223_v33  ;;  %v18891_v51 = vand.u32 4294901760, %v18890_v34 }
0x1607   :  { %25746 = vmatprep.subr.bf16.mxu1 %v28215_v7  ;;  %24220 = vmatmul.mubr.f32.vlgmr.msra.gmra.mrb[24].mxu0 %v15198_v46 }
0x1608   :  { %25632 = vmatpush3.bf16.msra.mxu0 %v25629_v1  ;;  %24226 = vmatprep.mubr.f32.mxu0 %v28138_v17  ;;  %v25749_v16 = vpack.c.bf16 %v17842_v53, %v17835_v56  ;;  %v17823_v59 = vsub.f32 %v28223_v33, %v17822_v63  ;;  %v18892_v50 = vsub.f32 %v18890_v34, %v18891_v51 }
0x1609   :  { %25634 = vmatprep.subr.bf16.mxu0 %v25633_v12 }
0x160a   :  { %v17824_v28 = vand.u32 4294901760, %v17823_v59 }
0x160d   :  { %24381 = vmatmul.mubr.f32.vlgmr.msra.gmra.mrb[20].mxu1 %v28098_v62  ;;  %v25641_v62 = vpack.c.bf16 %v15214_v30, %v15207_v42  ;;  %v25761_v30 = vpack.c.bf16 %v17840_v23, %v17833_v29  ;;  %v15706_v42 = vand.u32 4294901760, %v28260_v35 }
0x160e   :  { %25748 = vmatpush3.bf16.xpose.msra.mxu1 %v28215_v7  ;;  %24429 = vmatprep.mubr.f32.mxu1 %v17814_v60 }
0x160f   :  { %25750 = vmatprep.subr.bf16.mxu1 %v25749_v16  ;;  %24227 = vmatmul.mubr.f32.vlgmr.msra.gmra.mrb[24].mxu0 %v28163_v10 }
0x1610   :  { %25636 = vmatpush3.bf16.msra.mxu0 %v25633_v12  ;;  %24233 = vmatprep.mubr.f32.mxu0 %v28153_v52  ;;  %v18792_v52 = vpop.permute.xlu1 %18791 }
0x1611   :  { %25638 = vmatprep.subr.bf16.mxu0 %v28173_v24  ;;  %v18799_v61 = vsel %vm1748_vm2, %v18792_v52, 0 }
0x1612   :  { %v18805_v40 = vand.u32 4294901760, %v18799_v61 }
0x1614   :  { %v28284_v1 = vsub.f32 %v18799_v61, %v18805_v40 }
0x1615   :  { %24430 = vmatmul.mubr.f32.vlgmr.msra.gmra.mrb[22].mxu1 %v17824_v28 }
0x1616   :  { %25752 = vmatpush3.bf16.xpose.msra.mxu1 %v25749_v16  ;;  %24436 = vmatprep.mubr.f32.mxu1 %v28190_v36  ;;  %v18898_v29 = vand.u32 4294901760, %v28284_v1  ;;  %v18893_v16 = vand.u32 4294901760, %v18892_v50  ;;  %v25801_v28 = vpack.c.bf16 %v28284_v1, %v18890_v34 }
0x1617   :  { %25754 = vmatprep.subr.bf16.mxu1 %v25753_v19  ;;  %24234 = vmatmul.mubr.f32.vlgmr.msra.gmra.mrb[24].mxu0 %v28185_v48  ;;  %v18786_v48 = vpop.permute.xlu0 %18785 }
0x1618   :  { %25640 = vmatpush3.bf16.msra.mxu0 %v28173_v24  ;;  %24240 = vmatprep.mubr.f32.mxu0 %v15186_v25  ;;  %v28266_v25 = vand.u32 4294901760, %v15631_v22  ;;  %v18793_v31 = vsel %vm1748_vm2, %v18786_v48, 0 }
0x1619   :  { %25642 = vmatprep.subr.bf16.mxu0 %v25641_v62  ;;  %v28282_v57 = vand.u32 4294901760, %v18793_v31 }
0x161a   :  { %v28277_v44 = vsub.f32 %v15631_v22, %v28266_v25 }
0x161b   :  { %v18869_v23 = vsub.f32 %v18793_v31, %v28282_v57 }
0x161d   :  { %24437 = vmatmul.mubr.f32.vlgmr.msra.gmra.mrb[22].mxu1 %v28212_v39  ;;  %v18870_v21 = vand.u32 4294901760, %v18869_v23 }
0x161e   :  { %25756 = vmatpush3.bf16.xpose.msra.mxu1 %v25753_v19  ;;  %24443 = vmatprep.mubr.f32.mxu1 %v28203_v13 }
0x161f   :  { %25758 = vmatprep.subr.bf16.mxu1 %v28215_v7  ;;  %24241 = vmatmul.mubr.f32.vlgmr.msra.gmra.mrb[24].mxu0 %v15196_v55  ;;  %v15707_v55 = vsub.f32 %v28260_v35, %v15706_v42 }
0x1620   :  { %25644 = vmatpush3.bf16.msra.mxu0 %v25641_v62  ;;  %24247 = vmatprep.mubr.f32.mxu0 %v28138_v17 }
0x1621   :  { %25646 = vmatprep.subr.bf16.mxu0 %v28173_v24  ;;  %v15708_v13 = vand.u32 4294901760, %v15707_v55 }
0x1625   :  { %24444 = vmatmul.mubr.f32.vlgmr.msra.gmra.mrb[22].mxu1 %v28223_v33  ;;  %v25793_v33 = vpack.c.bf16 %v18805_v40, %v18802_v4 }
0x1626   :  { %25760 = vmatpush3.bf16.xpose.msra.mxu1 %v28215_v7  ;;  %24450 = vmatprep.mubr.f32.mxu1 %v17812_v58 }
0x1627   :  { %25762 = vmatprep.subr.bf16.mxu1 %v25761_v30  ;;  %24248 = vmatmul.mubr.f32.vlgmr.msra.gmra.mrb[24].mxu0 %v28163_v10 }
0x1628   :  { %25648 = vmatpush3.bf16.msra.mxu0 %v28173_v24  ;;  %24254 = vmatprep.mubr.f32.mxu0 %v28138_v17  ;;  %v18788_v24 = vpop.permute.xlu1 %18787  ;;  %v15716_v17 = vand.u32 4294901760, %v28277_v44 }
0x1629   :  { %25650 = vmatprep.subr.bf16.mxu0 %v28061_v27  ;;  %v18795_v32 = vsel %vm1748_vm2, %v18788_v24, 0 }
0x162a   :  { %v15717_v58 = vsub.f32 %v28277_v44, %v15716_v17  ;;  %v28296_v46 = vand.u32 4294901760, %v18795_v32 }
0x162c   :  { %v15718_v12 = vand.u32 4294901760, %v15717_v58  ;;  %v18879_v53 = vsub.f32 %v18795_v32, %v28296_v46 }
0x162d   :  { %24451 = vmatmul.mubr.f32.vlgmr.msra.gmra.mrb[22].mxu1 %v17822_v63  ;;  %v18871_v63 = vsub.f32 %v18869_v23, %v18870_v21 }
0x162e   :  { %25764 = vmatpush3.bf16.xpose.msra.mxu1 %v25761_v30  ;;  %24457 = vmatprep.mubr.f32.mxu1 %v28190_v36  ;;  %v18880_v60 = vand.u32 4294901760, %v18879_v53 }
0x162f   :  { %25766 = vmatprep.subr.bf16.mxu1 %v28215_v7  ;;  %24255 = vmatmul.mubr.f32.vlgmr.msra.gmra.mrb[24].mxu0 %v28163_v10  ;;  %v18899_v10 = vsub.f32 %v28284_v1, %v18898_v29  ;;  %v18872_v59 = vand.u32 4294901760, %v18871_v63 }
0x1630   :  { %24261 = vmatprep.mubr.f32.mxu0 %v15708_v13 }
0x1631   :  { %25652 = vmatpush3.bf16.xpose.msra.mxu0 %v28061_v27  ;;  %v18900_v56 = vand.u32 4294901760, %v18899_v10 }
0x1632   :  { %25654 = vmatprep.subr.bf16.mxu0 %v28131_v54 }
0x1635   :  { %24458 = vmatmul.mubr.f32.vlgmr.msra.gmra.mrb[22].mxu1 %v28212_v39 }
0x1636   :  { %25768 = vmatpush3.bf16.xpose.msra.mxu1 %v28215_v7  ;;  %24464 = vmatprep.mubr.f32.mxu1 %v28190_v36  ;;  %v25797_v7 = vpack.c.bf16 %v18900_v56, %v18893_v16  ;;  %v18881_v36 = vsub.f32 %v18879_v53, %v18880_v60  ;;  %v28365_v16 = vld [vmem:[#allocation5 + $0x50] sm:$0xff] }
0x1637   :  { %25794 = vmatprep.subr.bf16.mxu1 %v25793_v33 }
0x1638   :  { %24262 = vmatmul.mubr.f32.vlgmr.msra.gmra.mrb[26].mxu0 %v15718_v12 }
0x1639   :  { %25656 = vmatpush3.bf16.xpose.msra.mxu0 %v28131_v54  ;;  %24268 = vmatprep.mubr.f32.mxu0 %v28251_v14  ;;  %v18882_v54 = vand.u32 4294901760, %v18881_v36 }
0x163a   :  { %25658 = vmatprep.subr.bf16.mxu0 %v28126_v11 }
0x163d   :  { %24465 = vmatmul.mubr.f32.vlgmr.msra.gmra.mrb[22].mxu1 %v28212_v39 }
0x163e   :  { %25796 = vmatpush3.bf16.xpose.msra.mxu1 %v25793_v33  ;;  %24513 = vmatprep.mubr.f32.mxu1 %v18872_v59 }
0x163f   :  { %25798 = vmatprep.subr.bf16.mxu1 %v25797_v7 }
0x1640   :  { %24269 = vmatmul.mubr.f32.vlgmr.msra.gmra.mrb[26].mxu0 %v28266_v25 }
0x1641   :  { %25660 = vmatpush3.bf16.xpose.msra.mxu0 %v28126_v11  ;;  %24275 = vmatprep.mubr.f32.mxu0 %v28260_v35  ;;  %v25809_v11 = vpack.c.bf16 %v18898_v29, %v18891_v51 }
0x1642   :  { %25662 = vmatprep.subr.bf16.mxu0 %v28061_v27 }
0x1645   :  { %24514 = vmatmul.mubr.f32.vlgmr.msra.gmra.mrb[24].mxu1 %v18882_v54 }
0x1646   :  { %25800 = vmatpush3.bf16.xpose.msra.mxu1 %v25797_v7  ;;  %24520 = vmatprep.mubr.f32.mxu1 %v28282_v57 }
0x1647   :  { %25802 = vmatprep.subr.bf16.mxu1 %v25801_v28 }
0x1648   :  { %24276 = vmatmul.mubr.f32.vlgmr.msra.gmra.mrb[26].mxu0 %v28277_v44 }
0x1649   :  { %25664 = vmatpush3.bf16.xpose.msra.mxu0 %v28061_v27  ;;  %24282 = vmatprep.mubr.f32.mxu0 %v15706_v42 }
0x164a   :  { %25666 = vmatprep.subr.bf16.mxu0 %v28133_v8 }
0x164d   :  { %24521 = vmatmul.mubr.f32.vlgmr.msra.gmra.mrb[24].mxu1 %v28296_v46 }
0x164e   :  { %25804 = vmatpush3.bf16.xpose.msra.mxu1 %v25801_v28  ;;  %24527 = vmatprep.mubr.f32.mxu1 %v18869_v23 }
0x164f   :  { %25806 = vmatprep.subr.bf16.mxu1 %v25793_v33 }
0x1650   :  { %24283 = vmatmul.mubr.f32.vlgmr.msra.gmra.mrb[26].mxu0 %v15716_v17 }
0x1651   :  { %25668 = vmatpush3.bf16.xpose.msra.mxu0 %v28133_v8  ;;  %24289 = vmatprep.mubr.f32.mxu0 %v28251_v14 }
0x1652   :  { %25670 = vmatprep.subr.bf16.mxu0 %v28061_v27 }
0x1655   :  { %24528 = vmatmul.mubr.f32.vlgmr.msra.gmra.mrb[24].mxu1 %v18879_v53 }
0x1656   :  { %25808 = vmatpush3.bf16.xpose.msra.mxu1 %v25793_v33  ;;  %24534 = vmatprep.mubr.f32.mxu1 %v18870_v21 }
0x1657   :  { %25810 = vmatprep.subr.bf16.mxu1 %v25809_v11 }
0x1658   :  { %24290 = vmatmul.mubr.f32.vlgmr.msra.gmra.mrb[26].mxu0 %v28266_v25 }
0x1659   :  { %25672 = vmatpush3.bf16.xpose.msra.mxu0 %v28061_v27  ;;  %24296 = vmatprep.mubr.f32.mxu0 %v28251_v14 }
0x165d   :  { %24535 = vmatmul.mubr.f32.vlgmr.msra.gmra.mrb[24].mxu1 %v18880_v60 }
0x165e   :  { %25812 = vmatpush3.bf16.xpose.msra.mxu1 %v25809_v11  ;;  %24541 = vmatprep.mubr.f32.mxu1 %v28282_v57 }
0x165f   :  { %25814 = vmatprep.subr.bf16.mxu1 %v25793_v33 }
0x1660   :  { %24297 = vmatmul.mubr.f32.vlgmr.msra.gmra.mrb[26].mxu0 %v28266_v25 }
0x1665   :  { %24542 = vmatmul.mubr.f32.vlgmr.msra.gmra.mrb[24].mxu1 %v28296_v46 }
0x1666   :  { %25816 = vmatpush3.bf16.xpose.msra.mxu1 %v25793_v33  ;;  %24548 = vmatprep.mubr.f32.mxu1 %v28282_v57 }
0x166d   :  { %24549 = vmatmul.mubr.f32.vlgmr.msra.gmra.mrb[24].mxu1 %v28296_v46 }
0x16e0   :  { %v24382_v8 = vpop.f32.mrb[20].mxu1 }
0x16e1   :  { %v17185_v39 = vpop.f32.mrb[21].mxu1  ;;  %v26019_v25 = vadd.f32 %v27948_v3, %v24382_v8 }
0x16e2   :  { %v26020_v52 = vadd.f32 %v27951_v26, %v17185_v39 }
0x16e3   :  { %v17198_v20 = vsel %vm47_vm0, %v26019_v25, -inf }
0x16e4   :  { %v17195_v48 = vsel %vm47_vm0, %v26020_v52, -inf }
0x1710   :  { %v24466_v19 = vpop.f32.mrb[22].mxu1 }
0x1711   :  { %v18235_v27 = vpop.f32.mrb[23].mxu1  ;;  %v26021_v35 = vadd.f32 %v27948_v3, %v24466_v19 }
0x1712   :  { %v26022_v61 = vadd.f32 %v27951_v26, %v18235_v27 }
0x1713   :  { %v18248_v42 = vsel %vm47_vm0, %v26021_v35, -inf }
0x1714   :  { %v18245_v44 = vsel %vm47_vm0, %v26022_v61, -inf }
0x1733   :  { %v24298_v62 = vpop.f32.mrb[26].mxu0 }
0x1734   :  { %v26017_v0 = vadd.f32 %v27948_v3, %v24298_v62  ;;  %v16129_v14 = vpop.f32.mrb[27].mxu0 }
0x1735   :  { %v26018_v37 = vadd.f32 %v27951_v26, %v16129_v14 }
0x1736   :  { %v16142_v22 = vsel %vm47_vm0, %v26017_v0, -inf }
0x1737   :  { %16143 = vmax.xlane.f32.xlu1 %v16142_v22  ;;  %v16139_v30 = vsel %vm47_vm0, %v26018_v37, -inf }
0x1738   :  { %16140 = vmax.xlane.f32.xlu0 %v16139_v30 }
0x173b   :  { %18249 = vmax.xlane.f32.xlu1 %v18248_v42 }
0x173c   :  { %17196 = vmax.xlane.f32.xlu0 %v17195_v48 }
0x1740   :  { %17199 = vmax.xlane.f32.xlu0 %v17198_v20  ;;  %v24550_v31 = vpop.f32.mrb[24].mxu1 }
0x1741   :  { %v19293_v40 = vpop.f32.mrb[25].mxu1 }
0x1742   :  { %v28368_v59 = vadd.f32 %v28365_v16, %v19293_v40 }
0x1744   :  { %18246 = vmax.xlane.f32.xlu0 %v18245_v44  ;;  %v19303_v28 = vsel %vm47_vm0, %v28368_v59, -inf }
0x17c4   :  { %v16144_v55 = vpop.xlane.xlu1 %16143 }
0x17c5   :  { %v16146_v4 = vsub.f32 %v26017_v0, %v16144_v55  ;;  %v16141_v57 = vpop.xlane.xlu0 %16140 }
0x17c6   :  { %v16145_v1 = vsub.f32 %v26018_v37, %v16141_v57 }
0x17c7   :  { %v16149_v24 = vmul.f32 1.442695, %v16146_v4 }
0x17c8   :  { %v16147_v3 = vmul.f32 1.442695, %v16145_v1  ;;  %v18250_v46 = vpop.xlane.xlu1 %18249 }
0x17c9   :  { %26610 = vpow2.f32 %v16149_v24  ;;  %v17197_v23 = vpop.xlane.xlu0 %17196  ;;  %v18252_v10 = vsub.f32 %v26021_v35, %v18250_v46 }
0x17ca   :  { %26612 = vpow2.f32 %v16147_v3  ;;  %v17201_v29 = vsub.f32 %v26020_v52, %v17197_v23 }
0x17cb   :  { %v18255_v50 = vmul.f32 1.442695, %v18252_v10 }
0x17cc   :  { %v17203_v51 = vmul.f32 1.442695, %v17201_v29 }
0x17cd   :  { %v17200_v32 = vpop.xlane.xlu0 %17199 }
0x17ce   :  { %v17202_v58 = vsub.f32 %v26019_v25, %v17200_v32  ;;  %26614 = vpow2.f32 %v17203_v51 }
0x17d0   :  { %v17205_v21 = vmul.f32 1.442695, %v17202_v58 }
0x17d1   :  { %v18247_v33 = vpop.xlane.xlu0 %18246 }
0x17d2   :  { %26616 = vpow2.f32 %v17205_v21  ;;  %v18251_v12 = vsub.f32 %v26022_v61, %v18247_v33 }
0x17d3   :  { %v28342_v17 = vpop.eup %26610  ;;  %26618 = vpow2.f32 %v18255_v50 }
0x17d4   :  { %v28344_v13 = vpop.eup %26612  ;;  %v16154_v26 = vsel %vm47_vm0, %v28342_v17, 0.0  ;;  %v18253_v53 = vmul.f32 1.442695, %v18251_v12 }
0x17d5   :  { %16155 = vadd.xlane.f32.xlu1 %v16154_v26  ;;  %v16151_v34 = vsel %vm47_vm0, %v28344_v13, 0.0 }
0x17d6   :  { %16152 = vadd.xlane.f32.xlu0 %v16151_v34  ;;  %26620 = vpow2.f32 %v18253_v53 }
0x17e6   :  { %16163 = vrot.lane.b32.xlu1 %v27828_v15, %s26747_s15  ;;  %v28354_v15 = vpop.eup %26614 }
0x17e7   :  { %v28356_v63 = vpop.eup %26616  ;;  %v17207_v60 = vsel %vm47_vm0, %v28354_v15, 0.0 }
0x17e8   :  { %v17210_v7 = vsel %vm47_vm0, %v28356_v63, 0.0  ;;  %v28374_v54 = vpop.eup %26618 }
0x17e9   :  { %v28378_v11 = vpop.eup %26620  ;;  %v18260_v8 = vsel %vm47_vm0, %v28374_v54, 0.0 }
0x17ea   :  { %v18257_v39 = vsel %vm47_vm0, %v28378_v11, 0.0 }
0x17ec   :  { %16161 = vrot.lane.b32.xlu0 %v27820_v18, %s26747_s15  ;;  %v28358_v18 = vld [vmem:[#allocation5 + $0x60] sm:$0xff] }
0x17ed   :  { %v28361_v56 = vadd.f32 %v28358_v18, %v24550_v31 }
0x17ef   :  { %v19306_v36 = vsel %vm47_vm0, %v28361_v56, -inf }
0x180a   :  { %17208 = vadd.xlane.f32.xlu1 %v17207_v60 }
0x180b   :  { %17211 = vadd.xlane.f32.xlu0 %v17210_v7 }
0x180e   :  { %19307 = vmax.xlane.f32.xlu1 %v19306_v36 }
0x180f   :  { %19304 = vmax.xlane.f32.xlu0 %v19303_v28 }
0x1812   :  { %18261 = vadd.xlane.f32.xlu1 %v18260_v8 }
0x1813   :  { %18258 = vadd.xlane.f32.xlu0 %v18257_v39 }
0x1823   :  { %18271 = vrot.lane.b32.xlu1 %v27831_v6, %s26741_s9 }
0x1829   :  { %18269 = vrot.lane.b32.xlu0 %v27823_v47, %s26741_s9 }
0x1862   :  { %v16156_v19 = vpop.xlane.xlu1 %16155 }
0x1863   :  { %26622 = vrcp.f32 %v16156_v19  ;;  %v16153_v27 = vpop.xlane.xlu0 %16152 }
0x1864   :  { %26624 = vrcp.f32 %v16153_v27 }
0x1866   :  { %v16164_v62 = vpop.permute.xlu1 %16163 }
0x1867   :  { %v16177_v0 = vand.u32 4294901760, %v16164_v62  ;;  %v16162_v14 = vpop.permute.xlu0 %16161 }
0x1868   :  { %v16174_v37 = vand.u32 4294901760, %v16162_v14 }
0x1869   :  { %v16269_v35 = vsub.f32 %v16164_v62, %v16177_v0 }
0x186a   :  { %v25673_v22 = vpack.c.bf16 %v16177_v0, %v16174_v37  ;;  %v16262_v52 = vsub.f32 %v16162_v14, %v16174_v37 }
0x186b   :  { %v16270_v30 = vand.u32 4294901760, %v16269_v35 }
0x186c   :  { %v16263_v42 = vand.u32 4294901760, %v16262_v52  ;;  %25674 = vmatprep.subr.bf16.mxu0 %v25673_v22 }
0x186d   :  { %v26623_v25 = vpop.eup %26622  ;;  %v16271_v48 = vsub.f32 %v16269_v35, %v16270_v30  ;;  %25676 = vmatpush3.bf16.msra.mxu0 %v25673_v22 }
0x186e   :  { %v26625_v61 = vpop.eup %26624  ;;  %v16160_v20 = vmul.f32 %v26623_v25, %v28342_v17  ;;  %v16264_v31 = vsub.f32 %v16262_v52, %v16263_v42  ;;  %v25689_v46 = vpack.c.bf16 %v16270_v30, %v16263_v42 }
0x186f   :  { %v16158_v40 = vmul.f32 %v26625_v61, %v28344_v13  ;;  %v16272_v44 = vand.u32 4294901760, %v16271_v48  ;;  %v25681_v13 = vpack.c.bf16 %v16269_v35, %v16262_v52 }
0x1870   :  { %v16265_v55 = vand.u32 4294901760, %v16264_v31  ;;  %v16171_v4 = vsel %vm47_vm0, %v16160_v20, 0 }
0x1871   :  { %v16168_v57 = vsel %vm47_vm0, %v16158_v40, 0  ;;  %v16250_v1 = vand.u32 4294901760, %v16171_v4 }
0x1872   :  { %v25677_v24 = vpack.c.bf16 %v16272_v44, %v16265_v55  ;;  %v16240_v3 = vand.u32 4294901760, %v16168_v57 }
0x1873   :  { %v16251_v26 = vsub.f32 %v16171_v4, %v16250_v1 }
0x1874   :  { %25678 = vmatprep.subr.bf16.mxu0 %v25677_v24  ;;  %v16241_v34 = vsub.f32 %v16168_v57, %v16240_v3 }
0x1875   :  { %v16252_v23 = vand.u32 4294901760, %v16251_v26 }
0x1876   :  { %v16242_v32 = vand.u32 4294901760, %v16241_v34 }
0x1877   :  { %v16253_v29 = vsub.f32 %v16251_v26, %v16252_v23 }
0x1878   :  { %v16243_v58 = vsub.f32 %v16241_v34, %v16242_v32 }
0x1879   :  { %v16254_v51 = vand.u32 4294901760, %v16253_v29 }
0x187a   :  { %v16244_v17 = vand.u32 4294901760, %v16243_v58 }
0x187c   :  { %24303 = vmatprep.mubr.f32.mxu0 %v16244_v17 }
0x187d   :  { %24304 = vmatmul.mubr.f32.vlgmr.msra.gmra.mrb[24].mxu0 %v16254_v51 }
0x187e   :  { %25680 = vmatpush3.bf16.msra.mxu0 %v25677_v24  ;;  %24310 = vmatprep.mubr.f32.mxu0 %v16240_v3 }
0x187f   :  { %25682 = vmatprep.subr.bf16.mxu0 %v25681_v13 }
0x1885   :  { %24311 = vmatmul.mubr.f32.vlgmr.msra.gmra.mrb[24].mxu0 %v16250_v1 }
0x1886   :  { %25684 = vmatpush3.bf16.msra.mxu0 %v25681_v13  ;;  %24317 = vmatprep.mubr.f32.mxu0 %v16241_v34 }
0x1887   :  { %25686 = vmatprep.subr.bf16.mxu0 %v25673_v22 }
0x188d   :  { %24318 = vmatmul.mubr.f32.vlgmr.msra.gmra.mrb[24].mxu0 %v16251_v26 }
0x188e   :  { %25688 = vmatpush3.bf16.msra.mxu0 %v25673_v22  ;;  %24324 = vmatprep.mubr.f32.mxu0 %v16242_v32 }
0x188f   :  { %25690 = vmatprep.subr.bf16.mxu0 %v25689_v46 }
0x1895   :  { %24325 = vmatmul.mubr.f32.vlgmr.msra.gmra.mrb[24].mxu0 %v16252_v23 }
0x1896   :  { %25692 = vmatpush3.bf16.msra.mxu0 %v25689_v46  ;;  %24331 = vmatprep.mubr.f32.mxu0 %v16240_v3 }
0x1897   :  { %25694 = vmatprep.subr.bf16.mxu0 %v25673_v22  ;;  %v17209_v21 = vpop.xlane.xlu1 %17208 }
0x1898   :  { %26626 = vrcp.f32 %v17209_v21  ;;  %v17212_v33 = vpop.xlane.xlu0 %17211 }
0x1899   :  { %26628 = vrcp.f32 %v17212_v33 }
0x189b   :  { %v19308_v10 = vpop.xlane.xlu1 %19307 }
0x189c   :  { %v19310_v12 = vsub.f32 %v28361_v56, %v19308_v10  ;;  %v19305_v50 = vpop.xlane.xlu0 %19304 }
0x189d   :  { %v19309_v53 = vsub.f32 %v28368_v59, %v19305_v50  ;;  %24332 = vmatmul.mubr.f32.vlgmr.msra.gmra.mrb[24].mxu0 %v16250_v1 }
0x189e   :  { %v19313_v60 = vmul.f32 1.442695, %v19310_v12  ;;  %25696 = vmatpush3.bf16.msra.mxu0 %v25673_v22  ;;  %24338 = vmatprep.mubr.f32.mxu0 %v16240_v3 }
0x189f   :  { %v19311_v7 = vmul.f32 1.442695, %v19309_v53  ;;  %25722 = vmatprep.subr.bf16.mxu0 %v27837_v9  ;;  %v18262_v61 = vpop.xlane.xlu1 %18261 }
0x18a0   :  { %26630 = vpow2.f32 %v19313_v60  ;;  %v18259_v48 = vpop.xlane.xlu0 %18258 }
0x18a1   :  { %26632 = vpow2.f32 %v19311_v7 }
0x18a2   :  { %v26627_v36 = vpop.eup %26626  ;;  %26634 = vrcp.f32 %v18259_v48 }
0x18a3   :  { %v26629_v28 = vpop.eup %26628  ;;  %v17214_v8 = vmul.f32 %v26627_v36, %v28354_v15  ;;  %26636 = vrcp.f32 %v18262_v61  ;;  %v18272_v31 = vpop.permute.xlu1 %18271 }
0x18a4   :  { %v17216_v39 = vmul.f32 %v26629_v28, %v28356_v63  ;;  %v18270_v40 = vpop.permute.xlu0 %18269  ;;  %v18285_v44 = vand.u32 4294901760, %v18272_v31 }
0x18a5   :  { %24339 = vmatmul.mubr.f32.vlgmr.msra.gmra.mrb[24].mxu0 %v16250_v1  ;;  %v17218_v56 = vsel %vm47_vm0, %v17214_v8, 0  ;;  %v18282_v55 = vand.u32 4294901760, %v18270_v40 }
0x18a6   :  { %25724 = vmatpush3.bf16.msra.mxu0 %v27837_v9  ;;  %v28399_v59 = vand.u32 4294901760, %v17218_v56  ;;  %v17221_v19 = vsel %vm47_vm0, %v17216_v39, 0  ;;  %v18377_v1 = vsub.f32 %v18272_v31, %v18285_v44 }
0x18a7   :  { %25726 = vmatprep.subr.bf16.mxu0 %v27850_v2  ;;  %v28403_v27 = vand.u32 4294901760, %v17221_v19  ;;  %v18370_v24 = vsub.f32 %v18270_v40, %v18282_v55  ;;  %v25769_v29 = vpack.c.bf16 %v18285_v44, %v18282_v55 }
0x18a8   :  { %v17291_v62 = vsub.f32 %v17218_v56, %v28399_v59 }
0x18a9   :  { %v17301_v0 = vsub.f32 %v17221_v19, %v28403_v27  ;;  %v18371_v26 = vand.u32 4294901760, %v18370_v24  ;;  %v25777_v12 = vpack.c.bf16 %v18377_v1, %v18370_v24 }
0x18aa   :  { %v28407_v15 = vpop.eup %26630  ;;  %v17292_v63 = vand.u32 4294901760, %v17291_v62 }
0x18ab   :  { %v28409_v14 = vpop.eup %26632  ;;  %v19318_v37 = vsel %vm47_vm0, %v28407_v15, 0.0  ;;  %v17302_v35 = vand.u32 4294901760, %v17301_v0  ;;  %v18372_v58 = vsub.f32 %v18370_v24, %v18371_v26 }
0x18ac   :  { %19319 = vadd.xlane.f32.xlu0 %v19318_v37  ;;  %v19315_v22 = vsel %vm47_vm0, %v28409_v14, 0.0  ;;  %v17293_v52 = vsub.f32 %v17291_v62, %v17292_v63  ;;  %v26635_v20 = vpop.eup %26634 }
0x18ad   :  { %19316 = vadd.xlane.f32.xlu1 %v19315_v22  ;;  %v17303_v30 = vsub.f32 %v17301_v0, %v17302_v35 }
0x18ae   :  { %v17294_v42 = vand.u32 4294901760, %v17293_v52 }
0x18af   :  { %v17304_v25 = vand.u32 4294901760, %v17303_v30 }
0x18b0   :  { %24387 = vmatprep.mubr.f32.mxu0 %v17294_v42 }
0x18b1   :  { %24388 = vmatmul.mubr.f32.vlgmr.msra.gmra.mrb[24].mxu0 %v17304_v25 }
0x18b2   :  { %25728 = vmatpush3.bf16.msra.mxu0 %v27850_v2  ;;  %24394 = vmatprep.mubr.f32.mxu0 %v28399_v59  ;;  %v18264_v2 = vmul.f32 %v26635_v20, %v28378_v11 }
0x18b3   :  { %25730 = vmatprep.subr.bf16.mxu0 %v27842_v49 }
0x18b4   :  { %v18276_v4 = vsel %vm47_vm0, %v18264_v2, 0 }
0x18b5   :  { %v18348_v57 = vand.u32 4294901760, %v18276_v4 }
0x18b7   :  { %v18349_v3 = vsub.f32 %v18276_v4, %v18348_v57 }
0x18b9   :  { %24395 = vmatmul.mubr.f32.vlgmr.msra.gmra.mrb[24].mxu0 %v28403_v27  ;;  %v18350_v23 = vand.u32 4294901760, %v18349_v3 }
0x18ba   :  { %25732 = vmatpush3.bf16.msra.mxu0 %v27842_v49  ;;  %24401 = vmatprep.mubr.f32.mxu0 %v17291_v62  ;;  %v26637_v49 = vpop.eup %26636 }
0x18bb   :  { %25734 = vmatprep.subr.bf16.mxu0 %v27837_v9  ;;  %v18266_v11 = vmul.f32 %v26637_v49, %v28374_v54  ;;  %v18378_v54 = vand.u32 4294901760, %v18377_v1  ;;  %v18351_v17 = vsub.f32 %v18349_v3, %v18350_v23 }
0x18bd   :  { %v18379_v32 = vsub.f32 %v18377_v1, %v18378_v54  ;;  %v18352_v46 = vand.u32 4294901760, %v18351_v17 }
0x18be   :  { %19327 = vrot.lane.b32.xlu1 %v27831_v6, %s26746_s14 }
0x18bf   :  { %v18380_v51 = vand.u32 4294901760, %v18379_v32 }
0x18c1   :  { %24402 = vmatmul.mubr.f32.vlgmr.msra.gmra.mrb[24].mxu0 %v17301_v0 }
0x18c2   :  { %25736 = vmatpush3.bf16.msra.mxu0 %v27837_v9  ;;  %19325 = vrot.lane.b32.xlu0 %v27823_v47, %s26746_s14 }
0x18c3   :  { %24408 = vmatprep.mubr.f32.mxu0 %v17292_v63  ;;  %25738 = vmatprep.subr.bf16.mxu0 %v27846_v43 }
0x18c4   :  { %19845 = vrot.lane.b32.xlu1 %v27787_v41, %s26754_s24 }
0x18c6   :  { %19841 = vrot.lane.b32.xlu0 %v27787_v41, %s26755_s25  ;;  %v18279_v41 = vsel %vm47_vm0, %v18266_v11, 0 }
0x18c7   :  { %v18358_v34 = vand.u32 4294901760, %v18279_v41 }
0x18c8   :  { %19847 = vrot.lane.b32.xlu1 %v27785_v5, %s26754_s24 }
0x18c9   :  { %24409 = vmatmul.mubr.f32.vlgmr.msra.gmra.mrb[24].mxu0 %v17302_v35 }
0x18ca   :  { %25740 = vmatpush3.bf16.msra.mxu0 %v27846_v43  ;;  %24415 = vmatprep.mubr.f32.mxu0 %v28399_v59  ;;  %v18359_v43 = vsub.f32 %v18279_v41, %v18358_v34 }
0x18cb   :  { %25742 = vmatprep.subr.bf16.mxu0 %v27837_v9 }
0x18cc   :  { %19843 = vrot.lane.b32.xlu1 %v27785_v5, %s26755_s25  ;;  %v18373_v5 = vand.u32 4294901760, %v18372_v58  ;;  %v18360_v13 = vand.u32 4294901760, %v18359_v43 }
0x18ce   :  { %v25773_v21 = vpack.c.bf16 %v18380_v51, %v18373_v5  ;;  %v18361_v33 = vsub.f32 %v18359_v43, %v18360_v13 }
0x18d0   :  { %v18362_v10 = vand.u32 4294901760, %v18361_v33 }
0x18d1   :  { %24416 = vmatmul.mubr.f32.vlgmr.msra.gmra.mrb[24].mxu0 %v28403_v27 }
0x18d2   :  { %25744 = vmatpush3.bf16.msra.mxu0 %v27837_v9  ;;  %24422 = vmatprep.mubr.f32.mxu0 %v28399_v59  ;;  %v25785_v9 = vpack.c.bf16 %v18378_v54, %v18371_v26 }
0x18d3   :  { %25770 = vmatprep.subr.bf16.mxu0 %v25769_v29 }
0x18d9   :  { %24423 = vmatmul.mubr.f32.vlgmr.msra.gmra.mrb[24].mxu0 %v28403_v27 }
0x18da   :  { %25772 = vmatpush3.bf16.msra.mxu0 %v25769_v29  ;;  %24471 = vmatprep.mubr.f32.mxu0 %v18352_v46 }
0x18db   :  { %25774 = vmatprep.subr.bf16.mxu0 %v25773_v21 }
0x18e1   :  { %24472 = vmatmul.mubr.f32.vlgmr.msra.gmra.mrb[24].mxu0 %v18362_v10 }
0x18e2   :  { %25776 = vmatpush3.bf16.msra.mxu0 %v25773_v21  ;;  %24478 = vmatprep.mubr.f32.mxu0 %v18348_v57 }
0x18e3   :  { %25778 = vmatprep.subr.bf16.mxu0 %v25777_v12 }
0x18e9   :  { %24479 = vmatmul.mubr.f32.vlgmr.msra.gmra.mrb[24].mxu0 %v18358_v34 }
0x18ea   :  { %25780 = vmatpush3.bf16.msra.mxu0 %v25777_v12  ;;  %24485 = vmatprep.mubr.f32.mxu0 %v18349_v3 }
0x18eb   :  { %25782 = vmatprep.subr.bf16.mxu0 %v25769_v29 }
0x18f1   :  { %24486 = vmatmul.mubr.f32.vlgmr.msra.gmra.mrb[24].mxu0 %v18359_v43 }
0x18f2   :  { %25784 = vmatpush3.bf16.msra.mxu0 %v25769_v29  ;;  %24492 = vmatprep.mubr.f32.mxu0 %v18350_v23 }
0x18f3   :  { %25786 = vmatprep.subr.bf16.mxu0 %v25785_v9 }
0x18f9   :  { %24493 = vmatmul.mubr.f32.vlgmr.msra.gmra.mrb[24].mxu0 %v18360_v13 }
0x18fa   :  { %25788 = vmatpush3.bf16.msra.mxu0 %v25785_v9  ;;  %24499 = vmatprep.mubr.f32.mxu0 %v18348_v57 }
0x18fb   :  { %25790 = vmatprep.subr.bf16.mxu0 %v25769_v29 }
0x1901   :  { %24500 = vmatmul.mubr.f32.vlgmr.msra.gmra.mrb[24].mxu0 %v18358_v34 }
0x1902   :  { %25792 = vmatpush3.bf16.msra.mxu0 %v25769_v29  ;;  %24506 = vmatprep.mubr.f32.mxu0 %v18348_v57 }
0x1909   :  { %24507 = vmatmul.mubr.f32.vlgmr.msra.gmra.mrb[24].mxu0 %v18358_v34 }
0x1939   :  { %v19320_v50 = vpop.xlane.xlu0 %19319 }
0x193a   :  { %26638 = vrcp.f32 %v19320_v50  ;;  %v19317_v53 = vpop.xlane.xlu1 %19316 }
0x193b   :  { %26640 = vrcp.f32 %v19317_v53 }
0x193d   :  { %v19326_v60 = vpop.permute.xlu0 %19325 }
0x193e   :  { %v19338_v7 = vand.u32 4294901760, %v19326_v60  ;;  %v19328_v36 = vpop.permute.xlu1 %19327 }
0x193f   :  { %v19341_v28 = vand.u32 4294901760, %v19328_v36 }
0x1940   :  { %v19426_v8 = vsub.f32 %v19326_v60, %v19338_v7 }
0x1941   :  { %v28446_v39 = vpack.c.bf16 %v19341_v28, %v19338_v7  ;;  %v19433_v56 = vsub.f32 %v19328_v36, %v19341_v28  ;;  %v19842_v1 = vpop.permute.xlu0 %19841 }
0x1942   :  { %v19427_v59 = vand.u32 4294901760, %v19426_v8  ;;  %v19846_v4 = vpop.permute.xlu1 %19845  ;;  %v19849_v3 = vsel %vm1748_vm2, %v19842_v1, 0 }
0x1943   :  { %v19434_v19 = vand.u32 4294901760, %v19433_v56  ;;  %25818 = vmatprep.subr.bf16.mxu0 %v28446_v39  ;;  %v19853_v41 = vsel %vm1748_vm2, %v19846_v4, 0  ;;  %v19924_v26 = vand.u32 4294901760, %v19849_v3 }
0x1944   :  { %v26639_v27 = vpop.eup %26638  ;;  %v19428_v62 = vsub.f32 %v19426_v8, %v19427_v59  ;;  %25820 = vmatpush3.bf16.msra.mxu0 %v28446_v39  ;;  %v19858_v34 = vand.u32 4294901760, %v19853_v41 }
0x1945   :  { %v26641_v0 = vpop.eup %26640  ;;  %v19324_v63 = vmul.f32 %v26639_v27, %v28407_v15  ;;  %v19435_v37 = vsub.f32 %v19433_v56, %v19434_v19  ;;  %v25833_v57 = vpack.c.bf16 %v19434_v19, %v19427_v59  ;;  %v19925_v29 = vsub.f32 %v19849_v3, %v19924_v26 }
0x1946   :  { %v19322_v35 = vmul.f32 %v26641_v0, %v28409_v14  ;;  %v19429_v22 = vand.u32 4294901760, %v19428_v62  ;;  %v25825_v14 = vpack.c.bf16 %v19433_v56, %v19426_v8  ;;  %v19848_v11 = vpop.permute.xlu1 %19847  ;;  %v19946_v58 = vsub.f32 %v19853_v41, %v19858_v34 }
0x1947   :  { %v19436_v52 = vand.u32 4294901760, %v19435_v37  ;;  %v19335_v30 = vsel %vm47_vm0, %v19324_v63, 0  ;;  %v19855_v24 = vsel %vm1748_vm2, %v19848_v11, 0  ;;  %v19926_v5 = vand.u32 4294901760, %v19925_v29 }
0x1948   :  { %v19332_v42 = vsel %vm47_vm0, %v19322_v35, 0  ;;  %v19414_v25 = vand.u32 4294901760, %v19335_v30  ;;  %v19861_v54 = vand.u32 4294901760, %v19855_v24  ;;  %v19947_v51 = vand.u32 4294901760, %v19946_v58 }
0x1949   :  { %v25821_v48 = vpack.c.bf16 %v19436_v52, %v19429_v22  ;;  %v19404_v61 = vand.u32 4294901760, %v19332_v42  ;;  %v19927_v12 = vsub.f32 %v19925_v29, %v19926_v5 }
0x194a   :  { %v19415_v20 = vsub.f32 %v19335_v30, %v19414_v25  ;;  %v19953_v23 = vsub.f32 %v19855_v24, %v19861_v54  ;;  %v19844_v32 = vpop.permute.xlu1 %19843  ;;  %v25841_v46 = vpack.c.bf16 %v19861_v54, %v19858_v34  ;;  %v19948_v33 = vsub.f32 %v19946_v58, %v19947_v51 }
0x194b   :  { %25822 = vmatprep.subr.bf16.mxu0 %v25821_v48  ;;  %v19405_v2 = vsub.f32 %v19332_v42, %v19404_v61  ;;  %v19851_v43 = vsel %vm1748_vm2, %v19844_v32, 0  ;;  %v19928_v53 = vand.u32 4294901760, %v19927_v12 }
0x194c   :  { %v19416_v31 = vand.u32 4294901760, %v19415_v20  ;;  %v19954_v17 = vand.u32 4294901760, %v19953_v23  ;;  %v19934_v13 = vand.u32 4294901760, %v19851_v43  ;;  %v19949_v60 = vand.u32 4294901760, %v19948_v33  ;;  %v11283_v33 = vld [vmem:[#allocation5 + $0x34] ss:$0 sm:$0xff] }
0x194d   :  { %v19406_v40 = vand.u32 4294901760, %v19405_v2  ;;  %v25849_v8 = vpack.c.bf16 %v19953_v23, %v19946_v58 }
0x194e   :  { %v19417_v49 = vsub.f32 %v19415_v20, %v19416_v31  ;;  %v19955_v21 = vsub.f32 %v19953_v23, %v19954_v17  ;;  %v19935_v10 = vsub.f32 %v19851_v43, %v19934_v13 }
0x194f   :  { %v19407_v44 = vsub.f32 %v19405_v2, %v19406_v40 }
0x1950   :  { %v19418_v55 = vand.u32 4294901760, %v19417_v49  ;;  %v19956_v9 = vand.u32 4294901760, %v19955_v21  ;;  %v19936_v50 = vand.u32 4294901760, %v19935_v10 }
0x1951   :  { %v19408_v15 = vand.u32 4294901760, %v19407_v44 }
0x1952   :  { %v25845_v7 = vpack.c.bf16 %v19956_v9, %v19949_v60  ;;  %v19937_v36 = vsub.f32 %v19935_v10, %v19936_v50 }
0x1953   :  { %24555 = vmatprep.mubr.f32.mxu0 %v19408_v15 }
0x1954   :  { %24556 = vmatmul.mubr.f32.vlgmr.msra.gmra.mrb[24].mxu0 %v19418_v55  ;;  %v19938_v28 = vand.u32 4294901760, %v19937_v36 }
0x1955   :  { %25824 = vmatpush3.bf16.msra.mxu0 %v25821_v48  ;;  %24562 = vmatprep.mubr.f32.mxu0 %v19404_v61 }
0x1956   :  { %25826 = vmatprep.subr.bf16.mxu0 %v25825_v14 }
0x195c   :  { %24563 = vmatmul.mubr.f32.vlgmr.msra.gmra.mrb[24].mxu0 %v19414_v25 }
0x195d   :  { %25828 = vmatpush3.bf16.msra.mxu0 %v25825_v14  ;;  %24569 = vmatprep.mubr.f32.mxu0 %v19405_v2 }
0x195e   :  { %25830 = vmatprep.subr.bf16.mxu0 %v28446_v39 }
0x1964   :  { %24570 = vmatmul.mubr.f32.vlgmr.msra.gmra.mrb[24].mxu0 %v19415_v20 }
0x1965   :  { %25832 = vmatpush3.bf16.msra.mxu0 %v28446_v39  ;;  %24576 = vmatprep.mubr.f32.mxu0 %v19406_v40 }
0x1966   :  { %25834 = vmatprep.subr.bf16.mxu0 %v25833_v57 }
0x196c   :  { %24577 = vmatmul.mubr.f32.vlgmr.msra.gmra.mrb[24].mxu0 %v19416_v31 }
0x196d   :  { %25836 = vmatpush3.bf16.msra.mxu0 %v25833_v57  ;;  %24583 = vmatprep.mubr.f32.mxu0 %v19404_v61 }
0x196e   :  { %25838 = vmatprep.subr.bf16.mxu0 %v28446_v39 }
0x1974   :  { %24584 = vmatmul.mubr.f32.vlgmr.msra.gmra.mrb[24].mxu0 %v19414_v25 }
0x1975   :  { %25840 = vmatpush3.bf16.msra.mxu0 %v28446_v39  ;;  %24590 = vmatprep.mubr.f32.mxu0 %v19404_v61  ;;  %v25857_v39 = vpack.c.bf16 %v19954_v17, %v19947_v51 }
0x1976   :  { %25842 = vmatprep.subr.bf16.mxu0 %v25841_v46 }
0x197c   :  { %24591 = vmatmul.mubr.f32.vlgmr.msra.gmra.mrb[24].mxu0 %v19414_v25 }
0x197d   :  { %24597 = vmatprep.mubr.f32.mxu0 %v19928_v53 }
0x197e   :  { %25844 = vmatpush3.bf16.xpose.msra.mxu0 %v25841_v46 }
0x197f   :  { %25846 = vmatprep.subr.bf16.mxu0 %v25845_v7 }
0x1985   :  { %24598 = vmatmul.mubr.f32.vlgmr.msra.gmra.mrb[28].mxu0 %v19938_v28 }
0x1986   :  { %25848 = vmatpush3.bf16.xpose.msra.mxu0 %v25845_v7  ;;  %24604 = vmatprep.mubr.f32.mxu0 %v19924_v26 }
0x1987   :  { %25850 = vmatprep.subr.bf16.mxu0 %v25849_v8 }
0x198d   :  { %24605 = vmatmul.mubr.f32.vlgmr.msra.gmra.mrb[28].mxu0 %v19934_v13 }
0x198e   :  { %25852 = vmatpush3.bf16.xpose.msra.mxu0 %v25849_v8  ;;  %24611 = vmatprep.mubr.f32.mxu0 %v19925_v29 }
0x198f   :  { %25854 = vmatprep.subr.bf16.mxu0 %v25841_v46 }
0x1995   :  { %24612 = vmatmul.mubr.f32.vlgmr.msra.gmra.mrb[28].mxu0 %v19935_v10 }
0x1996   :  { %25856 = vmatpush3.bf16.xpose.msra.mxu0 %v25841_v46  ;;  %24618 = vmatprep.mubr.f32.mxu0 %v19926_v5 }
0x1997   :  { %25858 = vmatprep.subr.bf16.mxu0 %v25857_v39 }
0x199d   :  { %24619 = vmatmul.mubr.f32.vlgmr.msra.gmra.mrb[28].mxu0 %v19936_v50 }
0x199e   :  { %25860 = vmatpush3.bf16.xpose.msra.mxu0 %v25857_v39  ;;  %24625 = vmatprep.mubr.f32.mxu0 %v19924_v26 }
0x199f   :  { %25862 = vmatprep.subr.bf16.mxu0 %v25841_v46 }
0x19a5   :  { %24626 = vmatmul.mubr.f32.vlgmr.msra.gmra.mrb[28].mxu0 %v19934_v13 }
0x19a6   :  { %25864 = vmatpush3.bf16.xpose.msra.mxu0 %v25841_v46  ;;  %24632 = vmatprep.mubr.f32.mxu0 %v19924_v26 }
0x19ad   :  { %24633 = vmatmul.mubr.f32.vlgmr.msra.gmra.mrb[28].mxu0 %v19934_v13 }
0x1a80   :  { %v24634_v56 = vpop.f32.mrb[28].mxu0 }
0x1a81   :  { %v26025_v59 = vadd.f32 %v28358_v18, %v24634_v56  ;;  %v20349_v19 = vpop.f32.mrb[29].mxu0 }
0x1a82   :  { %v26026_v27 = vadd.f32 %v28365_v16, %v20349_v19 }
0x1a83   :  { %v20362_v62 = vsel %vm47_vm0, %v26025_v59, -inf }
0x1a84   :  { %20363 = vmax.xlane.f32.xlu1 %v20362_v62  ;;  %v20359_v0 = vsel %vm47_vm0, %v26026_v27, -inf }
0x1a85   :  { %20360 = vmax.xlane.f32.xlu0 %v20359_v0  ;;  %v11299_v0 = vld [vmem:[#allocation5 + $0x1b0] sm:$0xff] }
0x1a95   :  { %20383 = vrot.lane.b32.xlu1 %v27831_v6, %s26747_s15 }
0x1b11   :  { %v20364_v63 = vpop.xlane.xlu1 %20363 }
0x1b12   :  { %v20366_v37 = vsub.f32 %v26025_v59, %v20364_v63  ;;  %v20361_v35 = vpop.xlane.xlu0 %20360  ;;  %v11300_v63 = vld [vmem:[#allocation5 + $0x1c0] sm:$0xff] }
0x1b13   :  { %v20365_v22 = vsub.f32 %v26026_v27, %v20361_v35  ;;  %v20938_v35 = vand.u32 4294901760, %v11299_v0 }
0x1b14   :  { %v20369_v52 = vmul.f32 1.442695, %v20366_v37  ;;  %v11301_v37 = vld [vmem:[#allocation5 + $0x1d0] sm:$0xff] }
0x1b15   :  { %v20367_v30 = vmul.f32 1.442695, %v20365_v22  ;;  %v20384_v6 = vpop.permute.xlu1 %20383  ;;  %v20941_v22 = vand.u32 4294901760, %v11300_v63 }
0x1b16   :  { %26642 = vpow2.f32 %v20369_v52  ;;  %v20397_v61 = vand.u32 4294901760, %v20384_v6  ;;  %v11302_v52 = vld [vmem:[#allocation5 + $0x1e0] sm:$0xff] }
0x1b17   :  { %26644 = vpow2.f32 %v20367_v30  ;;  %v20944_v30 = vand.u32 4294901760, %v11301_v37 }
0x1b18   :  { %v20489_v2 = vsub.f32 %v20384_v6, %v20397_v61  ;;  %v21035_v6 = vsub.f32 %v11300_v63, %v20941_v22 }
0x1b1a   :  { %v20490_v40 = vand.u32 4294901760, %v20489_v2 }
0x1b1c   :  { %v20491_v4 = vsub.f32 %v20489_v2, %v20490_v40 }
0x1b1e   :  { %v20492_v54 = vand.u32 4294901760, %v20491_v4 }
0x1b20   :  { %v26643_v18 = vpop.eup %26642 }
0x1b21   :  { %v20374_v16 = vsel %vm47_vm0, %v26643_v18, 0.0  ;;  %v26645_v42 = vpop.eup %26644 }
0x1b22   :  { %20375 = vadd.xlane.f32.xlu0 %v20374_v16  ;;  %v20371_v25 = vsel %vm47_vm0, %v26645_v42, 0.0  ;;  %v28496_v16 = vpack.c.bf16 %v20941_v22, %v20938_v35 }
0x1b24   :  { %25890 = vmatprep.subr.bf16.mxu1 %v28496_v16 }
0x1b25   :  { %25892 = vmatpush3.bf16.msra.mxu1 %v28496_v16 }
0x1b26   :  { %20372 = vadd.xlane.f32.xlu0 %v20371_v25  ;;  %v21028_v25 = vsub.f32 %v11299_v0, %v20938_v35 }
0x1b3c   :  { %20381 = vrot.lane.b32.xlu0 %v27823_v47, %s26747_s15 }
0x1baf   :  { %v20376_v48 = vpop.xlane.xlu0 %20375 }
0x1bb0   :  { %26646 = vrcp.f32 %v20376_v48  ;;  %v21042_v48 = vsub.f32 %v11301_v37, %v20944_v30 }
0x1bb3   :  { %v20373_v20 = vpop.xlane.xlu0 %20372 }
0x1bb4   :  { %26648 = vrcp.f32 %v20373_v20  ;;  %v21029_v20 = vand.u32 4294901760, %v21028_v25 }
0x1bb7   :  { %v20382_v31 = vpop.permute.xlu0 %20381 }
0x1bb8   :  { %v20394_v49 = vand.u32 4294901760, %v20382_v31 }
0x1bba   :  { %v26647_v44 = vpop.eup %26646  ;;  %v25865_v15 = vpack.c.bf16 %v20397_v61, %v20394_v49  ;;  %v20482_v55 = vsub.f32 %v20382_v31, %v20394_v49  ;;  %v21043_v31 = vand.u32 4294901760, %v21042_v48  ;;  %v21030_v49 = vsub.f32 %v21028_v25, %v21029_v20 }
0x1bbb   :  { %v20380_v14 = vmul.f32 %v26647_v44, %v26643_v18  ;;  %v20947_v18 = vand.u32 4294901760, %v11302_v52 }
0x1bbc   :  { %v20483_v11 = vand.u32 4294901760, %v20482_v55  ;;  %25866 = vmatprep.subr.bf16.mxu0 %v25865_v15  ;;  %v25873_v46 = vpack.c.bf16 %v20489_v2, %v20482_v55  ;;  %v21036_v2 = vand.u32 4294901760, %v21035_v6 }
0x1bbd   :  { %25868 = vmatpush3.bf16.msra.mxu0 %v25865_v15  ;;  %v20391_v47 = vsel %vm47_vm0, %v20380_v14, 0  ;;  %v21049_v61 = vsub.f32 %v11302_v52, %v20947_v18  ;;  %v21031_v14 = vand.u32 4294901760, %v21030_v49 }
0x1bbe   :  { %v26649_v57 = vpop.eup %26648  ;;  %v20484_v1 = vsub.f32 %v20482_v55, %v20483_v11  ;;  %v20470_v24 = vand.u32 4294901760, %v20391_v47  ;;  %v25881_v21 = vpack.c.bf16 %v20490_v40, %v20483_v11  ;;  %v21037_v44 = vsub.f32 %v21035_v6, %v21036_v2 }
0x1bbf   :  { %v20378_v3 = vmul.f32 %v26649_v57, %v26645_v42  ;;  %v28498_v42 = vpack.c.bf16 %v20947_v18, %v20944_v30  ;;  %v21050_v40 = vand.u32 4294901760, %v21049_v61  ;;  %v11305_v30 = vld [vmem:[#allocation5 + $0x250] sm:$0xff]  ;;  %v11306_v18 = vld [vmem:[#allocation5 + $0x260] sm:$0xff] }
0x1bc0   :  { %v20485_v41 = vand.u32 4294901760, %v20484_v1  ;;  %v20471_v26 = vsub.f32 %v20391_v47, %v20470_v24  ;;  %v21038_v4 = vand.u32 4294901760, %v21037_v44  ;;  %v25905_v1 = vpack.c.bf16 %v21035_v6, %v21028_v25 }
0x1bc1   :  { %v20388_v34 = vsel %vm47_vm0, %v20378_v3, 0  ;;  %25894 = vmatprep.subr.bf16.mxu1 %v28498_v42  ;;  %v21051_v55 = vsub.f32 %v21049_v61, %v21050_v40  ;;  %v25909_v3 = vpack.c.bf16 %v21049_v61, %v21042_v48  ;;  %v21474_v25 = vand.u32 4294901760, %v11305_v30 }
0x1bc2   :  { %v25869_v23 = vpack.c.bf16 %v20492_v54, %v20485_v41  ;;  %v20460_v32 = vand.u32 4294901760, %v20388_v34  ;;  %v20472_v29 = vand.u32 4294901760, %v20471_v26  ;;  %25896 = vmatpush3.bf16.msra.mxu1 %v28498_v42  ;;  %v25897_v57 = vpack.c.bf16 %v21038_v4, %v21031_v14 }
0x1bc3   :  { %v21052_v47 = vand.u32 4294901760, %v21051_v55  ;;  %v25921_v41 = vpack.c.bf16 %v21036_v2, %v21029_v20  ;;  %v25925_v54 = vpack.c.bf16 %v21050_v40, %v21043_v31  ;;  %v21477_v6 = vand.u32 4294901760, %v11306_v18 }
0x1bc4   :  { %25870 = vmatprep.subr.bf16.mxu0 %v25869_v23  ;;  %v20461_v58 = vsub.f32 %v20388_v34, %v20460_v32  ;;  %v20473_v17 = vsub.f32 %v20471_v26, %v20472_v29  ;;  %25898 = vmatprep.subr.bf16.mxu1 %v25897_v57  ;;  %v11304_v34 = vld [vmem:[#allocation5 + $0x240] sm:$0xff]  ;;  %v21572_v61 = vsub.f32 %v11305_v30, %v21474_v25 }
0x1bc5   :  { %v21579_v20 = vsub.f32 %v11306_v18, %v21477_v6 }
0x1bc6   :  { %v20462_v43 = vand.u32 4294901760, %v20461_v58  ;;  %v20474_v13 = vand.u32 4294901760, %v20473_v17 }
0x1bc7   :  { %v21580_v55 = vand.u32 4294901760, %v21579_v20 }
0x1bc8   :  { %v20463_v5 = vsub.f32 %v20461_v58, %v20462_v43 }
0x1bca   :  { %v20464_v51 = vand.u32 4294901760, %v20463_v5 }
0x1bcc   :  { %24639 = vmatprep.mubr.f32.mxu0 %v20464_v51 }
0x1bcd   :  { %24640 = vmatmul.mubr.f32.vlgmr.msra.gmra.mrb[24].mxu0 %v20474_v13 }
0x1bce   :  { %25872 = vmatpush3.bf16.msra.mxu0 %v25869_v23  ;;  %24646 = vmatprep.mubr.f32.mxu0 %v20460_v32 }
0x1bcf   :  { %25874 = vmatprep.subr.bf16.mxu0 %v25873_v46 }
0x1bd5   :  { %24647 = vmatmul.mubr.f32.vlgmr.msra.gmra.mrb[24].mxu0 %v20470_v24 }
0x1bd6   :  { %25876 = vmatpush3.bf16.msra.mxu0 %v25873_v46  ;;  %24653 = vmatprep.mubr.f32.mxu0 %v20461_v58 }
0x1bd7   :  { %25878 = vmatprep.subr.bf16.mxu0 %v25865_v15 }
0x1bdd   :  { %24654 = vmatmul.mubr.f32.vlgmr.msra.gmra.mrb[24].mxu0 %v20471_v26  ;;  %v11303_v26 = vld [vmem:[#allocation5 + $0x230] sm:$0xff] }
0x1bde   :  { %25880 = vmatpush3.bf16.msra.mxu0 %v25865_v15  ;;  %24660 = vmatprep.mubr.f32.mxu0 %v20462_v43  ;;  %v21468_v23 = vand.u32 4294901760, %v11303_v26 }
0x1bdf   :  { %25882 = vmatprep.subr.bf16.mxu0 %v25881_v21 }
0x1be0   :  { %v28506_v58 = vsub.f32 %v11303_v26, %v21468_v23 }
0x1be2   :  { %v21559_v2 = vand.u32 4294901760, %v28506_v58 }
0x1be5   :  { %24661 = vmatmul.mubr.f32.vlgmr.msra.gmra.mrb[24].mxu0 %v20472_v29 }
0x1be6   :  { %25884 = vmatpush3.bf16.msra.mxu0 %v25881_v21  ;;  %24667 = vmatprep.mubr.f32.mxu0 %v20460_v32 }
0x1be7   :  { %25886 = vmatprep.subr.bf16.mxu0 %v25865_v15 }
0x1bed   :  { %24668 = vmatmul.mubr.f32.vlgmr.msra.gmra.mrb[24].mxu0 %v20470_v24 }
0x1bee   :  { %25888 = vmatpush3.bf16.msra.mxu0 %v25865_v15  ;;  %24674 = vmatprep.mubr.f32.mxu0 %v20460_v32  ;;  %v21044_v15 = vsub.f32 %v21042_v48, %v21043_v31  ;;  %v21471_v32 = vand.u32 4294901760, %v11304_v34  ;;  %v28526_v48 = vpack.c.bf16 %v21477_v6, %v21474_v25 }
0x1bf0   :  { %v21045_v11 = vand.u32 4294901760, %v21044_v15  ;;  %v28504_v29 = vpack.c.bf16 %v21471_v32, %v21468_v23  ;;  %v28508_v43 = vsub.f32 %v11304_v34, %v21471_v32  ;;  %v21573_v15 = vand.u32 4294901760, %v21572_v61 }
0x1bf2   :  { %25938 = vmatprep.subr.bf16.mxu0 %v28504_v29  ;;  %v21566_v31 = vand.u32 4294901760, %v28508_v43  ;;  %v21574_v4 = vsub.f32 %v21572_v61, %v21573_v15 }
0x1bf4   :  { %v21567_v40 = vsub.f32 %v28508_v43, %v21566_v31 }
0x1bf5   :  { %24675 = vmatmul.mubr.f32.vlgmr.msra.gmra.mrb[24].mxu0 %v20470_v24  ;;  %v25901_v24 = vpack.c.bf16 %v21052_v47, %v21045_v11  ;;  %v21581_v11 = vsub.f32 %v21579_v20, %v21580_v55  ;;  %v21575_v47 = vand.u32 4294901760, %v21574_v4 }
0x1bf6   :  { %v21568_v44 = vand.u32 4294901760, %v21567_v40 }
0x1bf7   :  { %25940 = vmatpush3.bf16.xpose.msra.mxu0 %v28504_v29 }
0x1bf8   :  { %25942 = vmatprep.subr.bf16.mxu0 %v28526_v48 }
0x1bff   :  { %25944 = vmatpush3.bf16.xpose.msra.mxu0 %v28526_v48 }
0x1cc8   :  { %v24676_v10 = vpop.f32.mrb[24].mxu0 }
0x1cc9   :  { %v20898_v12 = vadd.f32 %v24676_v10, %v27616_v45  ;;  %v20885_v9 = vpop.f32.mrb[25].mxu0  ;;  %v11281_v10 = vld [vmem:[#allocation5 + $0x32] ss:$0 sm:$0xff] }
0x1cca   :  { %v20897_v50 = vadd.f32 %v20885_v9, %v27618_v38 }
0x1ccb   :  { %v28476_v53 = vadd.f32 %v20898_v12, %v11283_v33 }
0x1ccc   :  { %v28478_v60 = vadd.f32 %v20897_v50, %v11283_v33 }
0x1ccd   :  { %v20904_v7 = vsel %vm584_vm1, %v28476_v53, 0.0 }
0x1cce   :  { %20905 = vadd.xlane.f32.xlu0 %v20904_v7  ;;  %v20901_v36 = vsel %vm584_vm1, %v28478_v60, 0.0  ;;  %v11282_v7 = vld [vmem:[#allocation5 + $0x33] ss:$0 sm:$0xff] }
0x1ccf   :  { %20902 = vadd.xlane.f32.xlu1 %v20901_v36 }
0x1d5b   :  { %v20906_v28 = vpop.xlane.xlu0 %20905 }
0x1d5c   :  { %v20908_v8 = vmul.f32 0.03125, %v20906_v28  ;;  %v20903_v39 = vpop.xlane.xlu1 %20902 }
0x1d5d   :  { %v20907_v56 = vmul.f32 0.03125, %v20903_v39 }
0x1d5e   :  { %v28485_v45 = vsub.f32 %v28476_v53, %v20908_v8 }
0x1d5f   :  { %v28488_v38 = vsub.f32 %v28478_v60, %v20907_v56 }
0x1d60   :  { %v20912_v59 = vmul.f32 %v28485_v45, %v28485_v45 }
0x1d61   :  { %v20911_v19 = vmul.f32 %v28488_v38, %v28488_v38 }
0x1d62   :  { %v20916_v27 = vsel %vm584_vm1, %v20912_v59, 0.0 }
0x1d63   :  { %20917 = vadd.xlane.f32.xlu1 %v20916_v27  ;;  %v20913_v62 = vsel %vm584_vm1, %v20911_v19, 0.0 }
0x1d64   :  { %20914 = vadd.xlane.f32.xlu0 %v20913_v62 }
0x1df0   :  { %v20918_v17 = vpop.xlane.xlu1 %20917 }
0x1df1   :  { %v20920_v5 = vmul.f32 0.03125, %v20918_v17  ;;  %v20915_v51 = vpop.xlane.xlu0 %20914 }
0x1df2   :  { %v20919_v13 = vmul.f32 0.03125, %v20915_v51 }
0x1df3   :  { %v20922_v46 = vadd.f32 1e-05, %v20920_v5 }
0x1df4   :  { %v20921_v21 = vadd.f32 1e-05, %v20919_v13 }
0x1df5   :  { %26650 = vrsqrt.f32 %v20922_v46 }
0x1df6   :  { %26652 = vrsqrt.f32 %v20921_v21 }
0x1dff   :  { %v26651_v33 = vpop.eup %26650 }
0x1e00   :  { %v26653_v12 = vpop.eup %26652  ;;  %v20926_v9 = vmul.f32 %v26651_v33, %v28485_v45 }
0x1e01   :  { %v20925_v50 = vmul.f32 %v26653_v12, %v28488_v38  ;;  %v25953_v38 = vpack.c.bf16 %v28508_v43, %v28506_v58 }
0x1e02   :  { %v20928_v36 = vmul.f32 %v20926_v9, %v11281_v10 }
0x1e03   :  { %v20927_v28 = vmul.f32 %v20925_v50, %v11281_v10 }
0x1e04   :  { %v20930_v8 = vadd.f32 %v20928_v36, %v11282_v7 }
0x1e05   :  { %v20929_v39 = vadd.f32 %v20927_v28, %v11282_v7 }
0x1e06   :  { %v20935_v56 = vsel %vm584_vm1, %v20930_v8, 0  ;;  %v11284_v8 = vld [vmem:[#allocation5 + $0x35] ss:$0 sm:$0xff] }
0x1e07   :  { %v20932_v59 = vsel %vm584_vm1, %v20929_v39, 0  ;;  %v21016_v19 = vand.u32 4294901760, %v20935_v56 }
0x1e08   :  { %v21006_v27 = vand.u32 4294901760, %v20932_v59 }
0x1e09   :  { %v21017_v62 = vsub.f32 %v20935_v56, %v21016_v19 }
0x1e0a   :  { %v21007_v0 = vsub.f32 %v20932_v59, %v21006_v27 }
0x1e0b   :  { %v21018_v63 = vand.u32 4294901760, %v21017_v62 }
0x1e0c   :  { %v21008_v37 = vand.u32 4294901760, %v21007_v0 }
0x1e0d   :  { %v21019_v35 = vsub.f32 %v21017_v62, %v21018_v63 }
0x1e0e   :  { %v21009_v22 = vsub.f32 %v21007_v0, %v21008_v37 }
0x1e0f   :  { %v21020_v52 = vand.u32 4294901760, %v21019_v35 }
0x1e10   :  { %v21010_v45 = vand.u32 4294901760, %v21009_v22 }
0x1e12   :  { %24685 = vmatprep.mubr.f32.mxu1 %v21010_v45 }
0x1e13   :  { %24686 = vmatmul.mubr.f32.vlgmr.msra.gmra.mrb[26].mxu1 %v21020_v52 }
0x1e14   :  { %25900 = vmatpush3.bf16.msra.mxu1 %v25897_v57  ;;  %24696 = vmatprep.mubr.f32.mxu1 %v21006_v27  ;;  %v21582_v57 = vand.u32 4294901760, %v21581_v11 }
0x1e15   :  { %25902 = vmatprep.subr.bf16.mxu1 %v25901_v24 }
0x1e18   :  { %25904 = vmatpush3.bf16.msra.mxu1 %v25901_v24  ;;  %v25969_v24 = vpack.c.bf16 %v21566_v31, %v21559_v2 }
0x1e19   :  { %25906 = vmatprep.subr.bf16.mxu1 %v25905_v1 }
0x1e1b   :  { %24697 = vmatmul.mubr.f32.vlgmr.msra.gmra.mrb[26].mxu1 %v21016_v19 }
0x1e1c   :  { %25908 = vmatpush3.bf16.msra.mxu1 %v25905_v1  ;;  %24707 = vmatprep.mubr.f32.mxu1 %v21007_v0  ;;  %v25949_v1 = vpack.c.bf16 %v21582_v57, %v21575_v47 }
0x1e1d   :  { %25910 = vmatprep.subr.bf16.mxu1 %v25909_v3 }
0x1e20   :  { %25912 = vmatpush3.bf16.msra.mxu1 %v25909_v3  ;;  %v25973_v3 = vpack.c.bf16 %v21580_v55, %v21573_v15 }
0x1e21   :  { %25914 = vmatprep.subr.bf16.mxu1 %v28496_v16 }
0x1e23   :  { %24708 = vmatmul.mubr.f32.vlgmr.msra.gmra.mrb[26].mxu1 %v21017_v62 }
0x1e24   :  { %25916 = vmatpush3.bf16.msra.mxu1 %v28496_v16  ;;  %24718 = vmatprep.mubr.f32.mxu1 %v21008_v37 }
0x1e25   :  { %25918 = vmatprep.subr.bf16.mxu1 %v28498_v42 }
0x1e28   :  { %25920 = vmatpush3.bf16.msra.mxu1 %v28498_v42 }
0x1e29   :  { %25922 = vmatprep.subr.bf16.mxu1 %v25921_v41 }
0x1e2b   :  { %24719 = vmatmul.mubr.f32.vlgmr.msra.gmra.mrb[26].mxu1 %v21018_v63 }
0x1e2c   :  { %25924 = vmatpush3.bf16.msra.mxu1 %v25921_v41  ;;  %24729 = vmatprep.mubr.f32.mxu1 %v21006_v27  ;;  %v11286_v41 = vld [vmem:[#allocation5 + $0x37] ss:$0 sm:$0xff] }
0x1e2d   :  { %25926 = vmatprep.subr.bf16.mxu1 %v25925_v54 }
0x1e30   :  { %25928 = vmatpush3.bf16.msra.mxu1 %v25925_v54 }
0x1e31   :  { %25930 = vmatprep.subr.bf16.mxu1 %v28496_v16 }
0x1e33   :  { %24730 = vmatmul.mubr.f32.vlgmr.msra.gmra.mrb[26].mxu1 %v21016_v19 }
0x1e34   :  { %25932 = vmatpush3.bf16.msra.mxu1 %v28496_v16  ;;  %24740 = vmatprep.mubr.f32.mxu1 %v21006_v27  ;;  %v25957_v16 = vpack.c.bf16 %v21579_v20, %v21572_v61 }
0x1e35   :  { %25934 = vmatprep.subr.bf16.mxu1 %v28498_v42 }
0x1e38   :  { %25936 = vmatpush3.bf16.msra.mxu1 %v28498_v42  ;;  %v21560_v42 = vsub.f32 %v28506_v58, %v21559_v2 }
0x1e39   :  { %25954 = vmatprep.subr.bf16.mxu1 %v25953_v38 }
0x1e3a   :  { %v21561_v49 = vand.u32 4294901760, %v21560_v42 }
0x1e3b   :  { %24741 = vmatmul.mubr.f32.vlgmr.msra.gmra.mrb[26].mxu1 %v21016_v19 }
0x1e3c   :  { %v25945_v14 = vpack.c.bf16 %v21568_v44, %v21561_v49 }
0x1e3e   :  { %25946 = vmatprep.subr.bf16.mxu0 %v25945_v14 }
0x1e41   :  { %25956 = vmatpush3.bf16.xpose.msra.mxu1 %v25953_v38 }
0x1e42   :  { %25958 = vmatprep.subr.bf16.mxu1 %v25957_v16 }
0x1e49   :  { %25960 = vmatpush3.bf16.xpose.msra.mxu1 %v25957_v16 }
0x1e4a   :  { %25962 = vmatprep.subr.bf16.mxu1 %v28504_v29 }
0x1f0e   :  { %v24742_v54 = vpop.f32.mrb[26].mxu1 }
0x1f0f   :  { %v26027_v26 = vadd.f32 %v24742_v54, %v11286_v41  ;;  %v21455_v34 = vpop.f32.mrb[27].mxu1 }
0x1f10   :  { %v26028_v23 = vadd.f32 %v21455_v34, %v11286_v41 }
0x1f11   :  { %v21466_v32 = vmax.f32 %v26027_v26, 0.0 }
0x1f12   :  { %v21465_v58 = vmax.f32 %v26028_v23, 0.0 }
0x1f13   :  { %v21546_v43 = vand.u32 4294901760, %v21466_v32 }
0x1f14   :  { %v21536_v17 = vand.u32 4294901760, %v21465_v58 }
0x1f15   :  { %v21547_v5 = vsub.f32 %v21466_v32, %v21546_v43 }
0x1f16   :  { %v21537_v51 = vsub.f32 %v21465_v58, %v21536_v17 }
0x1f17   :  { %v21548_v13 = vand.u32 4294901760, %v21547_v5 }
0x1f18   :  { %24773 = vmatprep.mubr.f32.mxu1 %v21537_v51  ;;  %v21538_v46 = vand.u32 4294901760, %v21537_v51 }
0x1f19   :  { %v21549_v21 = vsub.f32 %v21547_v5, %v21548_v13  ;;  %24774 = vmatmul.mubr.f32.vlgmr.msra.gmra.mrb[28].mxu1 %v21547_v5 }
0x1f1a   :  { %25964 = vmatpush3.bf16.xpose.msra.mxu1 %v28504_v29  ;;  %24784 = vmatprep.mubr.f32.mxu1 %v21538_v46  ;;  %v21539_v33 = vsub.f32 %v21537_v51, %v21538_v46 }
0x1f1b   :  { %25966 = vmatprep.subr.bf16.mxu1 %v28526_v48  ;;  %v21550_v12 = vand.u32 4294901760, %v21549_v21 }
0x1f1c   :  { %v21540_v10 = vand.u32 4294901760, %v21539_v33 }
0x1f1e   :  { %24751 = vmatprep.mubr.f32.mxu0 %v21540_v10 }
0x1f1f   :  { %24752 = vmatmul.mubr.f32.vlgmr.msra.gmra.mrb[30].mxu0 %v21550_v12 }
0x1f20   :  { %25948 = vmatpush3.bf16.xpose.msra.mxu0 %v25945_v14  ;;  %24762 = vmatprep.mubr.f32.mxu0 %v21536_v17 }
0x1f21   :  { %25950 = vmatprep.subr.bf16.mxu0 %v25949_v1 }
0x1f22   :  { %25968 = vmatpush3.bf16.xpose.msra.mxu1 %v28526_v48 }
0x1f23   :  { %25970 = vmatprep.subr.bf16.mxu1 %v25969_v24 }
0x1f28   :  { %25952 = vmatpush3.bf16.xpose.msra.mxu0 %v25949_v1 }
0x1f29   :  { %24785 = vmatmul.mubr.f32.vlgmr.msra.gmra.mrb[28].mxu1 %v21548_v13 }
0x1f2a   :  { %25972 = vmatpush3.bf16.xpose.msra.mxu1 %v25969_v24  ;;  %24795 = vmatprep.mubr.f32.mxu1 %v21536_v17 }
0x1f2b   :  { %25974 = vmatprep.subr.bf16.mxu1 %v25973_v3 }
0x1f2f   :  { %24763 = vmatmul.mubr.f32.vlgmr.msra.gmra.mrb[30].mxu0 %v21546_v43 }
0x1f32   :  { %25976 = vmatpush3.bf16.xpose.msra.mxu1 %v25973_v3 }
0x1f33   :  { %25978 = vmatprep.subr.bf16.mxu1 %v28504_v29 }
0x1f39   :  { %24796 = vmatmul.mubr.f32.vlgmr.msra.gmra.mrb[28].mxu1 %v21546_v43 }
0x1f3a   :  { %25980 = vmatpush3.bf16.xpose.msra.mxu1 %v28504_v29  ;;  %24806 = vmatprep.mubr.f32.mxu1 %v21536_v17 }
0x1f3b   :  { %25982 = vmatprep.subr.bf16.mxu1 %v28526_v48 }
0x1f42   :  { %25984 = vmatpush3.bf16.xpose.msra.mxu1 %v28526_v48 }
0x1f49   :  { %24807 = vmatmul.mubr.f32.vlgmr.msra.gmra.mrb[28].mxu1 %v21546_v43 }
0x2002   :  { %v24764_v9 = vpop.f32.mrb[30].mxu0 }
0x2003   :  { %v21643_v50 = vpop.f32.mrb[31].mxu0 }
0x201c   :  { %v24808_v7 = vpop.f32.mrb[28].mxu1 }
0x201d   :  { %v26029_v36 = vadd.f32 %v24808_v7, %v24764_v9  ;;  %v21985_v28 = vpop.f32.mrb[29].mxu1 }
0x201e   :  { %v26030_v39 = vadd.f32 %v21985_v28, %v21643_v50 }
0x201f   :  { %v21996_v56 = vadd.f32 %v26029_v36, %v28476_v53 }
0x2020   :  { %v21995_v59 = vadd.f32 %v26030_v39, %v28478_v60 }
0x2021   :  { %v21998_v29 = vadd.f32 %v21996_v56, %v11284_v8 }
0x2022   :  { %v21997_v19 = vadd.f32 %v21995_v59, %v11284_v8 }
0x2023   :  { %22000 = vst.msk [vmem:[#allocation7 + $0x8] sm:$0xff] %vm584_vm1, %v21998_v29 }
0x2024   :  { %21999 = vst.msk [vmem:[#allocation7] sm:$0xff] %vm584_vm1, %v21997_v19 }
0x2025   :  { %26715 = shalt.err (!%p26712_p6)
}
0x2026   :  { %s26716_s3 = scalar_lea.hbm %s28563_s2, 256 }
0x2027   :  { %p26717_p7 = scmp.ne.s32.totalorder %s28563_s2, %s26716_s3  ;;  %p26720_p8 = scmp.lt.u32.totalorder %s26716_s3, %s28563_s2 }
0x2029   :  { %p26722_p9 = pnand %p26720_p8, %p26717_p7 }
0x202b   :  { %26725 = shalt.err (!%p26722_p9)
}
0x202c   :  { %22012 = dma.vmem_to_hbm [thread:$0]  %s22007_s27, 256, %s28563_s2, [#allocation4], %s26733_s19, %s26733_s19, %s26734_s20  }
0x202d   :  { %26730 = dma.done.wait [#allocation4], 256  }
0x202e   :  { %26731 = vsyncadd [#allocation4], 4294967040 }
0x202f   :  { %22016 = vsyncpa [#allocation3], 1 }
0x2030   :  { %22017 = vsyncpa [#allocation6], 1 }
0x2031   :  { %22018 = vsyncpa [#allocation4], 1 }

</bundles_post_ra>
